<compile_context>
chip_gen: v5e
topology: v5e:2x2
jax: 0.10.0
libtpu: 0.0.40
codegen_flags: <defaults>
</compile_context>

<pallas_src>
import jax
import jax.numpy as jnp
from jax.experimental import pallas as pl
from jax.experimental.pallas import tpu as pltpu

N_LAYERS = 7
EPS = 1e-5


def _round_up(v, m):
    return ((v + m - 1) // m) * m


def gat_kernel(adj_ref, x_ref, wa_ref, ba_ref, w0_ref, b0_ref, w1_ref, b1_ref,
               wf_ref, bf_ref, out_ref):
    # Refs (one batch element per grid step; Np/Dp are 128-padded):
    #   adj_ref : (1, Np, Np) compute dtype (diag already set to 1 on host)
    #   x_ref   : (1, Np, Dp) f32
    #   wa/w0/w1_ref : (7, Dp, Dp) compute dtype (pre-transposed: (in, out))
    #   ba/b0/b1_ref : (7, 1, Dp)  f32
    #   wf_ref  : (Dp, Dp) compute dtype ; bf_ref : (1, Dp) f32
    #   out_ref : (1, Np, Dp) f32
    cd = wa_ref.dtype                       # MXU operand dtype (bf16 by default)
    f32 = jnp.float32

    adj = adj_ref[0]                        # (Np, Np) cd, self-loops included
    x_init = x_ref[0]                       # (Np, Dp) f32

    def mxu(a, b, dims):
        # bf16 x bf16 -> f32 accumulate on the MXU; `dims` picks the
        # contraction so no operand transpose is ever materialised in-kernel.
        return jax.lax.dot_general(a, b, dimension_numbers=(dims, ((), ())),
                                   preferred_element_type=f32)

    def layer(l, x):
        x_cd = x.astype(cd)

        # w_attn[l](x) = x @ Wa^T + ba   (Wa already transposed on host)
        xa = mxu(x_cd, wa_ref[l], ((1,), (0,))) + ba_ref[l]          # (Np, Dp) f32

        # scores[i, k] = <w_attn(x)[i], x[k]>  -- contract last dims of both.
        scores = mxu(xa.astype(cd), x_cd, ((1,), (1,)))              # (Np, Np) f32

        # bf16 sigmoid + bf16 adjacency mask (binary adj exact in bf16).
        # TODO(synk): if bundle dumps show EUP on the critical path (v6e/v7x),
        #             rewrite as 0.5*tanh(0.5*s)+0.5.
        masked = jax.nn.sigmoid(scores.astype(cd)) * adj             # (Np, Np) cd

        # Row normalisation with the 1e-5*I term folded out of the NxN matrix:
        # (sig + eps*I)*adj == sig*adj + eps*I because diag(adj) == 1, and the
        # row scaling commutes with the aggregation matmul.  Row sum in f32.
        inv = 1.0 / (jnp.sum(masked.astype(f32), axis=1, keepdims=True) + EPS)
        agg = mxu(masked, x_cd, ((1,), (0,)))                        # (Np, Dp) f32
        h = (agg + EPS * x) * inv

        # linear0 -> ReLU -> linear1 -> ReLU -> residual.
        h = jnp.maximum(mxu(h.astype(cd), w0_ref[l], ((1,), (0,))) + b0_ref[l], 0.0)
        h = jnp.maximum(mxu(h.astype(cd), w1_ref[l], ((1,), (0,))) + b1_ref[l], 0.0)
        return h + x

    x = jax.lax.fori_loop(0, N_LAYERS, layer, x_init)

    out = mxu(x.astype(cd), wf_ref[...], ((1,), (0,))) + bf_ref[...]
    out_ref[0] = out.astype(out_ref.dtype)


def net_prot_gat_forward(x, adj, wa, ba, w0, b0, w1, b1, wf, bf,
                         *, compute_dtype=jnp.bfloat16):
    """x:(B,N,D); adj:(B,N,N); wa/w0/w1:(7,D,D) torch (out,in); ba/b0/b1:(7,D);
    wf:(D,D); bf:(D,).  Returns (B,N,D) float32."""
    B, N, D = x.shape
    f32 = jnp.float32
    Np = _round_up(N, 128)           # lane-dense attention tiles
    Dp = _round_up(D, 128)           # lane-dense activations / unmasked stores

    x_p = jnp.pad(x.astype(f32), ((0, 0), (0, Np - N), (0, Dp - D)))

    # Self loops set on the host (free, replaces the in-kernel where()); adj is
    # binary so the bf16 cast is exact.  Padded rows/cols remain zero -> inert.
    eye = jnp.eye(N, dtype=jnp.bool_)
    adj_sl = jnp.where(eye[None], f32(1.0), adj.astype(f32))
    adj_p = jnp.pad(adj_sl, ((0, 0), (0, Np - N), (0, Np - N))).astype(compute_dtype)

    def prep_w(w):
        # torch (..., out, in) -> (..., in, out), zero-pad to Dp, cast once.
        w_t = jnp.swapaxes(w, -1, -2).astype(f32)
        pad = [(0, 0)] * (w_t.ndim - 2) + [(0, Dp - D), (0, Dp - D)]
        return jnp.pad(w_t, pad).astype(compute_dtype)

    def prep_b(b, shape):
        b = jnp.pad(b.astype(f32), [(0, 0)] * (b.ndim - 1) + [(0, Dp - D)])
        return b.reshape(shape)

    wa_p, w0_p, w1_p, wf_p = prep_w(wa), prep_w(w0), prep_w(w1), prep_w(wf)
    ba_p = prep_b(ba, (N_LAYERS, 1, Dp))
    b0_p = prep_b(b0, (N_LAYERS, 1, Dp))
    b1_p = prep_b(b1, (N_LAYERS, 1, Dp))
    bf_p = prep_b(bf, (1, Dp))

    # VMEM budget: double-buffered adj/x/out blocks, weight stacks (counted
    # double-buffered to stay valid under the fallback), in-kernel (Np,Np)
    # temporaries (scores f32 + sigmoid/masked bf16) and activation temps.
    itemsize = jnp.dtype(compute_dtype).itemsize
    vmem_need = (2 * Np * Np * itemsize                          # adj block x2
                 + 4 * Np * Dp * 4                               # x + out blocks x2
                 + 2 * (3 * N_LAYERS + 1) * Dp * Dp * itemsize   # weight stacks
                 + (3 * N_LAYERS + 1) * 8 * Dp * 4               # biases (sublane pad)
                 + Np * Np * (4 + 2 * itemsize)                  # scores + masked temps
                 + 8 * Np * Dp * 4                               # activation temps
                 + (4 << 20))                                    # margin
    try:
        cap = int(pltpu.get_tpu_info().vmem_capacity_bytes) - (8 << 20)
    except Exception:
        cap = 64 << 20  # conservative: valid on every current generation
    vmem_limit = int(min(cap, max(32 << 20, vmem_need)))

    def build_call(single_buffer_consts):
        const_kw = dict(pipeline_mode=pl.Buffered(1)) if single_buffer_consts else {}

        def cspec(shape):
            nd = len(shape)
            # Constant index map: fetched once, VMEM-resident across the batch
            # grid; Buffered(1) drops the pointless second buffer.
            return pl.BlockSpec(shape, lambda b, _nd=nd: (0,) * _nd, **const_kw)

        grid_spec = pltpu.PrefetchScalarGridSpec(
            num_scalar_prefetch=0,
            grid=(B,),
            in_specs=[
                pl.BlockSpec((1, Np, Np), lambda b: (b, 0, 0)),   # adj (bf16)
                pl.BlockSpec((1, Np, Dp), lambda b: (b, 0, 0)),   # x   (f32)
                cspec((N_LAYERS, Dp, Dp)),                        # w_attn
                cspec((N_LAYERS, 1, Dp)),                         # b_attn
                cspec((N_LAYERS, Dp, Dp)),                        # w0
                cspec((N_LAYERS, 1, Dp)),                         # b0
                cspec((N_LAYERS, Dp, Dp)),                        # w1
                cspec((N_LAYERS, 1, Dp)),                         # b1
                cspec((Dp, Dp)),                                  # w_final
                cspec((1, Dp)),                                   # b_final
            ],
            out_specs=pl.BlockSpec((1, Np, Dp), lambda b: (b, 0, 0)),
        )
        return pl.pallas_call(
            gat_kernel,
            out_shape=jax.ShapeDtypeStruct((B, Np, Dp), f32),
            grid_spec=grid_spec,
            compiler_params=pltpu.CompilerParams(
                dimension_semantics=("parallel",),
                vmem_limit_bytes=vmem_limit),
        )

    args = (adj_p, x_p, wa_p, ba_p, w0_p, b0_p, w1_p, b1_p, wf_p, bf_p)
    try:
        out_p = build_call(True)(*args)
    except Exception:
        # Fallback for builds that reject pipeline_mode=pl.Buffered(1) on the
        # auto-pipelined pallas_call path (correctness identical, just keeps
        # the default double-buffered constant operands).
        out_p = build_call(False)(*args)

    return out_p[:, :N, :D]


def reference_forward_mirror(x, adj, wa, ba, w0, b0, w1, b1, wf, bf, compute_dtype):
    """Plain-JAX mirror of the kernel's op ordering AND precision policy
    (bf16 MXU operands / bf16 sigmoid+mask / f32 row sums and accumulation).
    Used for the tight check."""
    cd = compute_dtype
    f32 = jnp.float32
    B, N, D = x.shape
    eye = jnp.eye(N, dtype=jnp.bool_)
    adj_cd = jnp.where(eye[None], f32(1.0), adj.astype(f32)).astype(cd)
    x = x.astype(f32)

    wa_t = jnp.swapaxes(wa, -1, -2).astype(cd)
    w0_t = jnp.swapaxes(w0, -1, -2).astype(cd)
    w1_t = jnp.swapaxes(w1, -1, -2).astype(cd)
    wf_t = jnp.swapaxes(wf, -1, -2).astype(cd)

    def mm(subs, a, b):
        return jnp.einsum(subs, a.astype(cd), b.astype(cd),
                          preferred_element_type=f32)

    for l in range(N_LAYERS):
        x0 = x
        xa = mm('bnd,de->bne', x, wa_t[l]) + ba[l].astype(f32)
        scores = mm('bie,bke->bik', xa, x)
        masked = jax.nn.sigmoid(scores.astype(cd)) * adj_cd
        inv = 1.0 / (jnp.sum(masked.astype(f32), axis=2, keepdims=True) + EPS)
        h = (mm('bij,bjd->bid', masked, x) + EPS * x) * inv
        h = jax.nn.relu(mm('bnd,de->bne', h, w0_t[l]) + b0[l].astype(f32))
        h = jax.nn.relu(mm('bnd,de->bne', h, w1_t[l]) + b1[l].astype(f32))
        x = h + x0
    return mm('bnd,de->bne', x, wf_t) + bf.astype(f32)


def reference_forward_f32(x, adj, wa, ba, w0, b0, w1, b1, wf, bf):
    """Literal float32 translation of the PyTorch forward (loose check that
    bounds the bf16-matmul/sigmoid drift)."""
    f32 = jnp.float32
    B, N, D = x.shape
    x = x.astype(f32)
    eye = jnp.eye(N, dtype=f32)
    adj = jnp.where(eye[None] > 0, 1.0, adj.astype(f32))
    for l in range(N_LAYERS):
        x0 = x
        xa = jnp.einsum('bnd,ed->bne', x, wa[l]) + ba[l]
        attn = jax.nn.sigmoid(jnp.einsum('bie,bke->bik', xa, x))
        attn = attn + EPS * eye
        attn = attn * adj
        s = jnp.einsum('bij->bi', attn)
        attn = attn * (1.0 / s)[:, :, None]
        x = jnp.einsum('bij,bjd->bid', attn, x)
        x = jax.nn.relu(jnp.einsum('bnd,ed->bne', x, w0[l]) + b0[l])
        x = jax.nn.relu(jnp.einsum('bnd,ed->bne', x, w1[l]) + b1[l])
        x = x + x0
    return jnp.einsum('bnd,ed->bne', x, wf) + bf


if __name__ == "__main__":
    key = jax.random.PRNGKey(0)
    B, N, D = 2, 16, 32            # batch, nodes (stand-in for 1000), hidden_dim
    ks = jax.random.split(key, 10)

    adj = (jax.random.uniform(ks[0], (B, N, N)) > 0.5).astype(jnp.float32)
    x = jax.random.normal(ks[1], (B, N, D), dtype=jnp.float32)

    scale = 1.0 / jnp.sqrt(jnp.float32(D))
    wa = jax.random.normal(ks[2], (N_LAYERS, D, D), jnp.float32) * scale
    ba = jax.random.normal(ks[3], (N_LAYERS, D), jnp.float32) * scale
    w0 = jax.random.normal(ks[4], (N_LAYERS, D, D), jnp.float32) * scale
    b0 = jax.random.normal(ks[5], (N_LAYERS, D), jnp.float32) * scale
    w1 = jax.random.normal(ks[6], (N_LAYERS, D, D), jnp.float32) * scale
    b1 = jax.random.normal(ks[7], (N_LAYERS, D), jnp.float32) * scale
    wf = jax.random.normal(ks[8], (D, D), jnp.float32) * scale
    bf = jax.random.normal(ks[9], (D,), jnp.float32) * scale

    out = net_prot_gat_forward(x, adj, wa, ba, w0, b0, w1, b1, wf, bf)
    out = jax.block_until_ready(out)
    assert out.shape == (B, N, D)

    # 1) Tight check vs a reference with the identical bf16/f32 precision
    #    policy (validates masking, normalisation, residuals, padding).
    ref_m = reference_forward_mirror(x, adj, wa, ba, w0, b0, w1, b1, wf, bf,
                                     jnp.bfloat16)
    diff_m = float(jnp.max(jnp.abs(out - ref_m)))
    assert jnp.allclose(out, ref_m, atol=1e-2, rtol=1e-2), (
        "mismatch vs precision-matched reference, max abs diff %e" % diff_m)

    # 2) Loose check vs a literal float32 translation of the PyTorch forward
    #    (bounds the bf16 drift across the 7 layers).
    ref_f = reference_forward_f32(x, adj, wa, ba, w0, b0, w1, b1, wf, bf)
    diff_f = float(jnp.max(jnp.abs(out - ref_f)))
    assert jnp.allclose(out, ref_f, atol=1e-1, rtol=1e-1), (
        "mismatch vs float32 reference, max abs diff %e" % diff_f)

    print("KERNEL_OK")
</pallas_src>

<mosaic_0001>
module attributes {stable_mosaic.version = 11 : i64} {
  func.func @gat_kernel(%arg0: i32, %arg1: memref<1x128x128xbf16, #tpu.memory_space<vmem>>, %arg2: memref<1x128x128xf32, #tpu.memory_space<vmem>>, %arg3: memref<7x128x128xbf16, #tpu.memory_space<vmem>>, %arg4: memref<7x1x128xf32, #tpu.memory_space<vmem>>, %arg5: memref<7x128x128xbf16, #tpu.memory_space<vmem>>, %arg6: memref<7x1x128xf32, #tpu.memory_space<vmem>>, %arg7: memref<7x128x128xbf16, #tpu.memory_space<vmem>>, %arg8: memref<7x1x128xf32, #tpu.memory_space<vmem>>, %arg9: memref<128x128xbf16, #tpu.memory_space<vmem>>, %arg10: memref<1x128xf32, #tpu.memory_space<vmem>>, %arg11: memref<1x128x128xf32, #tpu.memory_space<vmem>>) attributes {dimension_semantics = [#tpu.dimension_semantics<parallel>], iteration_bounds = array<i64: 2>, scalar_prefetch = 0 : i64, scratch_operands = 0 : i64, tpu.core_type = #tpu.core_type<tc>, window_params = [{transform_indices = @transform_0, window_bounds = array<i64: 1, 128, 128>}, {transform_indices = @transform_1, window_bounds = array<i64: 1, 128, 128>}, {pipeline_mode = #tpu.pipeline_mode<synchronous>, transform_indices = @transform_2, window_bounds = array<i64: 7, 128, 128>}, {pipeline_mode = #tpu.pipeline_mode<synchronous>, transform_indices = @transform_3, window_bounds = array<i64: 7, 1, 128>}, {pipeline_mode = #tpu.pipeline_mode<synchronous>, transform_indices = @transform_4, window_bounds = array<i64: 7, 128, 128>}, {pipeline_mode = #tpu.pipeline_mode<synchronous>, transform_indices = @transform_5, window_bounds = array<i64: 7, 1, 128>}, {pipeline_mode = #tpu.pipeline_mode<synchronous>, transform_indices = @transform_6, window_bounds = array<i64: 7, 128, 128>}, {pipeline_mode = #tpu.pipeline_mode<synchronous>, transform_indices = @transform_7, window_bounds = array<i64: 7, 1, 128>}, {pipeline_mode = #tpu.pipeline_mode<synchronous>, transform_indices = @transform_8, window_bounds = array<i64: 128, 128>}, {pipeline_mode = #tpu.pipeline_mode<synchronous>, transform_indices = @transform_9, window_bounds = array<i64: 1, 128>}, {transform_indices = @transform_10, window_bounds = array<i64: 1, 128, 128>}]} {
    %c0 = arith.constant 0 : index
    %c0_0 = arith.constant 0 : index
    %c0_1 = arith.constant 0 : index
    %0 = vector.load %arg1[%c0, %c0_0, %c0_1] : memref<1x128x128xbf16, #tpu.memory_space<vmem>>, vector<1x128x128xbf16>
    %1 = vector.shape_cast %0 : vector<1x128x128xbf16> to vector<128x128xbf16>
    %c0_2 = arith.constant 0 : index
    %c0_3 = arith.constant 0 : index
    %c0_4 = arith.constant 0 : index
    %2 = vector.load %arg2[%c0_2, %c0_3, %c0_4] : memref<1x128x128xf32, #tpu.memory_space<vmem>>, vector<1x128x128xf32>
    %3 = vector.shape_cast %2 : vector<1x128x128xf32> to vector<128x128xf32>
    %c0_i32 = arith.constant 0 : i32
    %c7_i32 = arith.constant 7 : i32
    %4 = arith.addi %c0_i32, %c7_i32 : i32
    %c1_i32 = arith.constant 1 : i32
    %5 = scf.for %arg12 = %c0_i32 to %4 step %c1_i32 iter_args(%arg13 = %3) -> (vector<128x128xf32>)  : i32 {
      %15 = arith.truncf %arg13 : vector<128x128xf32> to vector<128x128xbf16>
      %16 = arith.index_cast %arg12 : i32 to index
      %c0_13 = arith.constant 0 : index
      %c0_14 = arith.constant 0 : index
      %17 = vector.load %arg3[%16, %c0_13, %c0_14] : memref<7x128x128xbf16, #tpu.memory_space<vmem>>, vector<1x128x128xbf16>
      %18 = vector.shape_cast %17 : vector<1x128x128xbf16> to vector<128x128xbf16>
      %cst_15 = arith.constant dense<0.000000e+00> : vector<128x128xf32>
      %19 = tpu.matmul %15, %18, %cst_15 {dimension_numbers = #tpu.dot_dimension_numbers<[1], [0], [0], [1], [0, 0, 1, 1], [], []>} : vector<128x128xbf16>, vector<128x128xbf16>, vector<128x128xf32> -> vector<128x128xf32>
      %20 = arith.index_cast %arg12 : i32 to index
      %c0_16 = arith.constant 0 : index
      %c0_17 = arith.constant 0 : index
      %21 = vector.load %arg4[%20, %c0_16, %c0_17] : memref<7x1x128xf32, #tpu.memory_space<vmem>>, vector<1x1x128xf32>
      %22 = vector.shape_cast %21 : vector<1x1x128xf32> to vector<1x128xf32>
      %23 = vector.broadcast %22 : vector<1x128xf32> to vector<128x128xf32>
      %24 = arith.addf %19, %23 : vector<128x128xf32>
      %25 = arith.truncf %24 : vector<128x128xf32> to vector<128x128xbf16>
      %cst_18 = arith.constant dense<0.000000e+00> : vector<128x128xf32>
      %26 = tpu.matmul %25, %15, %cst_18 {dimension_numbers = #tpu.dot_dimension_numbers<[1], [1], [0], [0], [0, 0, 1, 0], [], []>} : vector<128x128xbf16>, vector<128x128xbf16>, vector<128x128xf32> -> vector<128x128xf32>
      %27 = arith.truncf %26 : vector<128x128xf32> to vector<128x128xbf16>
      %28 = arith.negf %27 : vector<128x128xbf16>
      %29 = math.exp %28 : vector<128x128xbf16>
      %cst_19 = arith.constant 1.000000e+00 : bf16
      %30 = vector.broadcast %cst_19 : bf16 to vector<128x128xbf16>
      %31 = arith.addf %30, %29 : vector<128x128xbf16>
      %32 = arith.divf %30, %31 : vector<128x128xbf16>
      %33 = arith.mulf %32, %1 : vector<128x128xbf16>
      %34 = arith.extf %33 : vector<128x128xbf16> to vector<128x128xf32>
      %cst_20 = arith.constant dense<0.000000e+00> : vector<128xf32>
      %35 = vector.multi_reduction <add>, %34, %cst_20 [1] : vector<128x128xf32> to vector<128xf32>
      %36 = vector.shape_cast %35 : vector<128xf32> to vector<128x1xf32>
      %cst_21 = arith.constant 9.99999974E-6 : f32
      %37 = vector.broadcast %cst_21 : f32 to vector<128x1xf32>
      %38 = arith.addf %36, %37 : vector<128x1xf32>
      %cst_22 = arith.constant 1.000000e+00 : f32
      %39 = vector.broadcast %cst_22 : f32 to vector<128x1xf32>
      %40 = arith.divf %39, %38 : vector<128x1xf32>
      %cst_23 = arith.constant dense<0.000000e+00> : vector<128x128xf32>
      %41 = tpu.matmul %33, %15, %cst_23 {dimension_numbers = #tpu.dot_dimension_numbers<[1], [0], [0], [1], [0, 0, 1, 1], [], []>} : vector<128x128xbf16>, vector<128x128xbf16>, vector<128x128xf32> -> vector<128x128xf32>
      %cst_24 = arith.constant 9.99999974E-6 : f32
      %42 = vector.broadcast %cst_24 : f32 to vector<128x128xf32>
      %43 = arith.mulf %42, %arg13 : vector<128x128xf32>
      %44 = arith.addf %41, %43 : vector<128x128xf32>
      %45 = vector.broadcast %40 : vector<128x1xf32> to vector<128x128xf32>
      %46 = arith.mulf %44, %45 : vector<128x128xf32>
      %47 = arith.truncf %46 : vector<128x128xf32> to vector<128x128xbf16>
      %48 = arith.index_cast %arg12 : i32 to index
      %c0_25 = arith.constant 0 : index
      %c0_26 = arith.constant 0 : index
      %49 = vector.load %arg5[%48, %c0_25, %c0_26] : memref<7x128x128xbf16, #tpu.memory_space<vmem>>, vector<1x128x128xbf16>
      %50 = vector.shape_cast %49 : vector<1x128x128xbf16> to vector<128x128xbf16>
      %cst_27 = arith.constant dense<0.000000e+00> : vector<128x128xf32>
      %51 = tpu.matmul %47, %50, %cst_27 {dimension_numbers = #tpu.dot_dimension_numbers<[1], [0], [0], [1], [0, 0, 1, 1], [], []>} : vector<128x128xbf16>, vector<128x128xbf16>, vector<128x128xf32> -> vector<128x128xf32>
      %52 = arith.index_cast %arg12 : i32 to index
      %c0_28 = arith.constant 0 : index
      %c0_29 = arith.constant 0 : index
      %53 = vector.load %arg6[%52, %c0_28, %c0_29] : memref<7x1x128xf32, #tpu.memory_space<vmem>>, vector<1x1x128xf32>
      %54 = vector.shape_cast %53 : vector<1x1x128xf32> to vector<1x128xf32>
      %55 = vector.broadcast %54 : vector<1x128xf32> to vector<128x128xf32>
      %56 = arith.addf %51, %55 : vector<128x128xf32>
      %cst_30 = arith.constant 0.000000e+00 : f32
      %57 = vector.broadcast %cst_30 : f32 to vector<128x128xf32>
      %58 = arith.maximumf %56, %57 : vector<128x128xf32>
      %59 = arith.truncf %58 : vector<128x128xf32> to vector<128x128xbf16>
      %60 = arith.index_cast %arg12 : i32 to index
      %c0_31 = arith.constant 0 : index
      %c0_32 = arith.constant 0 : index
      %61 = vector.load %arg7[%60, %c0_31, %c0_32] : memref<7x128x128xbf16, #tpu.memory_space<vmem>>, vector<1x128x128xbf16>
      %62 = vector.shape_cast %61 : vector<1x128x128xbf16> to vector<128x128xbf16>
      %cst_33 = arith.constant dense<0.000000e+00> : vector<128x128xf32>
      %63 = tpu.matmul %59, %62, %cst_33 {dimension_numbers = #tpu.dot_dimension_numbers<[1], [0], [0], [1], [0, 0, 1, 1], [], []>} : vector<128x128xbf16>, vector<128x128xbf16>, vector<128x128xf32> -> vector<128x128xf32>
      %64 = arith.index_cast %arg12 : i32 to index
      %c0_34 = arith.constant 0 : index
      %c0_35 = arith.constant 0 : index
      %65 = vector.load %arg8[%64, %c0_34, %c0_35] : memref<7x1x128xf32, #tpu.memory_space<vmem>>, vector<1x1x128xf32>
      %66 = vector.shape_cast %65 : vector<1x1x128xf32> to vector<1x128xf32>
      %67 = vector.broadcast %66 : vector<1x128xf32> to vector<128x128xf32>
      %68 = arith.addf %63, %67 : vector<128x128xf32>
      %cst_36 = arith.constant 0.000000e+00 : f32
      %69 = vector.broadcast %cst_36 : f32 to vector<128x128xf32>
      %70 = arith.maximumf %68, %69 : vector<128x128xf32>
      %71 = arith.addf %70, %arg13 : vector<128x128xf32>
      scf.yield %71 : vector<128x128xf32>
    }
    %c7_i32_5 = arith.constant 7 : i32
    %6 = arith.truncf %5 : vector<128x128xf32> to vector<128x128xbf16>
    %c0_6 = arith.constant 0 : index
    %c0_7 = arith.constant 0 : index
    %7 = vector.load %arg9[%c0_6, %c0_7] : memref<128x128xbf16, #tpu.memory_space<vmem>>, vector<128x128xbf16>
    %cst = arith.constant dense<0.000000e+00> : vector<128x128xf32>
    %8 = tpu.matmul %6, %7, %cst {dimension_numbers = #tpu.dot_dimension_numbers<[1], [0], [0], [1], [0, 0, 1, 1], [], []>} : vector<128x128xbf16>, vector<128x128xbf16>, vector<128x128xf32> -> vector<128x128xf32>
    %c0_8 = arith.constant 0 : index
    %c0_9 = arith.constant 0 : index
    %9 = vector.load %arg10[%c0_8, %c0_9] : memref<1x128xf32, #tpu.memory_space<vmem>>, vector<1x128xf32>
    %10 = vector.broadcast %9 : vector<1x128xf32> to vector<128x128xf32>
    %11 = arith.addf %8, %10 : vector<128x128xf32>
    %c0_10 = arith.constant 0 : index
    %c0_11 = arith.constant 0 : index
    %c0_12 = arith.constant 0 : index
    %12 = vector.load %arg11[%c0_10, %c0_11, %c0_12] : memref<1x128x128xf32, #tpu.memory_space<vmem>>, vector<1x128x128xf32>
    %13 = vector.shape_cast %12 : vector<1x128x128xf32> to vector<128x128xf32>
    %14 = vector.shape_cast %11 : vector<128x128xf32> to vector<1x128x128xf32>
    tpu.vector_store %arg11[%c0_10, %c0_11, %c0_12], %14 {strides = array<i32>} : memref<1x128x128xf32, #tpu.memory_space<vmem>>, vector<1x128x128xf32>,
    return
  }
  func.func @transform_0(%arg0: i32) -> (i32, i32, i32) {
    %c0_i32 = arith.constant 0 : i32
    %c0_i32_0 = arith.constant 0 : i32
    %c0_i32_1 = arith.constant 0 : i32
    return %arg0, %c0_i32, %c0_i32_0 : i32, i32, i32
  }
  func.func @transform_1(%arg0: i32) -> (i32, i32, i32) {
    %c0_i32 = arith.constant 0 : i32
    %c0_i32_0 = arith.constant 0 : i32
    %c0_i32_1 = arith.constant 0 : i32
    return %arg0, %c0_i32, %c0_i32_0 : i32, i32, i32
  }
  func.func @transform_2(%arg0: i32) -> (i32, i32, i32) {
    %c0_i32 = arith.constant 0 : i32
    %c0_i32_0 = arith.constant 0 : i32
    %c0_i32_1 = arith.constant 0 : i32
    %c0_i32_2 = arith.constant 0 : i32
    return %c0_i32, %c0_i32_0, %c0_i32_1 : i32, i32, i32
  }
  func.func @transform_3(%arg0: i32) -> (i32, i32, i32) {
    %c0_i32 = arith.constant 0 : i32
    %c0_i32_0 = arith.constant 0 : i32
    %c0_i32_1 = arith.constant 0 : i32
    %c0_i32_2 = arith.constant 0 : i32
    return %c0_i32, %c0_i32_0, %c0_i32_1 : i32, i32, i32
  }
  func.func @transform_4(%arg0: i32) -> (i32, i32, i32) {
    %c0_i32 = arith.constant 0 : i32
    %c0_i32_0 = arith.constant 0 : i32
    %c0_i32_1 = arith.constant 0 : i32
    %c0_i32_2 = arith.constant 0 : i32
    return %c0_i32, %c0_i32_0, %c0_i32_1 : i32, i32, i32
  }
  func.func @transform_5(%arg0: i32) -> (i32, i32, i32) {
    %c0_i32 = arith.constant 0 : i32
    %c0_i32_0 = arith.constant 0 : i32
    %c0_i32_1 = arith.constant 0 : i32
    %c0_i32_2 = arith.constant 0 : i32
    return %c0_i32, %c0_i32_0, %c0_i32_1 : i32, i32, i32
  }
  func.func @transform_6(%arg0: i32) -> (i32, i32, i32) {
    %c0_i32 = arith.constant 0 : i32
    %c0_i32_0 = arith.constant 0 : i32
    %c0_i32_1 = arith.constant 0 : i32
    %c0_i32_2 = arith.constant 0 : i32
    return %c0_i32, %c0_i32_0, %c0_i32_1 : i32, i32, i32
  }
  func.func @transform_7(%arg0: i32) -> (i32, i32, i32) {
    %c0_i32 = arith.constant 0 : i32
    %c0_i32_0 = arith.constant 0 : i32
    %c0_i32_1 = arith.constant 0 : i32
    %c0_i32_2 = arith.constant 0 : i32
    return %c0_i32, %c0_i32_0, %c0_i32_1 : i32, i32, i32
  }
  func.func @transform_8(%arg0: i32) -> (i32, i32) {
    %c0_i32 = arith.constant 0 : i32
    %c0_i32_0 = arith.constant 0 : i32
    %c0_i32_1 = arith.constant 0 : i32
    return %c0_i32, %c0_i32_0 : i32, i32
  }
  func.func @transform_9(%arg0: i32) -> (i32, i32) {
    %c0_i32 = arith.constant 0 : i32
    %c0_i32_0 = arith.constant 0 : i32
    %c0_i32_1 = arith.constant 0 : i32
    return %c0_i32, %c0_i32_0 : i32, i32
  }
  func.func @transform_10(%arg0: i32) -> (i32, i32, i32) {
    %c0_i32 = arith.constant 0 : i32
    %c0_i32_0 = arith.constant 0 : i32
    %c0_i32_1 = arith.constant 0 : i32
    return %arg0, %c0_i32, %c0_i32_0 : i32, i32, i32
  }
}

module attributes {stable_mosaic.version = 11 : i64} {
  func.func @gat_kernel(%arg0: i32, %arg1: memref<1x128x128xbf16, #tpu.memory_space<vmem>>, %arg2: memref<1x128x128xf32, #tpu.memory_space<vmem>>, %arg3: memref<7x128x128xbf16, #tpu.memory_space<vmem>>, %arg4: memref<7x1x128xf32, #tpu.memory_space<vmem>>, %arg5: memref<7x128x128xbf16, #tpu.memory_space<vmem>>, %arg6: memref<7x1x128xf32, #tpu.memory_space<vmem>>, %arg7: memref<7x128x128xbf16, #tpu.memory_space<vmem>>, %arg8: memref<7x1x128xf32, #tpu.memory_space<vmem>>, %arg9: memref<128x128xbf16, #tpu.memory_space<vmem>>, %arg10: memref<1x128xf32, #tpu.memory_space<vmem>>, %arg11: memref<1x128x128xf32, #tpu.memory_space<vmem>>) attributes {dimension_semantics = [#tpu.dimension_semantics<parallel>], iteration_bounds = array<i64: 2>, scalar_prefetch = 0 : i64, scratch_operands = 0 : i64, tpu.core_type = #tpu.core_type<tc>, window_params = [{transform_indices = @transform_0, window_bounds = array<i64: 1, 128, 128>}, {transform_indices = @transform_1, window_bounds = array<i64: 1, 128, 128>}, {pipeline_mode = #tpu.pipeline_mode<synchronous>, transform_indices = @transform_2, window_bounds = array<i64: 7, 128, 128>}, {pipeline_mode = #tpu.pipeline_mode<synchronous>, transform_indices = @transform_3, window_bounds = array<i64: 7, 1, 128>}, {pipeline_mode = #tpu.pipeline_mode<synchronous>, transform_indices = @transform_4, window_bounds = array<i64: 7, 128, 128>}, {pipeline_mode = #tpu.pipeline_mode<synchronous>, transform_indices = @transform_5, window_bounds = array<i64: 7, 1, 128>}, {pipeline_mode = #tpu.pipeline_mode<synchronous>, transform_indices = @transform_6, window_bounds = array<i64: 7, 128, 128>}, {pipeline_mode = #tpu.pipeline_mode<synchronous>, transform_indices = @transform_7, window_bounds = array<i64: 7, 1, 128>}, {pipeline_mode = #tpu.pipeline_mode<synchronous>, transform_indices = @transform_8, window_bounds = array<i64: 128, 128>}, {pipeline_mode = #tpu.pipeline_mode<synchronous>, transform_indices = @transform_9, window_bounds = array<i64: 1, 128>}, {transform_indices = @transform_10, window_bounds = array<i64: 1, 128, 128>}]} {
    %c0 = arith.constant 0 : index
    %c0_0 = arith.constant 0 : index
    %c0_1 = arith.constant 0 : index
    %0 = vector.load %arg1[%c0, %c0_0, %c0_1] : memref<1x128x128xbf16, #tpu.memory_space<vmem>>, vector<1x128x128xbf16>
    %1 = vector.shape_cast %0 : vector<1x128x128xbf16> to vector<128x128xbf16>
    %c0_2 = arith.constant 0 : index
    %c0_3 = arith.constant 0 : index
    %c0_4 = arith.constant 0 : index
    %2 = vector.load %arg2[%c0_2, %c0_3, %c0_4] : memref<1x128x128xf32, #tpu.memory_space<vmem>>, vector<1x128x128xf32>
    %3 = vector.shape_cast %2 : vector<1x128x128xf32> to vector<128x128xf32>
    %c0_i32 = arith.constant 0 : i32
    %c7_i32 = arith.constant 7 : i32
    %4 = arith.addi %c0_i32, %c7_i32 : i32
    %c1_i32 = arith.constant 1 : i32
    %5 = scf.for %arg12 = %c0_i32 to %4 step %c1_i32 iter_args(%arg13 = %3) -> (vector<128x128xf32>)  : i32 {
      %15 = arith.truncf %arg13 : vector<128x128xf32> to vector<128x128xbf16>
      %16 = arith.index_cast %arg12 : i32 to index
      %c0_13 = arith.constant 0 : index
      %c0_14 = arith.constant 0 : index
      %17 = vector.load %arg3[%16, %c0_13, %c0_14] : memref<7x128x128xbf16, #tpu.memory_space<vmem>>, vector<1x128x128xbf16>
      %18 = vector.shape_cast %17 : vector<1x128x128xbf16> to vector<128x128xbf16>
      %cst_15 = arith.constant dense<0.000000e+00> : vector<128x128xf32>
      %19 = tpu.matmul %15, %18, %cst_15 {dimension_numbers = #tpu.dot_dimension_numbers<[1], [0], [0], [1], [0, 0, 1, 1], [], []>} : vector<128x128xbf16>, vector<128x128xbf16>, vector<128x128xf32> -> vector<128x128xf32>
      %20 = arith.index_cast %arg12 : i32 to index
      %c0_16 = arith.constant 0 : index
      %c0_17 = arith.constant 0 : index
      %21 = vector.load %arg4[%20, %c0_16, %c0_17] : memref<7x1x128xf32, #tpu.memory_space<vmem>>, vector<1x1x128xf32>
      %22 = vector.shape_cast %21 : vector<1x1x128xf32> to vector<1x128xf32>
      %23 = vector.broadcast %22 : vector<1x128xf32> to vector<128x128xf32>
      %24 = arith.addf %19, %23 : vector<128x128xf32>
      %25 = arith.truncf %24 : vector<128x128xf32> to vector<128x128xbf16>
      %cst_18 = arith.constant dense<0.000000e+00> : vector<128x128xf32>
      %26 = tpu.matmul %25, %15, %cst_18 {dimension_numbers = #tpu.dot_dimension_numbers<[1], [1], [0], [0], [0, 0, 1, 0], [], []>} : vector<128x128xbf16>, vector<128x128xbf16>, vector<128x128xf32> -> vector<128x128xf32>
      %27 = arith.truncf %26 : vector<128x128xf32> to vector<128x128xbf16>
      %28 = arith.negf %27 : vector<128x128xbf16>
      %29 = math.exp %28 : vector<128x128xbf16>
      %cst_19 = arith.constant 1.000000e+00 : bf16
      %30 = vector.broadcast %cst_19 : bf16 to vector<128x128xbf16>
      %31 = arith.addf %30, %29 : vector<128x128xbf16>
      %32 = arith.divf %30, %31 : vector<128x128xbf16>
      %33 = arith.mulf %32, %1 : vector<128x128xbf16>
      %34 = arith.extf %33 : vector<128x128xbf16> to vector<128x128xf32>
      %cst_20 = arith.constant dense<0.000000e+00> : vector<128xf32>
      %35 = vector.multi_reduction <add>, %34, %cst_20 [1] : vector<128x128xf32> to vector<128xf32>
      %36 = vector.shape_cast %35 : vector<128xf32> to vector<128x1xf32>
      %cst_21 = arith.constant 9.99999974E-6 : f32
      %37 = vector.broadcast %cst_21 : f32 to vector<128x1xf32>
      %38 = arith.addf %36, %37 : vector<128x1xf32>
      %cst_22 = arith.constant 1.000000e+00 : f32
      %39 = vector.broadcast %cst_22 : f32 to vector<128x1xf32>
      %40 = arith.divf %39, %38 : vector<128x1xf32>
      %cst_23 = arith.constant dense<0.000000e+00> : vector<128x128xf32>
      %41 = tpu.matmul %33, %15, %cst_23 {dimension_numbers = #tpu.dot_dimension_numbers<[1], [0], [0], [1], [0, 0, 1, 1], [], []>} : vector<128x128xbf16>, vector<128x128xbf16>, vector<128x128xf32> -> vector<128x128xf32>
      %cst_24 = arith.constant 9.99999974E-6 : f32
      %42 = vector.broadcast %cst_24 : f32 to vector<128x128xf32>
      %43 = arith.mulf %42, %arg13 : vector<128x128xf32>
      %44 = arith.addf %41, %43 : vector<128x128xf32>
      %45 = vector.broadcast %40 : vector<128x1xf32> to vector<128x128xf32>
      %46 = arith.mulf %44, %45 : vector<128x128xf32>
      %47 = arith.truncf %46 : vector<128x128xf32> to vector<128x128xbf16>
      %48 = arith.index_cast %arg12 : i32 to index
      %c0_25 = arith.constant 0 : index
      %c0_26 = arith.constant 0 : index
      %49 = vector.load %arg5[%48, %c0_25, %c0_26] : memref<7x128x128xbf16, #tpu.memory_space<vmem>>, vector<1x128x128xbf16>
      %50 = vector.shape_cast %49 : vector<1x128x128xbf16> to vector<128x128xbf16>
      %cst_27 = arith.constant dense<0.000000e+00> : vector<128x128xf32>
      %51 = tpu.matmul %47, %50, %cst_27 {dimension_numbers = #tpu.dot_dimension_numbers<[1], [0], [0], [1], [0, 0, 1, 1], [], []>} : vector<128x128xbf16>, vector<128x128xbf16>, vector<128x128xf32> -> vector<128x128xf32>
      %52 = arith.index_cast %arg12 : i32 to index
      %c0_28 = arith.constant 0 : index
      %c0_29 = arith.constant 0 : index
      %53 = vector.load %arg6[%52, %c0_28, %c0_29] : memref<7x1x128xf32, #tpu.memory_space<vmem>>, vector<1x1x128xf32>
      %54 = vector.shape_cast %53 : vector<1x1x128xf32> to vector<1x128xf32>
      %55 = vector.broadcast %54 : vector<1x128xf32> to vector<128x128xf32>
      %56 = arith.addf %51, %55 : vector<128x128xf32>
      %cst_30 = arith.constant 0.000000e+00 : f32
      %57 = vector.broadcast %cst_30 : f32 to vector<128x128xf32>
      %58 = arith.maximumf %56, %57 : vector<128x128xf32>
      %59 = arith.truncf %58 : vector<128x128xf32> to vector<128x128xbf16>
      %60 = arith.index_cast %arg12 : i32 to index
      %c0_31 = arith.constant 0 : index
      %c0_32 = arith.constant 0 : index
      %61 = vector.load %arg7[%60, %c0_31, %c0_32] : memref<7x128x128xbf16, #tpu.memory_space<vmem>>, vector<1x128x128xbf16>
      %62 = vector.shape_cast %61 : vector<1x128x128xbf16> to vector<128x128xbf16>
      %cst_33 = arith.constant dense<0.000000e+00> : vector<128x128xf32>
      %63 = tpu.matmul %59, %62, %cst_33 {dimension_numbers = #tpu.dot_dimension_numbers<[1], [0], [0], [1], [0, 0, 1, 1], [], []>} : vector<128x128xbf16>, vector<128x128xbf16>, vector<128x128xf32> -> vector<128x128xf32>
      %64 = arith.index_cast %arg12 : i32 to index
      %c0_34 = arith.constant 0 : index
      %c0_35 = arith.constant 0 : index
      %65 = vector.load %arg8[%64, %c0_34, %c0_35] : memref<7x1x128xf32, #tpu.memory_space<vmem>>, vector<1x1x128xf32>
      %66 = vector.shape_cast %65 : vector<1x1x128xf32> to vector<1x128xf32>
      %67 = vector.broadcast %66 : vector<1x128xf32> to vector<128x128xf32>
      %68 = arith.addf %63, %67 : vector<128x128xf32>
      %cst_36 = arith.constant 0.000000e+00 : f32
      %69 = vector.broadcast %cst_36 : f32 to vector<128x128xf32>
      %70 = arith.maximumf %68, %69 : vector<128x128xf32>
      %71 = arith.addf %70, %arg13 : vector<128x128xf32>
      scf.yield %71 : vector<128x128xf32>
    }
    %c7_i32_5 = arith.constant 7 : i32
    %6 = arith.truncf %5 : vector<128x128xf32> to vector<128x128xbf16>
    %c0_6 = arith.constant 0 : index
    %c0_7 = arith.constant 0 : index
    %7 = vector.load %arg9[%c0_6, %c0_7] : memref<128x128xbf16, #tpu.memory_space<vmem>>, vector<128x128xbf16>
    %cst = arith.constant dense<0.000000e+00> : vector<128x128xf32>
    %8 = tpu.matmul %6, %7, %cst {dimension_numbers = #tpu.dot_dimension_numbers<[1], [0], [0], [1], [0, 0, 1, 1], [], []>} : vector<128x128xbf16>, vector<128x128xbf16>, vector<128x128xf32> -> vector<128x128xf32>
    %c0_8 = arith.constant 0 : index
    %c0_9 = arith.constant 0 : index
    %9 = vector.load %arg10[%c0_8, %c0_9] : memref<1x128xf32, #tpu.memory_space<vmem>>, vector<1x128xf32>
    %10 = vector.broadcast %9 : vector<1x128xf32> to vector<128x128xf32>
    %11 = arith.addf %8, %10 : vector<128x128xf32>
    %c0_10 = arith.constant 0 : index
    %c0_11 = arith.constant 0 : index
    %c0_12 = arith.constant 0 : index
    %12 = vector.load %arg11[%c0_10, %c0_11, %c0_12] : memref<1x128x128xf32, #tpu.memory_space<vmem>>, vector<1x128x128xf32>
    %13 = vector.shape_cast %12 : vector<1x128x128xf32> to vector<128x128xf32>
    %14 = vector.shape_cast %11 : vector<128x128xf32> to vector<1x128x128xf32>
    tpu.vector_store %arg11[%c0_10, %c0_11, %c0_12], %14 {strides = array<i32>} : memref<1x128x128xf32, #tpu.memory_space<vmem>>, vector<1x128x128xf32>,
    return
  }
  func.func @transform_0(%arg0: i32) -> (i32, i32, i32) {
    %c0_i32 = arith.constant 0 : i32
    %c0_i32_0 = arith.constant 0 : i32
    %c0_i32_1 = arith.constant 0 : i32
    return %arg0, %c0_i32, %c0_i32_0 : i32, i32, i32
  }
  func.func @transform_1(%arg0: i32) -> (i32, i32, i32) {
    %c0_i32 = arith.constant 0 : i32
    %c0_i32_0 = arith.constant 0 : i32
    %c0_i32_1 = arith.constant 0 : i32
    return %arg0, %c0_i32, %c0_i32_0 : i32, i32, i32
  }
  func.func @transform_2(%arg0: i32) -> (i32, i32, i32) {
    %c0_i32 = arith.constant 0 : i32
    %c0_i32_0 = arith.constant 0 : i32
    %c0_i32_1 = arith.constant 0 : i32
    %c0_i32_2 = arith.constant 0 : i32
    return %c0_i32, %c0_i32_0, %c0_i32_1 : i32, i32, i32
  }
  func.func @transform_3(%arg0: i32) -> (i32, i32, i32) {
    %c0_i32 = arith.constant 0 : i32
    %c0_i32_0 = arith.constant 0 : i32
    %c0_i32_1 = arith.constant 0 : i32
    %c0_i32_2 = arith.constant 0 : i32
    return %c0_i32, %c0_i32_0, %c0_i32_1 : i32, i32, i32
  }
  func.func @transform_4(%arg0: i32) -> (i32, i32, i32) {
    %c0_i32 = arith.constant 0 : i32
    %c0_i32_0 = arith.constant 0 : i32
    %c0_i32_1 = arith.constant 0 : i32
    %c0_i32_2 = arith.constant 0 : i32
    return %c0_i32, %c0_i32_0, %c0_i32_1 : i32, i32, i32
  }
  func.func @transform_5(%arg0: i32) -> (i32, i32, i32) {
    %c0_i32 = arith.constant 0 : i32
    %c0_i32_0 = arith.constant 0 : i32
    %c0_i32_1 = arith.constant 0 : i32
    %c0_i32_2 = arith.constant 0 : i32
    return %c0_i32, %c0_i32_0, %c0_i32_1 : i32, i32, i32
  }
  func.func @transform_6(%arg0: i32) -> (i32, i32, i32) {
    %c0_i32 = arith.constant 0 : i32
    %c0_i32_0 = arith.constant 0 : i32
    %c0_i32_1 = arith.constant 0 : i32
    %c0_i32_2 = arith.constant 0 : i32
    return %c0_i32, %c0_i32_0, %c0_i32_1 : i32, i32, i32
  }
  func.func @transform_7(%arg0: i32) -> (i32, i32, i32) {
    %c0_i32 = arith.constant 0 : i32
    %c0_i32_0 = arith.constant 0 : i32
    %c0_i32_1 = arith.constant 0 : i32
    %c0_i32_2 = arith.constant 0 : i32
    return %c0_i32, %c0_i32_0, %c0_i32_1 : i32, i32, i32
  }
  func.func @transform_8(%arg0: i32) -> (i32, i32) {
    %c0_i32 = arith.constant 0 : i32
    %c0_i32_0 = arith.constant 0 : i32
    %c0_i32_1 = arith.constant 0 : i32
    return %c0_i32, %c0_i32_0 : i32, i32
  }
  func.func @transform_9(%arg0: i32) -> (i32, i32) {
    %c0_i32 = arith.constant 0 : i32
    %c0_i32_0 = arith.constant 0 : i32
    %c0_i32_1 = arith.constant 0 : i32
    return %c0_i32, %c0_i32_0 : i32, i32
  }
  func.func @transform_10(%arg0: i32) -> (i32, i32, i32) {
    %c0_i32 = arith.constant 0 : i32
    %c0_i32_0 = arith.constant 0 : i32
    %c0_i32_1 = arith.constant 0 : i32
    return %arg0, %c0_i32, %c0_i32_0 : i32, i32, i32
  }
}

</mosaic_0001>

<bundles_post_ra>
// kernel: tpu_custom_call.1
= control target key start
LH: loop header
LB: loop body
LE: loop exit
PB: predicated region body
PF: predicated region fallthrough
CT: control target
= control target key end

     0   :  { %s4183_s0 = inlined_call_operand.hbm [shape: bf16[2,128,128], index: 0, kind: input, shape index: {}]   ;;  %s4184_s1 = inlined_call_operand.hbm [shape: f32[2,128,128], index: 1, kind: input, shape index: {}]   ;;  %s4185_s2 = inlined_call_operand.hbm [shape: bf16[7,128,128], index: 2, kind: input, shape index: {}]   ;;  %s4186_s3 = inlined_call_operand.hbm [shape: f32[7,1,128], index: 3, kind: input, shape index: {}]   ;;  %s4187_s4 = inlined_call_operand.hbm [shape: bf16[7,128,128], index: 4, kind: input, shape index: {}]   ;;  %s4188_s5 = inlined_call_operand.hbm [shape: f32[7,1,128], index: 5, kind: input, shape index: {}]   ;;  %s4189_s6 = inlined_call_operand.hbm [shape: bf16[7,128,128], index: 6, kind: input, shape index: {}]   ;;  %s4190_s7 = inlined_call_operand.hbm [shape: f32[7,1,128], index: 7, kind: input, shape index: {}]   ;;  %s4191_s8 = inlined_call_operand.hbm [shape: bf16[128,128], index: 8, kind: input, shape index: {}]   ;;  %s4192_s9 = inlined_call_operand.vmem [shape: f32[1,128], index: 9, kind: input, shape index: {}]   ;;  %s4193_s10 = inlined_call_operand.hbm [shape: f32[2,128,128], index: 10, kind: output, shape index: {}]  }
   0x1   :  { %4198 = sst [smem:[#allocation26_spill]] %s4185_s2 }
   0x2   :  { %4199 = sst [smem:[#allocation27_spill]] %s4186_s3 }
   0x3   :  { %4200 = sst [smem:[#allocation28_spill]] %s4187_s4 }
   0x4   :  { %4201 = sst [smem:[#allocation29_spill]] %s4188_s5 }
   0x5   :  { %4202 = sst [smem:[#allocation30_spill]] %s4189_s6 }
   0x6   :  { %4203 = sst [smem:[#allocation31_spill]] %s4190_s7 }
   0x7   :  { %4204 = sst [smem:[#allocation32_spill]] %s4191_s8 }
   0x8   :  { %4205 = sst [smem:[#allocation33_spill]] %s4193_s10 }
   0x9   :  { %15 = vsyncpa [#allocation3], 0 }
   0xa   :  { %17 = vsyncpa [#allocation3 + $0x1], 0 }
   0xb   :  { %18 = vsyncpa [#allocation6], 0 }
   0xc   :  { %20 = vsyncpa [#allocation6 + $0x1], 0 }
   0xd   :  { %21 = vsyncpa [#allocation9], 0 }
   0xe   :  { %22 = vsyncpa [#allocation12], 0 }
   0xf   :  { %23 = vsyncpa [#allocation15], 0 }
  0x10   :  { %24 = vsyncpa [#allocation4], 0 }
  0x11   :  { %26 = vsyncpa [#allocation4 + $0x1], 0  ;;  %s3407_s13 = smov 0   ;;  %s3409_s14 = smov 0  }
  0x12   :  { %s3411_s15 = smov 0   ;;  %s3413_s16 = smov 0  }
  0x13 LB: > { %s4206_s2 = sld [smem:[#allocation26_spill]]  ;;  %s3431_s20 = sadd.s32 4294967295, %s3266_s16   ;;  %s3266_s16 = sphi %s3413_s16, %s4277_s16   ;;  %s3262_s15 = sphi %s3411_s15, %s4276_s15   ;;  %s3258_s14 = sphi %s3409_s14, %s4275_s14   ;;  %s3254_s13 = sphi %s3407_s13, %s4274_s13  }
  0x14   : > { %p2163_p0 = scmp.ge.s32.totalorder %s3266_s16, 1  ;;  %p53_p1 = scmp.eq.s32.totalorder %s3431_s20, 0 }
  0x15   : > { %p283_p2 = scmp.lt.s32.totalorder %s3266_s16, 3  ;;  %s3336_s22 = smov [#allocation7]  }
  0x16   : > { %s296_s23 = sshll.u32 %s3336_s22, 4  ;;  %s4208_s3 = sld [smem:[#allocation27_spill]]  ;;  %s297_s23 = int_to_ptr.vmem [resolvable:$true] %s296_s23 }
  0x17   : > { %p3436_p3 = pnand %p2163_p0, %p283_p2  ;;  %s3337_s28 = smov [#allocation8]  }
  0x18   : > { %s310_s29 = sshll.u32 %s3337_s28, 4  ;;  %s4195_s30 = smov 64   ;;  %s311_s29 = int_to_ptr.vmem [resolvable:$true] %s310_s29 }
  0x19   : > { %s294_s19 = sshll.u32 %s4206_s2, 4  ;;  %p2477_p4 = pneg %p3436_p3  ;;  %s295_s19 = int_to_ptr.hbm [resolvable:$true] %s294_s19 }
  0x1a   : > { %s4197_s11 = smov 4   ;;  %s3340_s12 = smov 16  }
  0x1b   : > { %p3448_p6 = pnand %p2477_p4, %p53_p1  ;;  %s3341_s17 = smov 1  }
  0x1c   : > { %s308_s26 = sshll.u32 %s4208_s3, 4  ;;  %s4210_s5 = sld [smem:[#allocation29_spill]]  ;;  %s309_s26 = int_to_ptr.hbm [resolvable:$true] %s308_s26 }
  0x1d   : > { %2480 = dma.hbm_to_vmem [thread:$0]  (!%p3448_p6), %s295_s19, 7168, %s297_s23, [#allocation6], %s4195_s30, %s4195_s30, %s4197_s11  }
  0x1e   : > { %2483 = dma.hbm_to_vmem [thread:$0]  (!%p3448_p6), %s309_s26, 112, %s311_s29, [#allocation9], %s3340_s12, %s3340_s12, %s3341_s17  }
  0x1f   : > { %s3342_s25 = smov [#allocation11]   ;;  %s4211_s7 = sld [smem:[#allocation31_spill]] }
  0x20   : > { %s338_s28 = sshll.u32 %s3342_s25, 4  ;;  %s3343_s19 = smov [#allocation14]   ;;  %s339_s28 = int_to_ptr.vmem [resolvable:$true] %s338_s28 }
  0x21   : > { %s366_s23 = sshll.u32 %s3343_s19, 4  ;;  %s4212_s4 = sld [smem:[#allocation28_spill]]  ;;  %s367_s23 = int_to_ptr.vmem [resolvable:$true] %s366_s23 }
  0x22   : > { %s336_s24 = sshll.u32 %s4210_s5, 4  ;;  %s4213_s6 = sld [smem:[#allocation30_spill]]  ;;  %s337_s24 = int_to_ptr.hbm [resolvable:$true] %s336_s24 }
  0x23   : > { %2489 = dma.hbm_to_vmem [thread:$0]  (!%p3448_p6), %s337_s24, 112, %s339_s28, [#allocation12], %s3340_s12, %s3340_s12, %s3341_s17  }
  0x24   : > { %s3344_s3 = smov [#allocation10]   ;;  %s4214_s30 = smov 64  }
  0x25   : > { %s364_s10 = sshll.u32 %s4211_s7, 4  ;;  %s324_s24 = sshll.u32 %s3344_s3, 4  ;;  %s365_s10 = int_to_ptr.hbm [resolvable:$true] %s364_s10  ;;  %s325_s24 = int_to_ptr.vmem [resolvable:$true] %s324_s24 }
  0x26   : > { %2495 = dma.hbm_to_vmem [thread:$0]  (!%p3448_p6), %s365_s10, 112, %s367_s23, [#allocation15], %s3340_s12, %s3340_s12, %s3341_s17  }
  0x27   : > { %s322_s29 = sshll.u32 %s4212_s4, 4  ;;  %s3345_s10 = smov [#allocation13]   ;;  %s323_s29 = int_to_ptr.hbm [resolvable:$true] %s322_s29 }
  0x28   : > { %s350_s2 = sshll.u32 %s4213_s6, 4  ;;  %s352_s12 = sshll.u32 %s3345_s10, 4  ;;  %s351_s2 = int_to_ptr.hbm [resolvable:$true] %s350_s2  ;;  %s353_s12 = int_to_ptr.vmem [resolvable:$true] %s352_s12 }
  0x29   : > { %2486 = dma.hbm_to_vmem [thread:$0]  (!%p3448_p6), %s323_s29, 7168, %s325_s24, [#allocation9], %s4214_s30, %s4214_s30, %s4197_s11  }
  0x2a   : > { %s4215_s8 = sld [smem:[#allocation32_spill]]  ;;  %s3346_s19 = smov [#allocation16]  }
  0x2b   : > { %2492 = dma.hbm_to_vmem [thread:$0]  (!%p3448_p6), %s351_s2, 7168, %s353_s12, [#allocation12], %s4214_s30, %s4214_s30, %s4197_s11  }
  0x2c   : > { %s380_s23 = sshll.u32 %s3346_s19, 4  ;;  %s2162_s26 = sadd.s32 4294967294, %s3266_s16   ;;  %s381_s23 = int_to_ptr.vmem [resolvable:$true] %s380_s23 }
  0x2d   : > { %s3495_s29 = sadd.s32 1, %s3266_s16   ;;  %s39_s18 = sadd.s32 1, %s3262_s15 }
  0x2e   : > { %s36_s22 = ssub.s32 %s3266_s16, %s3495_s29  ;;  %p46_p7 = scmp.ne.s32.totalorder %s3262_s15, %s3258_s14 }
  0x2f   : > { %p37_p8 = scmp.eq.s32.totalorder %s36_s22, 0  ;;  %p47_p9 = scmp.eq.s32.totalorder %s3266_s16, 0 }
  0x30   : > { %s378_s28 = sshll.u32 %s4215_s8, 4  ;;  %p52_p10 = scmp.ne.s32.totalorder %s3258_s14, %s3254_s13  ;;  %s379_s28 = int_to_ptr.hbm [resolvable:$true] %s378_s28 }
  0x31   : > { %2498 = dma.hbm_to_vmem [thread:$0]  (!%p3448_p6), %s379_s28, 1024, %s381_s23, [#allocation15], %s4214_s30, %s4214_s30, %s4197_s11  }
  0x32   : > { %p270_p11 = scmp.eq.s32.totalorder %s3431_s20, 1  ;;  %p3509_p12 = por %p47_p9, %p46_p7 }
  0x33   : > { %s3507_s2 = scalar_select %p37_p8, %s3262_s15, %s39_s18  }
  0x34   : > { %p3515_p13 = por %p53_p1, %p52_p10  ;;  %p3519_p0 = por %p270_p11, %p46_p7 }
  0x35   : > { %4216 = sst [smem:[#allocation25_spill]] %s3507_s2  ;;  %p276_p2 = scmp.eq.s32.totalorder %s2162_s26, 1 }
  0x36   : > { %p2517_p4 = scmp.lt.s32.totalorder %s3266_s16, 2  ;;  %s3525_s10 = sand.u32 1, %s3262_s15  }
  0x37   : > { %p3527_p6 = por %p276_p2, %p52_p10  ;;  %s2172_s17 = sshll.u32 %s3525_s10, 6 }
  0x38   : > { %s2326_s25 = sshll.u32 %s3266_s16, 6  ;;  %s401_s22 = scalar_lea.vmem [#allocation2], %s2172_s17 }
  0x39   : > { %s406_s23 = scalar_lea.hbm %s4183_s0, %s2326_s25  ;;  %s409_s11 = sshll.u32 %s401_s22, 4  ;;  %s410_s11 = int_to_ptr.vmem [resolvable:$true] %s409_s11 }
  0x3a   : > { %s407_s18 = sshll.u32 %s406_s23, 4  ;;  %p3538_p7 = pnand %p2517_p4, %p3509_p12  ;;  %s408_s18 = int_to_ptr.hbm [resolvable:$true] %s407_s18 }
  0x3b   : > { %s419_s4 = sand.u32 1, %s3266_s16   ;;  %s2175_s5 = sshll.u32 %s3525_s10, 7 }
  0x3c   : > { %s398_s6 = scalar_lea.sflag [#allocation3], %s3525_s10  ;;  %s3052_s7 = sshra.s32 %s408_s18, 4  ;;  %s3053_s7 = int_to_ptr.hbm [resolvable:$true] %s3052_s7 }
  0x3d   : > { %s3054_s8 = scalar_lea.hbm %s3053_s7, 64  ;;  %p3056_p9 = pneg %p3538_p7 }
  0x3e   : > { %p3055_p8 = scmp.ne.s32.totalorder %s3053_s7, %s3054_s8  ;;  %s3059_s25 = scalar_lea.hbm %s4183_s0, 128 }
  0x3f   : > { %p3060_p12 = scmp.lt.s32.totalorder %s3053_s7, %s4183_s0  ;;  %p3061_p2 = scmp.lt.s32.totalorder %s3059_s25, %s3054_s8 }
  0x40   : > { %p3057_p10 = pnand %p3056_p9, %p3055_p8 }
  0x41   : > { %p3062_p4 = por %p3061_p2, %p3060_p12 }
  0x42   : > { %p3058_p11 = pneg %p3057_p10 }
  0x44   : > { %p3063_p5 = pnand %p3062_p4, %p3058_p11 }
  0x46   : > { %3066 = shalt.err (!%p3063_p5)
}
  0x47   : > { %s4222_s10 = smov 4   ;;  %s2327_s23 = sshll.u32 %s3266_s16, 7 }
  0x48   : > { %2502 = dma.hbm_to_vmem [thread:$0]  (!%p3538_p7), %s408_s18, 1024, %s410_s11, %s398_s6, %s4214_s30, %s4214_s30, %s4222_s10  }
  0x49   : > { %s423_s22 = scalar_lea.vmem [#allocation5], %s2175_s5  ;;  %s428_s28 = scalar_lea.hbm %s4184_s1, %s2327_s23 }
  0x4a   : > { %s431_s27 = sshll.u32 %s423_s22, 4  ;;  %s429_s7 = sshll.u32 %s428_s28, 4  ;;  %s432_s27 = int_to_ptr.vmem [resolvable:$true] %s431_s27  ;;  %s430_s7 = int_to_ptr.hbm [resolvable:$true] %s429_s7 }
  0x4b   : > { %s420_s8 = scalar_lea.sflag [#allocation6], %s419_s4  ;;  %s3082_s25 = sshra.s32 %s430_s7, 4  ;;  %s3083_s25 = int_to_ptr.hbm [resolvable:$true] %s3082_s25 }
  0x4c   : > { %s3084_s19 = scalar_lea.hbm %s3083_s25, 128  ;;  %s3089_s5 = scalar_lea.hbm %s4184_s1, 256 }
  0x4d   : > { %p3085_p5 = scmp.ne.s32.totalorder %s3083_s25, %s3084_s19  ;;  %p3090_p11 = scmp.lt.s32.totalorder %s3083_s25, %s4184_s1 }
  0x4e   : > { %p3091_p12 = scmp.lt.s32.totalorder %s3089_s5, %s3084_s19 }
  0x4f   : > { %p3087_p8 = pnand %p3085_p5, %p3056_p9 }
  0x50   : > { %p3092_p2 = por %p3091_p12, %p3090_p11 }
  0x51   : > { %p3088_p10 = pneg %p3087_p8 }
  0x53   : > { %p3093_p4 = pnand %p3092_p2, %p3088_p10 }
  0x55   : > { %3096 = shalt.err (!%p3093_p4)
}
  0x56   : > { %s3347_s4 = smov 128   ;;  %s3348_s2 = smov 8  }
  0x57   : > { %2505 = dma.hbm_to_vmem [thread:$0]  (!%p3538_p7), %s430_s7, 2048, %s432_s27, %s420_s8, %s3347_s4, %s3347_s4, %s3348_s2  }
  0x58   : > { %443 = sbr.rel (%p3436_p3) target bundleno = 1200 (0x4b0), region = 60  ;;  %s3579_s10 = sand.u32 (!%p3436_p3), 1, %s3258_s14  }
  0x59   : > { %s2179_s23 = sshll.u32 (!%p3436_p3), %s3579_s10, 6  ;;  %s446_s22 = scalar_lea.sflag (!%p3436_p3), [#allocation3], %s3579_s10 }
  0x5a   : > { %s3583_s17 = scalar_lea.vmem (!%p3436_p3), [#allocation2], %s2179_s23 }
  0x5d   : > { %3225 = dma.done.wait (%p3515_p13), %s446_s22, 1024  }
  0x5e   : > { %3227 = vsyncadd (%p3515_p13), %s446_s22, 4294966272  ;;  %s455_s21 = sand.u32 1, %s3431_s20   ;;  %s2180_s26 = sshll.u32 %s3579_s10, 7 }
  0x5f   : > { %s456_s27 = scalar_lea.sflag [#allocation6], %s455_s21  ;;  %s3593_s28 = scalar_lea.vmem [#allocation5], %s2180_s26 }
  0x60   : > { %3229 = dma.done.wait (%p3515_p13), %s456_s27, 2048  }
  0x61   : > { %3231 = vsyncadd (%p3515_p13), %s456_s27, 4294965248 }
  0x62   : > { %3233 = dma.done.wait (%p53_p1), [#allocation6], 7168  }
  0x63   : > { %3235 = vsyncadd (%p53_p1), [#allocation6], 4294960128 }
  0x64   : > { %3237 = dma.done.wait (%p53_p1), [#allocation9], 7280  }
  0x65   : > { %3239 = vsyncadd (%p53_p1), [#allocation9], 4294960016 }
  0x66   : > { %3241 = dma.done.wait (%p53_p1), [#allocation12], 7280  }
  0x67   : > { %3243 = vsyncadd (%p53_p1), [#allocation12], 4294960016 }
  0x68   : > { %3245 = dma.done.wait (%p53_p1), [#allocation15], 1136  }
  0x69   : > { %3247 = vsyncadd (%p53_p1), [#allocation15], 4294966160  ;;  %v3616_v0 = vld [vmem:[%s3583_s17] sm:$0xff]   ;;  %v3619_v1 = vld [vmem:[%s3583_s17 + $0x8] sm:$0xff]   ;;  %s3673_s3 = scalar_lea.vmem [#allocation17], %s2180_s26  ;;  %s3707_s7 = smov 0  }
  0x6a   : > { %v3622_v2 = vld [vmem:[%s3583_s17 + $0x10] sm:$0xff]   ;;  %v3629_v7 = vld [vmem:[%s3583_s17 + $0x18] sm:$0xff]   ;;  %v3632_v8 = vld [vmem:[%s3583_s17 + $0x20] sm:$0xff]  }
  0x6b   : > { %v3635_v9 = vld [vmem:[%s3583_s17 + $0x28] sm:$0xff]   ;;  %v2375_v11 = vunpack.c.h.bf16 %v3622_v2  ;;  %v2378_v12 = vunpack.c.l.bf16 %v3629_v7  ;;  %v2379_v13 = vunpack.c.h.bf16 %v3629_v7  ;;  %v3642_v14 = vld [vmem:[%s3583_s17 + $0x30] sm:$0xff]   ;;  %v3645_v15 = vld [vmem:[%s3583_s17 + $0x38] sm:$0xff]   ;;  %v2382_v17 = vunpack.c.l.bf16 %v3632_v8 }
  0x6c   : > { %v554_v16 = vld [vmem:[%s3593_s28] sm:$0xff]   ;;  %v2383_v18 = vunpack.c.h.bf16 %v3632_v8  ;;  %v2386_v19 = vunpack.c.l.bf16 %v3635_v9  ;;  %v2387_v20 = vunpack.c.h.bf16 %v3635_v9  ;;  %v555_v21 = vld [vmem:[%s3593_s28 + $0x8] sm:$0xff]   ;;  %v556_v22 = vld [vmem:[%s3593_s28 + $0x10] sm:$0xff]   ;;  %v2390_v24 = vunpack.c.l.bf16 %v3642_v14 }
  0x6d   : > { %v557_v23 = vld [vmem:[%s3593_s28 + $0x18] sm:$0xff]   ;;  %v2391_v25 = vunpack.c.h.bf16 %v3642_v14  ;;  %v2394_v26 = vunpack.c.l.bf16 %v3645_v15  ;;  %v2395_v27 = vunpack.c.h.bf16 %v3645_v15  ;;  %v558_v28 = vld [vmem:[%s3593_s28 + $0x20] sm:$0xff]   ;;  %v559_v29 = vld [vmem:[%s3593_s28 + $0x28] sm:$0xff]  }
  0x6e   : > { %v560_v30 = vld [vmem:[%s3593_s28 + $0x30] sm:$0xff]   ;;  %v561_v31 = vld [vmem:[%s3593_s28 + $0x38] sm:$0xff]   ;;  %v562_v32 = vld [vmem:[%s3593_s28 + $0x40] sm:$0xff]  }
  0x6f   : > { %v563_v33 = vld [vmem:[%s3593_s28 + $0x48] sm:$0xff]   ;;  %v564_v34 = vld [vmem:[%s3593_s28 + $0x50] sm:$0xff]   ;;  %v565_v35 = vld [vmem:[%s3593_s28 + $0x58] sm:$0xff]  }
  0x70   : > { %v566_v36 = vld [vmem:[%s3593_s28 + $0x60] sm:$0xff]   ;;  %v567_v37 = vld [vmem:[%s3593_s28 + $0x68] sm:$0xff]   ;;  %v568_v38 = vld [vmem:[%s3593_s28 + $0x70] sm:$0xff]  }
  0x71   : > { %v569_v39 = vld [vmem:[%s3593_s28 + $0x78] sm:$0xff]  }
  0x72 LB: >> { %s3761_s8 = sshll.u32 %s3334_s7, 6  ;;  %s619_s25 = scalar_lea.vmem [#allocation8], %s3334_s7  ;;  %v592_v48 = vpack.c.bf16 %v3326_v21, %v3330_v16  ;;  %v595_v49 = vpack.c.bf16 %v3302_v31, %v3306_v30  ;;  %v597_v50 = vpack.c.bf16 %v3286_v35, %v3290_v34  ;;  %v599_v51 = vpack.c.bf16 %v3270_v39, %v3274_v38  ;;  %s3334_s7 = sphi %s3707_s7, %s575_s7   ;;  %v3330_v16 = vphi %v554_v16, %v4270_v16   ;;  %v3326_v21 = vphi %v555_v21, %v4269_v21   ;;  %v3322_v22 = vphi %v556_v22, %v4268_v22   ;;  %v3318_v23 = vphi %v557_v23, %v4267_v23   ;;  %v3314_v28 = vphi %v558_v28, %v4266_v28   ;;  %v3310_v29 = vphi %v559_v29, %v4265_v29   ;;  %v3306_v30 = vphi %v560_v30, %v4264_v30   ;;  %v3302_v31 = vphi %v561_v31, %v4263_v31   ;;  %v3298_v32 = vphi %v562_v32, %v4262_v32   ;;  %v3294_v33 = vphi %v563_v33, %v4261_v33   ;;  %v3290_v34 = vphi %v564_v34, %v4260_v34   ;;  %v3286_v35 = vphi %v565_v35, %v4259_v35   ;;  %v3282_v36 = vphi %v566_v36, %v4258_v36   ;;  %v3278_v37 = vphi %v567_v37, %v4257_v37   ;;  %v3274_v38 = vphi %v568_v38, %v4256_v38   ;;  %v3270_v39 = vphi %v569_v39, %v4255_v39  }
  0x73   : >> { %s602_s19 = scalar_lea.vmem [#allocation7], %s3761_s8  ;;  %s1503_s6 = scalar_lea.vmem [#allocation11], %s3334_s7  ;;  %v598_v52 = vpack.c.bf16 %v3278_v37, %v3282_v36  ;;  %v593_v53 = vpack.c.bf16 %v3318_v23, %v3322_v22  ;;  %v596_v54 = vpack.c.bf16 %v3294_v33, %v3298_v32  ;;  %v594_v55 = vpack.c.bf16 %v3310_v29, %v3314_v28  ;;  %v2710_v57 = vld [vmem:[%s619_s25] ss:$0 sm:$0xff] }
  0x74   : >> { %v2336_v40 = vld [vmem:[%s602_s19 + $0x38] sm:$0xff]  ;;  %s1647_s11 = scalar_lea.vmem [#allocation14], %s3334_s7  ;;  %v2335_v41 = vld [vmem:[%s602_s19 + $0x30] sm:$0xff]  ;;  %v2334_v42 = vld [vmem:[%s602_s19 + $0x28] sm:$0xff]  ;;  %729 = vmatpush.bf16.xpose.msra.mxu1 %v599_v51  ;;  %v4223_v3 = vunpack.c.l.bf16 %v3616_v0  ;;  %v4224_v4 = vunpack.c.h.bf16 %v3616_v0  ;;  %v4225_v5 = vunpack.c.l.bf16 %v3619_v1  ;;  %v4226_v6 = vunpack.c.h.bf16 %v3619_v1  ;;  %s3832_s5 = scalar_lea.vmem [#allocation10], %s3761_s8 }
  0x75   : >> { %672 = vmatpush.bf16.msra.mxu0 %v2336_v40  ;;  %2403 = vmatpush.bf16.msra.mxu2 %v2336_v40  ;;  %v2333_v43 = vld [vmem:[%s602_s19 + $0x20] sm:$0xff]  ;;  %v2332_v44 = vld [vmem:[%s602_s19 + $0x18] sm:$0xff]  ;;  %v2331_v45 = vld [vmem:[%s602_s19 + $0x10] sm:$0xff]  ;;  %v4227_v10 = vunpack.c.l.bf16 %v3622_v2  ;;  %s3954_s30 = scalar_lea.vmem [#allocation13], %s3761_s8  ;;  %s575_s7 = sadd.s32 1, %s3334_s7  }
  0x76   : >> { %2404 = vmatpush.bf16.msra.mxu3 %v2336_v40  ;;  %v2330_v46 = vld [vmem:[%s602_s19 + $0x8] sm:$0xff]  ;;  %v2329_v47 = vld [vmem:[%s602_s19] sm:$0xff]  ;;  %p4058_p1 = scmp.ge.s32.totalorder %s575_s7, 7  }
  0x77   : > { %v2357_v0 = vld [vmem:[#allocation16 + $0x10] sm:$0xff] (%p4058_p1)  ;;  %v2356_v1 = vld [vmem:[#allocation16 + $0x8] sm:$0xff] (%p4058_p1)  ;;  %v2355_v2 = vld [vmem:[#allocation16] sm:$0xff] (%p4058_p1)  ;;  %s2363_s23 = sshll.u32 (%p4058_p1), %s3431_s20, 7  ;;  %s4271_s21 = sld [smem:[#allocation33_spill]] (%p4058_p1) }
  0x78   : > { %s1935_s27 = sshll.u32 (%p4058_p1), %s3673_s3, 4  ;;  %s1923_s28 = scalar_lea.sflag (%p4058_p1), [#allocation4], %s3579_s10  ;;  %s1936_s27 = int_to_ptr.vmem [resolvable:$true] %s1935_s27 }
  0x79   : >> { %673 = vmatpush.bf16.msra.mxu0 %v2335_v41  ;;  %2405 = vmatpush.bf16.msra.mxu2 %v2335_v41 }
  0x7a   : >> { %2406 = vmatpush.bf16.msra.mxu3 %v2335_v41 }
  0x7c   : >> { %730 = vmatpush.bf16.xpose.msra.mxu1 %v598_v52 }
  0x7d   : >> { %674 = vmatpush.bf16.msra.mxu0 %v2334_v42  ;;  %2407 = vmatpush.bf16.msra.mxu2 %v2334_v42  ;;  %s1934_s26 = scalar_lea.hbm (%p4058_p1), %s4271_s21, %s2363_s23 }
  0x7e   : >> { %2408 = vmatpush.bf16.msra.mxu3 %v2334_v42  ;;  %s1937_s20 = sshll.u32 (%p4058_p1), %s1934_s26, 4  ;;  %s1938_s20 = int_to_ptr.hbm [resolvable:$true] %s1937_s20 }
  0x7f   : > { %s3126_s7 = sshra.s32 (%p4058_p1), %s1938_s20, 4  ;;  %s3127_s7 = int_to_ptr.hbm [resolvable:$true] %s3126_s7 }
  0x80   : > { %s3128_s8 = scalar_lea.hbm (%p4058_p1), %s3127_s7, 128  ;;  %p3133_p9 = scmp.lt.s32.totalorder (%p4058_p1), %s3127_s7, %s4271_s21 }
  0x81   : >> { %675 = vmatpush.bf16.msra.mxu0 %v2333_v43  ;;  %2409 = vmatpush.bf16.msra.mxu2 %v2333_v43  ;;  %p3129_p3 = scmp.ne.s32.totalorder (%p4058_p1), %s3127_s7, %s3128_s8 }
  0x82   : >> { %2410 = vmatpush.bf16.msra.mxu3 %v2333_v43 }
  0x83   : > { %p3130_p13 = pnand (%p4058_p1), %p3129_p3, %p3519_p0 }
  0x84   : >> { %731 = vmatpush.bf16.xpose.msra.mxu1 %v597_v50 }
  0x85   : >> { %676 = vmatpush.bf16.msra.mxu0 %v2332_v44  ;;  %2411 = vmatpush.bf16.msra.mxu2 %v2332_v44  ;;  %p3131_p7 = pneg (%p4058_p1), %p3130_p13 }
  0x86   : >> { %2412 = vmatpush.bf16.msra.mxu3 %v2332_v44 }
  0x89   : >> { %677 = vmatpush.bf16.msra.mxu0 %v2331_v45  ;;  %2413 = vmatpush.bf16.msra.mxu2 %v2331_v45 }
  0x8a   : >> { %2414 = vmatpush.bf16.msra.mxu3 %v2331_v45 }
  0x8c   : >> { %732 = vmatpush.bf16.xpose.msra.mxu1 %v596_v54 }
  0x8d   : >> { %678 = vmatpush.bf16.msra.mxu0 %v2330_v46  ;;  %2415 = vmatpush.bf16.msra.mxu2 %v2330_v46 }
  0x8e   : >> { %2416 = vmatpush.bf16.msra.mxu3 %v2330_v46 }
  0x91   : >> { %679 = vmatpush.bf16.msra.mxu0 %v2329_v47  ;;  %2417 = vmatpush.bf16.msra.mxu2 %v2329_v47 }
  0x92   : >> { %2418 = vmatpush.bf16.msra.mxu3 %v2329_v47 }
  0x94   : >> { %680 = vmatmul.bf16.vlgmr.msra.gmra.mxu0 %v592_v48  ;;  %695 = vmatmul.bf16.vlgmr.msra.gmra.mxu2 %v595_v49 }
  0x95   : >> { %705 = vmatmul.bf16.vlgmr.msra.gmra.mxu3 %v597_v50  ;;  %1412 = vmatpush.bf16.msrb.mxu2 %v599_v51 }
  0x96   : >> { %733 = vmatpush.bf16.xpose.msra.mxu1 %v595_v49 }
  0x99   : >> { %1413 = vmatpush.bf16.msrb.mxu2 %v598_v52 }
  0x9d   : >> { %1414 = vmatpush.bf16.msrb.mxu2 %v597_v50 }
  0x9e   : >> { %734 = vmatpush.bf16.xpose.msra.mxu1 %v594_v55 }
  0xa1   : >> { %1415 = vmatpush.bf16.msrb.mxu2 %v596_v54 }
  0xa4   : >> { %685 = vmatmul.bf16.gmra.mxu0 %v593_v53  ;;  %700 = vmatmul.bf16.gmra.mxu2 %v596_v54 }
  0xa5   : >> { %710 = vmatmul.bf16.gmra.mxu3 %v598_v52  ;;  %1416 = vmatpush.bf16.msrb.mxu2 %v595_v49 }
  0xa6   : >> { %735 = vmatpush.bf16.xpose.msra.mxu1 %v593_v53 }
  0xa9   : >> { %1417 = vmatpush.bf16.msrb.mxu2 %v594_v55 }
  0xad   : >> { %1418 = vmatpush.bf16.msrb.mxu2 %v593_v53 }
  0xae   : >> { %736 = vmatpush.bf16.xpose.msra.mxu1 %v592_v48 }
  0xb1   : >> { %1419 = vmatpush.bf16.msrb.mxu2 %v592_v48 }
  0xb4   : >> { %690 = vmatmul.bf16.gmra.mxu0 %v594_v55 }
  0xb5   : >> { %715 = vmatmul.bf16.gmra.mxu3 %v599_v51 }
 0x111   : >> { %v681_v56 = vpop.f32.mrf.mxu0 }
 0x112   : >> { %v682_v59 = vadd.f32 %v2710_v57, %v681_v56 }
 0x117   : >> { %v696_v44 = vpop.f32.mrf.mxu2 }
 0x118   : >> { %v697_v50 = vadd.f32 %v2710_v57, %v696_v44  ;;  %v706_v54 = vpop.f32.mrf.mxu3 }
 0x119   : >> { %v683_v58 = vpop.f32.mrf.mxu0 }
 0x11a   : >> { %v684_v60 = vadd.f32 %v2710_v57, %v683_v58 }
 0x11c   : >> { %v721_v61 = vpack.c.bf16 %v684_v60, %v682_v59 }
 0x11e   : >> { %737 = vmatmul.bf16.vlgmr.msra.gmra.mxu1 %v721_v61 }
 0x11f   : >> { %v698_v49 = vpop.f32.mrf.mxu2 }
 0x120   : >> { %v699_v51 = vadd.f32 %v2710_v57, %v698_v49  ;;  %v708_v60 = vpop.f32.mrf.mxu3 }
 0x121   : >> { %v686_v62 = vpop.f32.mrf.mxu0 }
 0x122   : >> { %v687_v40 = vadd.f32 %v2710_v57, %v686_v62  ;;  %v724_v53 = vpack.c.bf16 %v699_v51, %v697_v50  ;;  %v707_v62 = vadd.f32 %v2710_v57, %v706_v54 }
 0x127   : >> { %v701_v52 = vpop.f32.mrf.mxu2 }
 0x128   : >> { %v702_v56 = vadd.f32 %v2710_v57, %v701_v52  ;;  %v711_v61 = vpop.f32.mrf.mxu3 }
 0x129   : >> { %v688_v63 = vpop.f32.mrf.mxu0 }
 0x12a   : >> { %v689_v41 = vadd.f32 %v2710_v57, %v688_v63  ;;  %v709_v63 = vadd.f32 %v2710_v57, %v708_v60 }
 0x12c   : >> { %v722_v42 = vpack.c.bf16 %v689_v41, %v687_v40  ;;  %v726_v40 = vpack.c.bf16 %v709_v63, %v707_v62 }
 0x12e   : >> { %742 = vmatmul.bf16.gmra.mxu1 %v722_v42  ;;  %v712_v42 = vadd.f32 %v2710_v57, %v711_v61 }
 0x12f   : >> { %v703_v55 = vpop.f32.mrf.mxu2 }
 0x130   : >> { %v704_v58 = vadd.f32 %v2710_v57, %v703_v55  ;;  %v713_v41 = vpop.f32.mrf.mxu3 }
 0x131   : >> { %v691_v43 = vpop.f32.mrf.mxu0 }
 0x132   : >> { %v692_v46 = vadd.f32 %v2710_v57, %v691_v43  ;;  %v725_v59 = vpack.c.bf16 %v704_v58, %v702_v56  ;;  %v714_v43 = vadd.f32 %v2710_v57, %v713_v41 }
 0x138   : >> { %v716_v44 = vpop.f32.mrf.mxu3 }
 0x139   : >> { %v693_v45 = vpop.f32.mrf.mxu0 }
 0x13a   : >> { %v694_v47 = vadd.f32 %v2710_v57, %v693_v45  ;;  %v727_v45 = vpack.c.bf16 %v714_v43, %v712_v42 }
 0x13c   : >> { %v723_v48 = vpack.c.bf16 %v694_v47, %v692_v46  ;;  %v717_v47 = vadd.f32 %v2710_v57, %v716_v44 }
 0x13e   : >> { %747 = vmatmul.bf16.gmra.mxu1 %v723_v48 }
 0x140   : >> { %v718_v46 = vpop.f32.mrf.mxu3 }
 0x141   : >> { %v719_v48 = vadd.f32 %v2710_v57, %v718_v46 }
 0x143   : >> { %v728_v49 = vpack.c.bf16 %v719_v48, %v717_v47 }
 0x14e   : >> { %752 = vmatmul.bf16.gmra.mxu1 %v724_v53 }
 0x15e   : >> { %757 = vmatmul.bf16.gmra.mxu1 %v725_v59 }
 0x16e   : >> { %762 = vmatmul.bf16.gmra.mxu1 %v726_v40 }
 0x17e   : >> { %767 = vmatmul.bf16.gmra.mxu1 %v727_v45 }
 0x18e   : >> { %772 = vmatmul.bf16.gmra.mxu1 %v728_v49 }
 0x19b   : >> { %v738_v50 = vpop.f32.mrf.mxu1 }
 0x19c   : >> { %v778_v51 = vpack.c.bf16 %v738_v50, %v738_v50 }
 0x19e   : >> { %v794_v52 = vxor.u32 2147516416, %v778_v51 }
 0x1a0   : >> { %v810_v53 = vunpack.c.l.bf16 %v794_v52 }
 0x1a2   : >> { %v826_v55 = vmul.f32 1.442695, %v810_v53 }
 0x1a3   : >> { %v740_v54 = vpop.f32.mrf.mxu1 }
 0x1a4   : >> { %2713 = vpow2.f32 %v826_v55  ;;  %v779_v56 = vpack.c.bf16 %v740_v54, %v740_v54 }
 0x1a6   : >> { %v795_v58 = vxor.u32 2147516416, %v779_v56 }
 0x1a8   : >> { %v811_v59 = vunpack.c.l.bf16 %v795_v58 }
 0x1aa   : >> { %v2714_v60 = vpop.eup %2713  ;;  %v828_v61 = vmul.f32 1.442695, %v811_v59 }
 0x1ab   : >> { %v858_v62 = vpack.c.bf16 %v2714_v60, %v2714_v60  ;;  %v743_v63 = vpop.f32.mrf.mxu1  ;;  %v3349_v60 = vmov 1065369472  }
 0x1ac   : >> { %2715 = vpow2.f32 %v828_v61  ;;  %v780_v40 = vpack.c.bf16 %v743_v63, %v743_v63  ;;  %v3785_v61 = vunpack.c.h.bf16 %v3349_v60 }
 0x1ad   : >> { %v874_v41 = vunpack.c.l.bf16 %v858_v62  ;;  %v3787_v62 = vunpack.c.l.bf16 %v3349_v60 }
 0x1ae   : >> { %v796_v57 = vxor.u32 2147516416, %v780_v40 }
 0x1af   : >> { %v890_v42 = vadd.f32 1.0, %v874_v41 }
 0x1b0   : >> { %v812_v43 = vunpack.c.l.bf16 %v796_v57 }
 0x1b1   : >> { %v906_v44 = vpack.c.bf16 %v890_v42, %v890_v42 }
 0x1b2   : >> { %v2716_v45 = vpop.eup %2715  ;;  %v830_v46 = vmul.f32 1.442695, %v812_v43 }
 0x1b3   : >> { %v924_v47 = vunpack.c.h.bf16 %v906_v44  ;;  %v925_v48 = vunpack.c.l.bf16 %v906_v44  ;;  %v859_v49 = vpack.c.bf16 %v2716_v45, %v2716_v45  ;;  %v745_v50 = vpop.f32.mrf.mxu1 }
 0x1b4   : >> { %2717 = vpow2.f32 %v830_v46  ;;  %v781_v51 = vpack.c.bf16 %v745_v50, %v745_v50 }
 0x1b5   : >> { %2719 = vrcp.f32 %v924_v47  ;;  %v875_v52 = vunpack.c.l.bf16 %v859_v49 }
 0x1b6   : >> { %2721 = vrcp.f32 %v925_v48  ;;  %v797_v53 = vxor.u32 2147516416, %v781_v51 }
 0x1b7   : >> { %v891_v55 = vadd.f32 1.0, %v875_v52 }
 0x1b8   : >> { %v813_v54 = vunpack.c.l.bf16 %v797_v53 }
 0x1b9   : >> { %v907_v56 = vpack.c.bf16 %v891_v55, %v891_v55 }
 0x1ba   : >> { %v2718_v58 = vpop.eup %2717  ;;  %v832_v59 = vmul.f32 1.442695, %v813_v54 }
 0x1bb   : >> { %v2720_v63 = vpop.eup %2719  ;;  %v931_v40 = vunpack.c.h.bf16 %v907_v56  ;;  %v932_v41 = vunpack.c.l.bf16 %v907_v56  ;;  %v860_v57 = vpack.c.bf16 %v2718_v58, %v2718_v58  ;;  %v748_v42 = vpop.f32.mrf.mxu1 }
 0x1bc   : >> { %v2722_v43 = vpop.eup %2721  ;;  %2723 = vpow2.f32 %v832_v59  ;;  %v782_v44 = vpack.c.bf16 %v748_v42, %v748_v42  ;;  %v927_v47 = vmul.f32 %v2720_v63, %v3785_v61 }
 0x1bd   : >> { %2725 = vrcp.f32 %v931_v40  ;;  %v876_v45 = vunpack.c.l.bf16 %v860_v57  ;;  %v929_v48 = vmul.f32 %v2722_v43, %v3787_v62 }
 0x1be   : >> { %2727 = vrcp.f32 %v932_v41  ;;  %v798_v46 = vxor.u32 2147516416, %v782_v44 }
 0x1bf   : >> { %v892_v49 = vadd.f32 1.0, %v876_v45  ;;  %v930_v55 = vpack.c.bf16 %v927_v47, %v929_v48 }
 0x1c0   : >> { %v814_v50 = vunpack.c.l.bf16 %v798_v46 }
 0x1c1   : >> { %v908_v51 = vpack.c.bf16 %v892_v49, %v892_v49  ;;  %v1036_v44 = vunpack.c.l.bf16 %v930_v55 }
 0x1c2   : >> { %v2724_v52 = vpop.eup %2723  ;;  %v834_v53 = vmul.f32 1.442695, %v814_v50 }
 0x1c3   : >> { %v2726_v54 = vpop.eup %2725  ;;  %v938_v56 = vunpack.c.h.bf16 %v908_v51  ;;  %v939_v58 = vunpack.c.l.bf16 %v908_v51  ;;  %v861_v60 = vpack.c.bf16 %v2724_v52, %v2724_v52  ;;  %v750_v59 = vpop.f32.mrf.mxu1  ;;  %v1068_v52 = vmul.f32 %v4223_v3, %v1036_v44 }
 0x1c4   : >> { %v2728_v42 = vpop.eup %2727  ;;  %2729 = vpow2.f32 %v834_v53  ;;  %v783_v40 = vpack.c.bf16 %v750_v59, %v750_v59  ;;  %v934_v41 = vmul.f32 %v2726_v54, %v3785_v61 }
 0x1c5   : >> { %2731 = vrcp.f32 %v938_v56  ;;  %v877_v63 = vunpack.c.l.bf16 %v861_v60  ;;  %v936_v57 = vmul.f32 %v2728_v42, %v3787_v62 }
 0x1c6   : >> { %2733 = vrcp.f32 %v939_v58  ;;  %v799_v43 = vxor.u32 2147516416, %v783_v40 }
 0x1c7   : >> { %v893_v45 = vadd.f32 1.0, %v877_v63  ;;  %v937_v46 = vpack.c.bf16 %v934_v41, %v936_v57 }
 0x1c8   : >> { %v815_v47 = vunpack.c.l.bf16 %v799_v43 }
 0x1c9   : >> { %v909_v48 = vpack.c.bf16 %v893_v45, %v893_v45  ;;  %v1037_v49 = vunpack.c.l.bf16 %v937_v46 }
 0x1ca   : >> { %v2730_v50 = vpop.eup %2729  ;;  %v836_v51 = vmul.f32 1.442695, %v815_v47 }
 0x1cb   : >> { %v2732_v53 = vpop.eup %2731  ;;  %v945_v59 = vunpack.c.h.bf16 %v909_v48  ;;  %v946_v54 = vunpack.c.l.bf16 %v909_v48  ;;  %v862_v56 = vpack.c.bf16 %v2730_v50, %v2730_v50  ;;  %v753_v60 = vpop.f32.mrf.mxu1  ;;  %v1069_v58 = vmul.f32 %v4224_v4, %v1037_v49 }
 0x1cc   : >> { %v2734_v42 = vpop.eup %2733  ;;  %2735 = vpow2.f32 %v836_v51  ;;  %v784_v55 = vpack.c.bf16 %v753_v60, %v753_v60  ;;  %v941_v57 = vmul.f32 %v2732_v53, %v3785_v61 }
 0x1cd   : >> { %2737 = vrcp.f32 %v945_v59  ;;  %v878_v40 = vunpack.c.l.bf16 %v862_v56  ;;  %v1084_v41 = vpack.c.bf16 %v1069_v58, %v1068_v52  ;;  %v943_v43 = vmul.f32 %v2734_v42, %v3787_v62 }
 0x1ce   : >> { %2739 = vrcp.f32 %v946_v54  ;;  %v800_v63 = vxor.u32 2147516416, %v784_v55 }
 0x1cf   : >> { %v894_v44 = vadd.f32 1.0, %v878_v40  ;;  %1420 = vmatmul.bf16.vlgmr.msrb.gmra.mxu2 %v1084_v41  ;;  %v1092_v45 = vunpack.c.l.bf16 %v1084_v41  ;;  %v944_v50 = vpack.c.bf16 %v941_v57, %v943_v43 }
 0x1d0   : >> { %v816_v46 = vunpack.c.l.bf16 %v800_v63 }
 0x1d1   : >> { %v910_v47 = vpack.c.bf16 %v894_v44, %v894_v44  ;;  %1108 = vadd.xlane.f32.xlu0 %v1092_v45  ;;  %v1038_v63 = vunpack.c.l.bf16 %v944_v50  ;;  %v1093_v45 = vunpack.c.h.bf16 %v1084_v41 }
 0x1d2   : >> { %v2736_v48 = vpop.eup %2735  ;;  %v838_v49 = vmul.f32 1.442695, %v816_v46 }
 0x1d3   : >> { %v2738_v51 = vpop.eup %2737  ;;  %v952_v60 = vunpack.c.h.bf16 %v910_v47  ;;  %v953_v59 = vunpack.c.l.bf16 %v910_v47  ;;  %v863_v56 = vpack.c.bf16 %v2736_v48, %v2736_v48  ;;  %v755_v52 = vpop.f32.mrf.mxu1 }
 0x1d4   : >> { %v2740_v54 = vpop.eup %2739  ;;  %2741 = vpow2.f32 %v838_v49  ;;  %v785_v58 = vpack.c.bf16 %v755_v52, %v755_v52  ;;  %v948_v53 = vmul.f32 %v2738_v51, %v3785_v61  ;;  %v1070_v49 = vmul.f32 %v4225_v5, %v1038_v63 }
 0x1d5   : >> { %2743 = vrcp.f32 %v952_v60  ;;  %v879_v42 = vunpack.c.l.bf16 %v863_v56  ;;  %v950_v55 = vmul.f32 %v2740_v54, %v3787_v62 }
 0x1d6   : >> { %2745 = vrcp.f32 %v953_v59  ;;  %v801_v40 = vxor.u32 2147516416, %v785_v58 }
 0x1d7   : >> { %v895_v44 = vadd.f32 1.0, %v879_v42  ;;  %v951_v57 = vpack.c.bf16 %v948_v53, %v950_v55 }
 0x1d8   : >> { %v817_v43 = vunpack.c.l.bf16 %v801_v40 }
 0x1d9   : >> { %v911_v46 = vpack.c.bf16 %v895_v44, %v895_v44  ;;  %1110 = vadd.xlane.f32.xlu0 %v1093_v45  ;;  %v1039_v47 = vunpack.c.l.bf16 %v951_v57 }
 0x1da   : >> { %v2742_v48 = vpop.eup %2741  ;;  %v840_v3 = vmul.f32 1.442695, %v817_v43 }
 0x1db   : >> { %v2744_v51 = vpop.eup %2743  ;;  %v959_v60 = vunpack.c.h.bf16 %v911_v46  ;;  %v960_v56 = vunpack.c.l.bf16 %v911_v46  ;;  %v864_v52 = vpack.c.bf16 %v2742_v48, %v2742_v48  ;;  %v758_v54 = vpop.f32.mrf.mxu1  ;;  %v1071_v50 = vmul.f32 %v4226_v6, %v1039_v47 }
 0x1dc   : >> { %v2746_v59 = vpop.eup %2745  ;;  %2747 = vpow2.f32 %v840_v3  ;;  %v786_v41 = vpack.c.bf16 %v758_v54, %v758_v54  ;;  %v955_v55 = vmul.f32 %v2744_v51, %v3785_v61 }
 0x1dd   : >> { %2749 = vrcp.f32 %v959_v60  ;;  %v880_v58 = vunpack.c.l.bf16 %v864_v52  ;;  %v1085_v53 = vpack.c.bf16 %v1071_v50, %v1070_v49  ;;  %v957_v40 = vmul.f32 %v2746_v59, %v3787_v62 }
 0x1de   : >> { %2751 = vrcp.f32 %v960_v56  ;;  %v802_v42 = vxor.u32 2147516416, %v786_v41 }
 0x1df   : >> { %v896_v63 = vadd.f32 1.0, %v880_v58  ;;  %1425 = vmatmul.bf16.gmra.mxu2 %v1085_v53  ;;  %v1094_v44 = vunpack.c.l.bf16 %v1085_v53  ;;  %v958_v47 = vpack.c.bf16 %v955_v55, %v957_v40 }
 0x1e0   : >> { %v818_v45 = vunpack.c.l.bf16 %v802_v42 }
 0x1e1   : >> { %v912_v57 = vpack.c.bf16 %v896_v63, %v896_v63  ;;  %1112 = vadd.xlane.f32.xlu1 %v1094_v44  ;;  %v1040_v58 = vunpack.c.l.bf16 %v958_v47  ;;  %v1095_v63 = vunpack.c.h.bf16 %v1085_v53 }
 0x1e2   : >> { %v2748_v43 = vpop.eup %2747  ;;  %v842_v46 = vmul.f32 1.442695, %v818_v45 }
 0x1e3   : >> { %v2750_v3 = vpop.eup %2749  ;;  %v966_v48 = vunpack.c.h.bf16 %v912_v57  ;;  %v967_v60 = vunpack.c.l.bf16 %v912_v57  ;;  %v865_v52 = vpack.c.bf16 %v2748_v43, %v2748_v43  ;;  %v760_v49 = vpop.f32.mrf.mxu1 }
 0x1e4   : >> { %v2752_v56 = vpop.eup %2751  ;;  %2753 = vpow2.f32 %v842_v46  ;;  %v787_v54 = vpack.c.bf16 %v760_v49, %v760_v49  ;;  %v962_v51 = vmul.f32 %v2750_v3, %v3785_v61  ;;  %v1072_v46 = vmul.f32 %v4227_v10, %v1040_v58 }
 0x1e5   : >> { %2755 = vrcp.f32 %v966_v48  ;;  %v881_v50 = vunpack.c.l.bf16 %v865_v52  ;;  %v964_v59 = vmul.f32 %v2752_v56, %v3787_v62 }
 0x1e6   : >> { %2757 = vrcp.f32 %v967_v60  ;;  %v803_v41 = vxor.u32 2147516416, %v787_v54 }
 0x1e7   : >> { %v897_v42 = vadd.f32 1.0, %v881_v50  ;;  %v965_v55 = vpack.c.bf16 %v962_v51, %v964_v59 }
 0x1e8   : >> { %v819_v40 = vunpack.c.l.bf16 %v803_v41 }
 0x1e9   : >> { %v913_v44 = vpack.c.bf16 %v897_v42, %v897_v42  ;;  %1114 = vadd.xlane.f32.xlu1 %v1095_v63  ;;  %v1041_v45 = vunpack.c.l.bf16 %v965_v55 }
 0x1ea   : >> { %v2754_v57 = vpop.eup %2753  ;;  %v844_v43 = vmul.f32 1.442695, %v819_v40 }
 0x1eb   : >> { %v2756_v3 = vpop.eup %2755  ;;  %v973_v48 = vunpack.c.h.bf16 %v913_v44  ;;  %v974_v52 = vunpack.c.l.bf16 %v913_v44  ;;  %v866_v49 = vpack.c.bf16 %v2754_v57, %v2754_v57  ;;  %v763_v56 = vpop.f32.mrf.mxu1  ;;  %v1073_v47 = vmul.f32 %v2375_v11, %v1041_v45 }
 0x1ec   : >> { %v2758_v60 = vpop.eup %2757  ;;  %2759 = vpow2.f32 %v844_v43  ;;  %v788_v53 = vpack.c.bf16 %v763_v56, %v763_v56  ;;  %v969_v59 = vmul.f32 %v2756_v3, %v3785_v61 }
 0x1ed   : >> { %2761 = vrcp.f32 %v973_v48  ;;  %v882_v54 = vunpack.c.l.bf16 %v866_v49  ;;  %v1086_v51 = vpack.c.bf16 %v1073_v47, %v1072_v46  ;;  %v971_v41 = vmul.f32 %v2758_v60, %v3787_v62 }
 0x1ee   : >> { %2763 = vrcp.f32 %v974_v52  ;;  %v804_v50 = vxor.u32 2147516416, %v788_v53 }
 0x1ef   : >> { %v898_v58 = vadd.f32 1.0, %v882_v54  ;;  %1430 = vmatmul.bf16.gmra.mxu2 %v1086_v51  ;;  %v1096_v42 = vunpack.c.l.bf16 %v1086_v51  ;;  %v972_v45 = vpack.c.bf16 %v969_v59, %v971_v41 }
 0x1f0   : >> { %v820_v63 = vunpack.c.l.bf16 %v804_v50 }
 0x1f1   : >> { %v914_v55 = vpack.c.bf16 %v898_v58, %v898_v58  ;;  %1116 = vadd.xlane.f32.xlu2 %v1096_v42  ;;  %v1042_v54 = vunpack.c.l.bf16 %v972_v45  ;;  %v1097_v58 = vunpack.c.h.bf16 %v1086_v51 }
 0x1f2   : >> { %v2760_v40 = vpop.eup %2759  ;;  %v846_v44 = vmul.f32 1.442695, %v820_v63 }
 0x1f3   : >> { %v2762_v57 = vpop.eup %2761  ;;  %v980_v43 = vunpack.c.h.bf16 %v914_v55  ;;  %v981_v48 = vunpack.c.l.bf16 %v914_v55  ;;  %v867_v49 = vpack.c.bf16 %v2760_v40, %v2760_v40  ;;  %v765_v46 = vpop.f32.mrf.mxu1 }
 0x1f4   : >> { %v2764_v52 = vpop.eup %2763  ;;  %2765 = vpow2.f32 %v846_v44  ;;  %v789_v56 = vpack.c.bf16 %v765_v46, %v765_v46  ;;  %v976_v3 = vmul.f32 %v2762_v57, %v3785_v61  ;;  %v1074_v44 = vmul.f32 %v2378_v12, %v1042_v54 }
 0x1f5   : >> { %2767 = vrcp.f32 %v980_v43  ;;  %v883_v47 = vunpack.c.l.bf16 %v867_v49  ;;  %v978_v60 = vmul.f32 %v2764_v52, %v3787_v62 }
 0x1f6   : >> { %2769 = vrcp.f32 %v981_v48  ;;  %v805_v53 = vxor.u32 2147516416, %v789_v56 }
 0x1f7   : >> { %v899_v50 = vadd.f32 1.0, %v883_v47  ;;  %v979_v59 = vpack.c.bf16 %v976_v3, %v978_v60 }
 0x1f8   : >> { %v821_v41 = vunpack.c.l.bf16 %v805_v53 }
 0x1f9   : >> { %v915_v42 = vpack.c.bf16 %v899_v50, %v899_v50  ;;  %1118 = vadd.xlane.f32.xlu2 %v1097_v58  ;;  %v1043_v63 = vunpack.c.l.bf16 %v979_v59 }
 0x1fa   : >> { %v2766_v55 = vpop.eup %2765  ;;  %v848_v40 = vmul.f32 1.442695, %v821_v41 }
 0x1fb   : >> { %v2768_v57 = vpop.eup %2767  ;;  %v987_v43 = vunpack.c.h.bf16 %v915_v42  ;;  %v988_v49 = vunpack.c.l.bf16 %v915_v42  ;;  %v868_v46 = vpack.c.bf16 %v2766_v55, %v2766_v55  ;;  %v768_v52 = vpop.f32.mrf.mxu1  ;;  %v1075_v45 = vmul.f32 %v2379_v13, %v1043_v63 }
 0x1fc   : >> { %v2770_v48 = vpop.eup %2769  ;;  %2771 = vpow2.f32 %v848_v40  ;;  %v790_v51 = vpack.c.bf16 %v768_v52, %v768_v52  ;;  %v983_v60 = vmul.f32 %v2768_v57, %v3785_v61 }
 0x1fd   : >> { %2773 = vrcp.f32 %v987_v43  ;;  %v884_v56 = vunpack.c.l.bf16 %v868_v46  ;;  %v1087_v3 = vpack.c.bf16 %v1075_v45, %v1074_v44  ;;  %v985_v53 = vmul.f32 %v2770_v48, %v3787_v62 }
 0x1fe   : >> { %2775 = vrcp.f32 %v988_v49  ;;  %v806_v47 = vxor.u32 2147516416, %v790_v51 }
 0x1ff   : >> { %v900_v54 = vadd.f32 1.0, %v884_v56  ;;  %1435 = vmatmul.bf16.gmra.mxu2 %v1087_v3  ;;  %v1099_v50 = vunpack.c.h.bf16 %v1087_v3  ;;  %v1098_v58 = vunpack.c.l.bf16 %v1087_v3  ;;  %v986_v55 = vpack.c.bf16 %v983_v60, %v985_v53 }
 0x200   : >> { %v822_v59 = vunpack.c.l.bf16 %v806_v47 }
 0x201   : >> { %v916_v41 = vpack.c.bf16 %v900_v54, %v900_v54  ;;  %1122 = vadd.xlane.f32.xlu1 %v1099_v50  ;;  %1120 = vadd.xlane.f32.xlu0 %v1098_v58  ;;  %v1044_v3 = vunpack.c.l.bf16 %v986_v55 }
 0x202   : >> { %v2772_v42 = vpop.eup %2771  ;;  %v850_v63 = vmul.f32 1.442695, %v822_v59 }
 0x203   : >> { %v2774_v40 = vpop.eup %2773  ;;  %v994_v43 = vunpack.c.h.bf16 %v916_v41  ;;  %v995_v44 = vunpack.c.l.bf16 %v916_v41  ;;  %v869_v49 = vpack.c.bf16 %v2772_v42, %v2772_v42  ;;  %v770_v46 = vpop.f32.mrf.mxu1  ;;  %v1076_v41 = vmul.f32 %v2382_v17, %v1044_v3  ;;  %v2841_v17 = vld [vmem:[%s4192_s9] ss:$0 sm:$0xff] (%p4058_p1) }
 0x204   : >> { %v2776_v52 = vpop.eup %2775  ;;  %2777 = vpow2.f32 %v850_v63  ;;  %v791_v57 = vpack.c.bf16 %v770_v46, %v770_v46  ;;  %v990_v45 = vmul.f32 %v2774_v40, %v3785_v61 }
 0x205   : >> { %2779 = vrcp.f32 %v994_v43  ;;  %v885_v48 = vunpack.c.l.bf16 %v869_v49  ;;  %v992_v51 = vmul.f32 %v2776_v52, %v3787_v62 }
 0x206   : >> { %2781 = vrcp.f32 %v995_v44  ;;  %v807_v56 = vxor.u32 2147516416, %v791_v57 }
 0x207   : >> { %v901_v47 = vadd.f32 1.0, %v885_v48  ;;  %v993_v54 = vpack.c.bf16 %v990_v45, %v992_v51 }
 0x208   : >> { %v823_v60 = vunpack.c.l.bf16 %v807_v56 }
 0x209   : >> { %v917_v53 = vpack.c.bf16 %v901_v47, %v901_v47  ;;  %v1045_v50 = vunpack.c.l.bf16 %v993_v54 }
 0x20a   : >> { %v2778_v58 = vpop.eup %2777  ;;  %v852_v59 = vmul.f32 1.442695, %v823_v60 }
 0x20b   : >> { %v2780_v42 = vpop.eup %2779  ;;  %v1001_v63 = vunpack.c.h.bf16 %v917_v53  ;;  %v1002_v40 = vunpack.c.l.bf16 %v917_v53  ;;  %v870_v43 = vpack.c.bf16 %v2778_v58, %v2778_v58  ;;  %v773_v49 = vpop.f32.mrf.mxu1  ;;  %v1077_v44 = vmul.f32 %v2383_v18, %v1045_v50  ;;  %v2345_v53 = vld [vmem:[%s3832_s5 + $0x38] sm:$0xff] }
 0x20c   : >> { %v2782_v46 = vpop.eup %2781  ;;  %2783 = vpow2.f32 %v852_v59  ;;  %v792_v55 = vpack.c.bf16 %v773_v49, %v773_v49  ;;  %v997_v48 = vmul.f32 %v2780_v42, %v3785_v61  ;;  %1556 = vmatpush.bf16.msrb.mxu3 %v2345_v53  ;;  %v2344_v49 = vld [vmem:[%s3832_s5 + $0x30] sm:$0xff] }
 0x20d   : >> { %2785 = vrcp.f32 %v1001_v63  ;;  %v886_v52 = vunpack.c.l.bf16 %v870_v43  ;;  %v1088_v57 = vpack.c.bf16 %v1077_v44, %v1076_v41  ;;  %v999_v51 = vmul.f32 %v2782_v46, %v3787_v62 }
 0x20e   : >> { %2787 = vrcp.f32 %v1002_v40  ;;  %v808_v45 = vxor.u32 2147516416, %v792_v55 }
 0x20f   : >> { %v902_v56 = vadd.f32 1.0, %v886_v52  ;;  %1440 = vmatmul.bf16.gmra.mxu2 %v1088_v57  ;;  %v1101_v3 = vunpack.c.h.bf16 %v1088_v57  ;;  %v1100_v47 = vunpack.c.l.bf16 %v1088_v57  ;;  %v1000_v59 = vpack.c.bf16 %v997_v48, %v999_v51 }
 0x210   : >> { %v824_v54 = vunpack.c.l.bf16 %v808_v45  ;;  %1557 = vmatpush.bf16.msrb.mxu3 %v2344_v49 }
 0x211   : >> { %v918_v60 = vpack.c.bf16 %v902_v56, %v902_v56  ;;  %1126 = vadd.xlane.f32.xlu0 %v1101_v3  ;;  %1124 = vadd.xlane.f32.xlu2 %v1100_v47  ;;  %v1046_v56 = vunpack.c.l.bf16 %v1000_v59 }
 0x212   : >> { %v2784_v50 = vpop.eup %2783  ;;  %v854_v58 = vmul.f32 1.442695, %v824_v54 }
 0x213   : >> { %v2786_v41 = vpop.eup %2785  ;;  %v1008_v42 = vunpack.c.h.bf16 %v918_v60  ;;  %v1009_v63 = vunpack.c.l.bf16 %v918_v60  ;;  %v871_v40 = vpack.c.bf16 %v2784_v50, %v2784_v50  ;;  %v775_v43 = vpop.f32.mrf.mxu1  ;;  %v1078_v50 = vmul.f32 %v2386_v19, %v1046_v56 }
 0x214   : >> { %v2788_v44 = vpop.eup %2787  ;;  %2789 = vpow2.f32 %v854_v58  ;;  %v793_v46 = vpack.c.bf16 %v775_v43, %v775_v43  ;;  %v1004_v55 = vmul.f32 %v2786_v41, %v3785_v61 }
 0x215   : >> { %2791 = vrcp.f32 %v1008_v42  ;;  %v887_v52 = vunpack.c.l.bf16 %v871_v40  ;;  %v1006_v57 = vmul.f32 %v2788_v44, %v3787_v62 }
 0x216   : >> { %2793 = vrcp.f32 %v1009_v63  ;;  %v809_v45 = vxor.u32 2147516416, %v793_v46 }
 0x217   : >> { %v903_v48 = vadd.f32 1.0, %v887_v52  ;;  %v1007_v51 = vpack.c.bf16 %v1004_v55, %v1006_v57 }
 0x218   : >> { %v825_v3 = vunpack.c.l.bf16 %v809_v45  ;;  %v2343_v45 = vld [vmem:[%s3832_s5 + $0x28] sm:$0xff] }
 0x219   : >> { %v919_v47 = vpack.c.bf16 %v903_v48, %v903_v48  ;;  %v1047_v54 = vunpack.c.l.bf16 %v1007_v51  ;;  %1558 = vmatpush.bf16.msrb.mxu3 %v2343_v45 }
 0x21a   : >> { %v2790_v60 = vpop.eup %2789  ;;  %v856_v53 = vmul.f32 1.442695, %v825_v3 }
 0x21b   : >> { %v2792_v58 = vpop.eup %2791  ;;  %v1015_v41 = vunpack.c.h.bf16 %v919_v47  ;;  %v1016_v42 = vunpack.c.l.bf16 %v919_v47  ;;  %v872_v40 = vpack.c.bf16 %v2790_v60, %v2790_v60  ;;  %v1079_v63 = vmul.f32 %v2387_v20, %v1047_v54 }
 0x21c   : >> { %v2794_v59 = vpop.eup %2793  ;;  %2795 = vpow2.f32 %v856_v53  ;;  %v1011_v44 = vmul.f32 %v2792_v58, %v3785_v61 }
 0x21d   : >> { %2797 = vrcp.f32 %v1015_v41  ;;  %v888_v43 = vunpack.c.l.bf16 %v872_v40  ;;  %v1089_v49 = vpack.c.bf16 %v1079_v63, %v1078_v50  ;;  %v1013_v57 = vmul.f32 %v2794_v59, %v3787_v62 }
 0x21e   : >> { %2799 = vrcp.f32 %v1016_v42 }
 0x21f   : >> { %v904_v46 = vadd.f32 1.0, %v888_v43  ;;  %1445 = vmatmul.bf16.gmra.mxu2 %v1089_v49  ;;  %v1103_v55 = vunpack.c.h.bf16 %v1089_v49  ;;  %v1102_v52 = vunpack.c.l.bf16 %v1089_v49  ;;  %v1014_v60 = vpack.c.bf16 %v1011_v44, %v1013_v57 }
 0x221   : >> { %v920_v56 = vpack.c.bf16 %v904_v46, %v904_v46  ;;  %1130 = vadd.xlane.f32.xlu2 %v1103_v55  ;;  %1128 = vadd.xlane.f32.xlu1 %v1102_v52  ;;  %v1048_v63 = vunpack.c.l.bf16 %v1014_v60 }
 0x222   : >> { %v2796_v48 = vpop.eup %2795 }
 0x223   : >> { %v2798_v51 = vpop.eup %2797  ;;  %v1022_v3 = vunpack.c.h.bf16 %v920_v56  ;;  %v1023_v47 = vunpack.c.l.bf16 %v920_v56  ;;  %v873_v54 = vpack.c.bf16 %v2796_v48, %v2796_v48  ;;  %v1080_v44 = vmul.f32 %v2390_v24, %v1048_v63  ;;  %v2340_v63 = vld [vmem:[%s3832_s5 + $0x10] sm:$0xff] }
 0x224   : >> { %v2800_v53 = vpop.eup %2799  ;;  %v1018_v50 = vmul.f32 %v2798_v51, %v3785_v61 }
 0x225   : >> { %2801 = vrcp.f32 %v1022_v3  ;;  %v889_v58 = vunpack.c.l.bf16 %v873_v54  ;;  %v1020_v41 = vmul.f32 %v2800_v53, %v3787_v62  ;;  %v2341_v54 = vld [vmem:[%s3832_s5 + $0x18] sm:$0xff] }
 0x226   : >> { %2803 = vrcp.f32 %v1023_v47  ;;  %v2342_v47 = vld [vmem:[%s3832_s5 + $0x20] sm:$0xff] }
 0x227   : >> { %v905_v42 = vadd.f32 1.0, %v889_v58  ;;  %v1021_v40 = vpack.c.bf16 %v1018_v50, %v1020_v41  ;;  %1559 = vmatpush.bf16.msrb.mxu3 %v2342_v47 }
 0x229   : >> { %v921_v59 = vpack.c.bf16 %v905_v42, %v905_v42  ;;  %v1049_v43 = vunpack.c.l.bf16 %v1021_v40 }
 0x22b   : >> { %v2802_v49 = vpop.eup %2801  ;;  %v1029_v46 = vunpack.c.h.bf16 %v921_v59  ;;  %v1030_v55 = vunpack.c.l.bf16 %v921_v59  ;;  %v1081_v52 = vmul.f32 %v2391_v25, %v1049_v43  ;;  %1560 = vmatpush.bf16.msrb.mxu3 %v2341_v54 }
 0x22c   : >> { %v2804_v57 = vpop.eup %2803  ;;  %v1025_v51 = vmul.f32 %v2802_v49, %v3785_v61 }
 0x22d   : >> { %2805 = vrcp.f32 %v1029_v46  ;;  %v1090_v45 = vpack.c.bf16 %v1081_v52, %v1080_v44  ;;  %v1027_v3 = vmul.f32 %v2804_v57, %v3787_v62  ;;  %v2339_v46 = vld [vmem:[%s3832_s5 + $0x8] sm:$0xff]  ;;  %v2338_v52 = vld [vmem:[%s3832_s5] sm:$0xff] }
 0x22e   : >> { %2807 = vrcp.f32 %v1030_v55 }
 0x22f   : >> { %1450 = vmatmul.bf16.gmra.mxu2 %v1090_v45  ;;  %v1105_v56 = vunpack.c.h.bf16 %v1090_v45  ;;  %v1104_v48 = vunpack.c.l.bf16 %v1090_v45  ;;  %v1028_v53 = vpack.c.bf16 %v1025_v51, %v1027_v3  ;;  %1561 = vmatpush.bf16.msrb.mxu3 %v2340_v63 }
 0x231   : >> { %1134 = vadd.xlane.f32.xlu1 %v1105_v56  ;;  %1132 = vadd.xlane.f32.xlu0 %v1104_v48  ;;  %v1050_v40 = vunpack.c.l.bf16 %v1028_v53 }
 0x233   : >> { %v2806_v60 = vpop.eup %2805  ;;  %v1082_v43 = vmul.f32 %v2394_v26, %v1050_v40  ;;  %1562 = vmatpush.bf16.msrb.mxu3 %v2339_v46 }
 0x234   : >> { %v2808_v50 = vpop.eup %2807  ;;  %v1032_v58 = vmul.f32 %v2806_v60, %v3785_v61 }
 0x235   : >> { %v1034_v41 = vmul.f32 %v2808_v50, %v3787_v62 }
 0x237   : >> { %v1035_v42 = vpack.c.bf16 %v1032_v58, %v1034_v41  ;;  %1563 = vmatpush.bf16.msrb.mxu3 %v2338_v52 }
 0x239   : >> { %v1051_v59 = vunpack.c.l.bf16 %v1035_v42 }
 0x23b   : >> { %v1083_v49 = vmul.f32 %v2395_v27, %v1051_v59 }
 0x23d   : >> { %v1091_v55 = vpack.c.bf16 %v1083_v49, %v1082_v43  ;;  %v1396_v43 = vmul.f32 1e-05, %v3330_v16 }
 0x23f   : >> { %1455 = vmatmul.bf16.gmra.mxu2 %v1091_v55  ;;  %v1107_v61 = vunpack.c.h.bf16 %v1091_v55  ;;  %v1106_v44 = vunpack.c.l.bf16 %v1091_v55 }
 0x241   : >> { %1138 = vadd.xlane.f32.xlu0 %v1107_v61  ;;  %1136 = vadd.xlane.f32.xlu2 %v1106_v44  ;;  %v1397_v44 = vmul.f32 1e-05, %v3326_v21 }
 0x244   : >> { %v1109_v62 = vpop.xlane.xlu0 %1108 }
 0x245   : >> { %v1140_v57 = vadd.f32 1e-05, %v1109_v62 }
 0x247   : >> { %2809 = vrcp.f32 %v1140_v57  ;;  %v1167_v42 = vand.u32 2147483648, %v1140_v57  ;;  %vm1161_vm1 = vweird.f32 %v1140_v57  ;;  %v1165_v63 = vand.u32 2147483647, %v1140_v57 }
 0x249   : >> { %v1168_v62 = vor.u32 1.1754944e-38, %v1167_v42  ;;  %vm1166_vm4 = vcmp.eq.f32.partialorder %v1165_v63, 8.507059e+37 }
 0x24c   : >> { %v1111_v45 = vpop.xlane.xlu0 %1110 }
 0x24d   : >> { %v2810_v56 = vpop.eup %2809  ;;  %v1141_v48 = vadd.f32 1e-05, %v1111_v45 }
 0x24e   : >> { %v1157_v51 = vmul.f32 %v2810_v56, %v1140_v57  ;;  %vm1162_vm0 = vweird.f32 %v2810_v56 }
 0x24f   : >> { %2811 = vrcp.f32 %v1141_v48  ;;  %vm3867_vm2 = vmor %vm1161_vm1, %vm1162_vm0  ;;  %v1180_v49 = vand.u32 2147483647, %v1141_v48  ;;  %v1182_v46 = vand.u32 2147483648, %v1141_v48  ;;  %vm1176_vm5 = vweird.f32 %v1141_v48 }
 0x250   : >> { %v1158_v3 = vsub.f32 1.0, %v1157_v51 }
 0x251   : >> { %vm1181_vm7 = vcmp.eq.f32.partialorder %v1180_v49, 8.507059e+37 }
 0x252   : >> { %v1159_v47 = vmul.f32 %v2810_v56, %v1158_v3  ;;  %v1421_v54 = vpop.f32.mrf.mxu2 }
 0x254   : >> { %v1113_v60 = vpop.xlane.xlu1 %1112  ;;  %v1160_v41 = vadd.f32 %v2810_v56, %v1159_v47  ;;  %v1183_v47 = vor.u32 1.1754944e-38, %v1182_v46 }
 0x255   : >> { %v2812_v53 = vpop.eup %2811  ;;  %v3864_v50 = vadd.f32 1e-05, %v1113_v60 }
 0x256   : >> { %v1172_v58 = vmul.f32 %v2812_v53, %v1141_v48  ;;  %v1164_v55 = vsel %vm3867_vm2, %v2810_v56, %v1160_v41  ;;  %vm1177_vm3 = vweird.f32 %v2812_v53 }
 0x257   : >> { %2813 = vrcp.f32 %v3864_v50  ;;  %v1169_v3 = vsel %vm1166_vm4, %v1168_v62, %v1164_v55  ;;  %vm1178_vm6 = vmor %vm1176_vm5, %vm1177_vm3  ;;  %vm1191_vm9 = vweird.f32 %v3864_v50 }
 0x258   : >> { %v1173_v40 = vsub.f32 1.0, %v1172_v58  ;;  %v1422_v58 = vadd.f32 %v1421_v54, %v1396_v43  ;;  %v1197_v54 = vand.u32 2147483648, %v3864_v50  ;;  %v1195_v43 = vand.u32 2147483647, %v3864_v50 }
 0x25a   : >> { %v1174_v61 = vmul.f32 %v2812_v53, %v1173_v40  ;;  %v1423_v52 = vpop.f32.mrf.mxu2  ;;  %v1461_v4 = vmul.f32 %v1422_v58, %v1169_v3  ;;  %vm1196_vm12 = vcmp.eq.f32.partialorder %v1195_v43, 8.507059e+37 }
 0x25b   : >> { %v1424_v41 = vadd.f32 %v1423_v52, %v1397_v44 }
 0x25c   : >> { %v1175_v45 = vadd.f32 %v2812_v53, %v1174_v61  ;;  %v1115_v57 = vpop.xlane.xlu1 %1114 }
 0x25d   : >> { %v2814_v51 = vpop.eup %2813  ;;  %v1143_v60 = vadd.f32 1e-05, %v1115_v57  ;;  %v1399_v57 = vmul.f32 1e-05, %v3318_v23 }
 0x25e   : >> { %v1187_v59 = vmul.f32 %v2814_v51, %v3864_v50  ;;  %v1179_v56 = vsel %vm1178_vm6, %v2812_v53, %v1175_v45  ;;  %vm1192_vm8 = vweird.f32 %v2814_v51 }
 0x25f   : >> { %v1184_v40 = vsel %vm1181_vm7, %v1183_v47, %v1179_v56  ;;  %2815 = vrcp.f32 %v1143_v60  ;;  %vm3882_vm10 = vmor %vm1191_vm9, %vm1192_vm8  ;;  %v1212_v44 = vand.u32 2147483648, %v1143_v60  ;;  %v1198_v47 = vor.u32 1.1754944e-38, %v1197_v54 }
 0x260   : >> { %v1188_v5 = vsub.f32 1.0, %v1187_v59  ;;  %v1462_v42 = vmul.f32 %v1424_v41, %v1184_v40  ;;  %vm1206_vm13 = vweird.f32 %v1143_v60 }
 0x261   : >> { %v1213_v41 = vor.u32 1.1754944e-38, %v1212_v44 }
 0x262   : >> { %v1189_v63 = vmul.f32 %v2814_v51, %v1188_v5  ;;  %v1426_v61 = vpop.f32.mrf.mxu2  ;;  %v1477_v48 = vpack.c.bf16 %v1462_v42, %v1461_v4  ;;  %v1398_v4 = vmul.f32 1e-05, %v3322_v22 }
 0x264   : >> { %v1117_v6 = vpop.xlane.xlu2 %1116  ;;  %1564 = vmatmul.bf16.vlgmr.msrb.gmra.mxu3 %v1477_v48  ;;  %v1190_v46 = vadd.f32 %v2814_v51, %v1189_v63  ;;  %v1427_v42 = vadd.f32 %v1426_v61, %v1398_v4 }
 0x265   : >> { %v2816_v55 = vpop.eup %2815  ;;  %v3876_v62 = vadd.f32 1e-05, %v1117_v6  ;;  %v1210_v6 = vand.u32 2147483647, %v1143_v60 }
 0x266   : >> { %v1202_v49 = vmul.f32 %v2816_v55, %v1143_v60  ;;  %v1194_v52 = vsel %vm3882_vm10, %v2814_v51, %v1190_v46  ;;  %vm1207_vm11 = vweird.f32 %v2816_v55 }
 0x267   : >> { %2817 = vrcp.f32 %v3876_v62  ;;  %v1199_v56 = vsel %vm1196_vm12, %v1198_v47, %v1194_v52  ;;  %vm1208_vm14 = vmor %vm1206_vm13, %vm1207_vm11  ;;  %vm1211_vm15 = vcmp.eq.f32.partialorder %v1210_v6, 8.507059e+37  ;;  %vm1221_vm1 = vweird.f32 %v3876_v62 }
 0x268   : >> { %v1203_v53 = vsub.f32 1.0, %v1202_v49  ;;  %v1463_v46 = vmul.f32 %v1427_v42, %v1199_v56  ;;  %v1400_v47 = vmul.f32 1e-05, %v3314_v28 }
 0x26a   : >> { %v1204_v45 = vmul.f32 %v2816_v55, %v1203_v53  ;;  %v1428_v3 = vpop.f32.mrf.mxu2 }
 0x26b   : >> { %v1429_v48 = vadd.f32 %v1428_v3, %v1399_v57  ;;  %v1225_v3 = vand.u32 2147483647, %v3876_v62 }
 0x26c   : >> { %v1205_v58 = vadd.f32 %v2816_v55, %v1204_v45  ;;  %v1119_v50 = vpop.xlane.xlu2 %1118 }
 0x26d   : >> { %v2818_v59 = vpop.eup %2817  ;;  %v1145_v40 = vadd.f32 1e-05, %v1119_v50  ;;  %vm1226_vm4 = vcmp.eq.f32.partialorder %v1225_v3, 8.507059e+37 }
 0x26e   : >> { %v1217_v63 = vmul.f32 %v2818_v59, %v3876_v62  ;;  %v1209_v51 = vsel %vm1208_vm14, %v2816_v55, %v1205_v58  ;;  %vm1222_vm0 = vweird.f32 %v2818_v59  ;;  %v1227_v55 = vand.u32 2147483648, %v3876_v62 }
 0x26f   : >> { %v1214_v49 = vsel %vm1211_vm15, %v1213_v41, %v1209_v51  ;;  %2819 = vrcp.f32 %v1145_v40  ;;  %vm1223_vm2 = vmor %vm1221_vm1, %vm1222_vm0  ;;  %v1240_v58 = vand.u32 2147483647, %v1145_v40  ;;  %v1401_v41 = vmul.f32 1e-05, %v3310_v29 }
 0x270   : >> { %v1218_v53 = vsub.f32 1.0, %v1217_v63  ;;  %v1464_v54 = vmul.f32 %v1429_v48, %v1214_v49  ;;  %v1228_v63 = vor.u32 1.1754944e-38, %v1227_v55  ;;  %vm1236_vm5 = vweird.f32 %v1145_v40 }
 0x271   : >> { %vm1241_vm7 = vcmp.eq.f32.partialorder %v1240_v58, 8.507059e+37 }
 0x272   : >> { %v1219_v43 = vmul.f32 %v2818_v59, %v1218_v53  ;;  %v1431_v5 = vpop.f32.mrf.mxu2  ;;  %v1478_v60 = vpack.c.bf16 %v1464_v54, %v1463_v46 }
 0x273   : >> { %v1432_v53 = vadd.f32 %v1431_v5, %v1400_v47 }
 0x274   : >> { %v1123_v45 = vpop.xlane.xlu1 %1122  ;;  %v1121_v10 = vpop.xlane.xlu0 %1120  ;;  %1569 = vmatmul.bf16.gmra.mxu3 %v1478_v60  ;;  %v1220_v4 = vadd.f32 %v2818_v59, %v1219_v43 }
 0x275   : >> { %v2820_v52 = vpop.eup %2819  ;;  %v3891_v6 = vadd.f32 1e-05, %v1123_v45  ;;  %v3893_v44 = vadd.f32 1e-05, %v1121_v10  ;;  %v1242_v10 = vand.u32 2147483648, %v1145_v40 }
 0x276   : >> { %v1232_v61 = vmul.f32 %v2820_v52, %v1145_v40  ;;  %v1224_v50 = vsel %vm1223_vm2, %v2818_v59, %v1220_v4  ;;  %vm1237_vm3 = vweird.f32 %v2820_v52 }
 0x277   : >> { %2821 = vrcp.f32 %v3891_v6  ;;  %v1229_v49 = vsel %vm1226_vm4, %v1228_v63, %v1224_v50  ;;  %vm1238_vm6 = vmor %vm1236_vm5, %vm1237_vm3  ;;  %v1243_v62 = vor.u32 1.1754944e-38, %v1242_v10  ;;  %vm1266_vm10 = vweird.f32 %v3891_v6 }
 0x278   : >> { %v1233_v57 = vsub.f32 1.0, %v1232_v61  ;;  %2823 = vrcp.f32 %v3893_v44  ;;  %v1465_v61 = vmul.f32 %v1432_v53, %v1229_v49  ;;  %vm1251_vm11 = vweird.f32 %v3893_v44 }
 0x279   : >> { %v1255_v49 = vand.u32 2147483647, %v3893_v44 }
 0x27a   : >> { %v1234_v56 = vmul.f32 %v2820_v52, %v1233_v57  ;;  %v1433_v42 = vpop.f32.mrf.mxu2 }
 0x27b   : >> { %v1434_v59 = vadd.f32 %v1433_v42, %v1401_v41  ;;  %v1403_v41 = vmul.f32 1e-05, %v3302_v31  ;;  %v1257_v42 = vand.u32 2147483648, %v3893_v44  ;;  %vm1256_vm14 = vcmp.eq.f32.partialorder %v1255_v49, 8.507059e+37 }
 0x27c   : >> { %v1235_v51 = vadd.f32 %v2820_v52, %v1234_v56 }
 0x27d   : >> { %v2822_v48 = vpop.eup %2821 }
 0x27e   : >> { %v2824_v46 = vpop.eup %2823  ;;  %v1262_v54 = vmul.f32 %v2822_v48, %v3891_v6  ;;  %v1239_v43 = vsel %vm1238_vm6, %v2820_v52, %v1235_v51  ;;  %vm1267_vm8 = vweird.f32 %v2822_v48  ;;  %v1272_v51 = vand.u32 2147483648, %v3891_v6 }
 0x27f   : >> { %v1247_v60 = vmul.f32 %v2824_v46, %v3893_v44  ;;  %v1244_v45 = vsel %vm1241_vm7, %v1243_v62, %v1239_v43  ;;  %vm1252_vm9 = vweird.f32 %v2824_v46  ;;  %vm1268_vm12 = vmor %vm1266_vm10, %vm1267_vm8  ;;  %v1270_v62 = vand.u32 2147483647, %v3891_v6 }
 0x280   : >> { %v1263_v4 = vsub.f32 1.0, %v1262_v54  ;;  %v1466_v55 = vmul.f32 %v1434_v59, %v1244_v45  ;;  %vm1253_vm13 = vmor %vm1251_vm11, %vm1252_vm9  ;;  %v1402_v54 = vmul.f32 1e-05, %v3306_v30  ;;  %v1273_v45 = vor.u32 1.1754944e-38, %v1272_v51 }
 0x281   : >> { %v1248_v57 = vsub.f32 1.0, %v1247_v60  ;;  %v1258_v60 = vor.u32 1.1754944e-38, %v1257_v42  ;;  %vm1271_vm15 = vcmp.eq.f32.partialorder %v1270_v62, 8.507059e+37 }
 0x282   : >> { %v1436_v3 = vpop.f32.mrf.mxu2  ;;  %v1479_v40 = vpack.c.bf16 %v1466_v55, %v1465_v61  ;;  %v1264_v56 = vmul.f32 %v2822_v48, %v1263_v4 }
 0x283   : >> { %v1249_v50 = vmul.f32 %v2824_v46, %v1248_v57 }
 0x284   : >> { %v1127_v63 = vpop.xlane.xlu0 %1126  ;;  %v1125_v58 = vpop.xlane.xlu2 %1124  ;;  %1574 = vmatmul.bf16.gmra.mxu3 %v1479_v40  ;;  %v1265_v47 = vadd.f32 %v2822_v48, %v1264_v56  ;;  %v1437_v40 = vadd.f32 %v1436_v3, %v1402_v54  ;;  %v1405_v54 = vmul.f32 1e-05, %v3294_v33 }
 0x285   : >> { %v3904_v10 = vadd.f32 1e-05, %v1127_v63  ;;  %v3906_v5 = vadd.f32 1e-05, %v1125_v58  ;;  %v1250_v52 = vadd.f32 %v2824_v46, %v1249_v50 }
 0x286   : >> { %v1269_v43 = vsel %vm1268_vm12, %v2822_v48, %v1265_v47 }
 0x287   : >> { %2825 = vrcp.f32 %v3904_v10  ;;  %v1254_v53 = vsel %vm1253_vm13, %v2824_v46, %v1250_v52  ;;  %v1274_v57 = vsel %vm1271_vm15, %v1273_v45, %v1269_v43  ;;  %v1287_v43 = vand.u32 2147483648, %v3906_v5 }
 0x288   : >> { %2827 = vrcp.f32 %v3906_v5  ;;  %v1259_v55 = vsel %vm1256_vm14, %v1258_v60, %v1254_v53  ;;  %vm1296_vm2 = vweird.f32 %v3904_v10  ;;  %vm1281_vm3 = vweird.f32 %v3906_v5 }
 0x289   : >> { %v1467_v46 = vmul.f32 %v1437_v40, %v1259_v55  ;;  %v1285_v60 = vand.u32 2147483647, %v3906_v5  ;;  %v1300_v45 = vand.u32 2147483647, %v3904_v10  ;;  %v1404_v55 = vmul.f32 1e-05, %v3298_v32 }
 0x28a   : >> { %v1438_v59 = vpop.f32.mrf.mxu2 }
 0x28b   : >> { %v1439_v61 = vadd.f32 %v1438_v59, %v1403_v41  ;;  %v1302_v59 = vand.u32 2147483648, %v3904_v10  ;;  %vm1286_vm6 = vcmp.eq.f32.partialorder %v1285_v60, 8.507059e+37  ;;  %vm1301_vm7 = vcmp.eq.f32.partialorder %v1300_v45, 8.507059e+37 }
 0x28d   : >> { %v2826_v4 = vpop.eup %2825  ;;  %v1468_v50 = vmul.f32 %v1439_v61, %v1274_v57 }
 0x28e   : >> { %v2828_v44 = vpop.eup %2827  ;;  %v1292_v56 = vmul.f32 %v2826_v4, %v3904_v10  ;;  %vm1297_vm0 = vweird.f32 %v2826_v4 }
 0x28f   : >> { %v1277_v6 = vmul.f32 %v2828_v44, %v3906_v5  ;;  %v1480_v52 = vpack.c.bf16 %v1468_v50, %v1467_v46  ;;  %vm1282_vm1 = vweird.f32 %v2828_v44  ;;  %vm1298_vm4 = vmor %vm1296_vm2, %vm1297_vm0  ;;  %v1303_v50 = vor.u32 1.1754944e-38, %v1302_v59 }
 0x290   : >> { %v1293_v63 = vsub.f32 1.0, %v1292_v56  ;;  %vm1283_vm5 = vmor %vm1281_vm3, %vm1282_vm1  ;;  %v1288_v56 = vor.u32 1.1754944e-38, %v1287_v43 }
 0x291   : >> { %v1278_v58 = vsub.f32 1.0, %v1277_v6 }
 0x292   : >> { %v1441_v48 = vpop.f32.mrf.mxu2  ;;  %v1294_v47 = vmul.f32 %v2826_v4, %v1293_v63 }
 0x293   : >> { %v1279_v42 = vmul.f32 %v2828_v44, %v1278_v58 }
 0x294   : >> { %v1131_v41 = vpop.xlane.xlu2 %1130  ;;  %v1129_v51 = vpop.xlane.xlu1 %1128  ;;  %1579 = vmatmul.bf16.gmra.mxu3 %v1480_v52  ;;  %v1295_v53 = vadd.f32 %v2826_v4, %v1294_v47  ;;  %v1442_v52 = vadd.f32 %v1441_v48, %v1404_v55  ;;  %v1407_v55 = vmul.f32 1e-05, %v3286_v35 }
 0x295   : >> { %v3920_v49 = vadd.f32 1e-05, %v1131_v41  ;;  %v3922_v62 = vadd.f32 1e-05, %v1129_v51  ;;  %v1280_v3 = vadd.f32 %v2828_v44, %v1279_v42 }
 0x296   : >> { %v1299_v57 = vsel %vm1298_vm4, %v2826_v4, %v1295_v53 }
 0x297   : >> { %2829 = vrcp.f32 %v3920_v49  ;;  %v1284_v61 = vsel %vm1283_vm5, %v2828_v44, %v1280_v3  ;;  %v1304_v58 = vsel %vm1301_vm7, %v1303_v50, %v1299_v57  ;;  %v1317_v57 = vand.u32 2147483648, %v3922_v62 }
 0x298   : >> { %2831 = vrcp.f32 %v3922_v62  ;;  %v1289_v63 = vsel %vm1286_vm6, %v1288_v56, %v1284_v61  ;;  %vm1326_vm10 = vweird.f32 %v3920_v49  ;;  %vm1311_vm11 = vweird.f32 %v3922_v62 }
 0x299   : >> { %v1469_v44 = vmul.f32 %v1442_v52, %v1289_v63  ;;  %v1315_v56 = vand.u32 2147483647, %v3922_v62  ;;  %v2354_v63 = vld [vmem:[%s3954_s30 + $0x38] sm:$0xff]  ;;  %v1406_v52 = vmul.f32 1e-05, %v3290_v34 }
 0x29a   : >> { %v1443_v40 = vpop.f32.mrf.mxu2  ;;  %1700 = vmatpush.bf16.msrb.mxu0 %v2354_v63  ;;  %v2351_v63 = vld [vmem:[%s3954_s30 + $0x20] sm:$0xff] }
 0x29b   : >> { %v1444_v6 = vadd.f32 %v1443_v40, %v1405_v54  ;;  %v1332_v40 = vand.u32 2147483648, %v3920_v49  ;;  %vm1316_vm14 = vcmp.eq.f32.partialorder %v1315_v56, 8.507059e+37 }
 0x29d   : >> { %v2830_v46 = vpop.eup %2829  ;;  %v1470_v42 = vmul.f32 %v1444_v6, %v1304_v58  ;;  %v1330_v6 = vand.u32 2147483647, %v3920_v49 }
 0x29e   : >> { %v2832_v5 = vpop.eup %2831  ;;  %v1322_v47 = vmul.f32 %v2830_v46, %v3920_v49  ;;  %vm1327_vm8 = vweird.f32 %v2830_v46 }
 0x29f   : >> { %v1307_v10 = vmul.f32 %v2832_v5, %v3922_v62  ;;  %v1481_v3 = vpack.c.bf16 %v1470_v42, %v1469_v44  ;;  %vm1312_vm9 = vweird.f32 %v2832_v5  ;;  %vm3948_vm12 = vmor %vm1326_vm10, %vm1327_vm8  ;;  %v1318_v42 = vor.u32 1.1754944e-38, %v1317_v57 }
 0x2a0   : >> { %v1323_v41 = vsub.f32 1.0, %v1322_v47  ;;  %vm1313_vm13 = vmor %vm1311_vm11, %vm1312_vm9  ;;  %vm1331_vm15 = vcmp.eq.f32.partialorder %v1330_v6, 8.507059e+37 }
 0x2a1   : >> { %v1308_v51 = vsub.f32 1.0, %v1307_v10  ;;  %v1333_v10 = vor.u32 1.1754944e-38, %v1332_v40 }
 0x2a2   : >> { %v1446_v4 = vpop.f32.mrf.mxu2  ;;  %v1324_v53 = vmul.f32 %v2830_v46, %v1323_v41 }
 0x2a3   : >> { %v1309_v43 = vmul.f32 %v2832_v5, %v1308_v51 }
 0x2a4   : >> { %v1135_v54 = vpop.xlane.xlu1 %1134  ;;  %v1133_v59 = vpop.xlane.xlu0 %1132  ;;  %1584 = vmatmul.bf16.gmra.mxu3 %v1481_v3  ;;  %v1325_v61 = vadd.f32 %v2830_v46, %v1324_v53  ;;  %v2353_v3 = vld [vmem:[%s3954_s30 + $0x30] sm:$0xff] }
 0x2a5   : >> { %v3936_v60 = vadd.f32 1e-05, %v1135_v54  ;;  %v3938_v45 = vadd.f32 1e-05, %v1133_v59  ;;  %v1310_v48 = vadd.f32 %v2832_v5, %v1309_v43  ;;  %v1447_v43 = vadd.f32 %v1446_v4, %v1406_v52  ;;  %1701 = vmatpush.bf16.msrb.mxu0 %v2353_v3  ;;  %v2352_v59 = vld [vmem:[%s3954_s30 + $0x28] sm:$0xff] }
 0x2a6   : >> { %v1329_v62 = vsel %vm3948_vm12, %v2830_v46, %v1325_v61 }
 0x2a7   : >> { %2833 = vrcp.f32 %v3936_v60  ;;  %v1314_v58 = vsel %vm1313_vm13, %v2832_v5, %v1310_v48  ;;  %v1334_v51 = vsel %vm1331_vm15, %v1333_v10, %v1329_v62  ;;  %v1347_v10 = vand.u32 2147483648, %v3938_v45 }
 0x2a8   : >> { %2835 = vrcp.f32 %v3938_v45  ;;  %v1319_v41 = vsel %vm1316_vm14, %v1318_v42, %v1314_v58  ;;  %v1409_v42 = vmul.f32 1e-05, %v3278_v37  ;;  %vm1356_vm2 = vweird.f32 %v3936_v60 }
 0x2a9   : >> { %v1471_v48 = vmul.f32 %v1447_v43, %v1319_v41  ;;  %1702 = vmatpush.bf16.msrb.mxu0 %v2352_v59  ;;  %v2350_v41 = vld [vmem:[%s3954_s30 + $0x18] sm:$0xff]  ;;  %vm1341_vm3 = vweird.f32 %v3938_v45  ;;  %v1360_v43 = vand.u32 2147483647, %v3936_v60 }
 0x2aa   : >> { %v1448_v47 = vpop.f32.mrf.mxu2 }
 0x2ab   : >> { %v1449_v44 = vadd.f32 %v1448_v47, %v1407_v55  ;;  %vm1361_vm7 = vcmp.eq.f32.partialorder %v1360_v43, 8.507059e+37 }
 0x2ad   : >> { %v2834_v49 = vpop.eup %2833  ;;  %v1472_v54 = vmul.f32 %v1449_v44, %v1334_v51  ;;  %v1362_v44 = vand.u32 2147483648, %v3936_v60  ;;  %1703 = vmatpush.bf16.msrb.mxu0 %v2351_v63  ;;  %v1345_v51 = vand.u32 2147483647, %v3938_v45 }
 0x2ae   : >> { %v2836_v53 = vpop.eup %2835  ;;  %v1352_v5 = vmul.f32 %v2834_v49, %v3936_v60  ;;  %vm1357_vm0 = vweird.f32 %v2834_v49 }
 0x2af   : >> { %v1337_v46 = vmul.f32 %v2836_v53, %v3938_v45  ;;  %v1482_v40 = vpack.c.bf16 %v1472_v54, %v1471_v48  ;;  %vm1342_vm1 = vweird.f32 %v2836_v53  ;;  %vm3978_vm4 = vmor %vm1356_vm2, %vm1357_vm0  ;;  %v1408_v54 = vmul.f32 1e-05, %v3282_v36  ;;  %v2349_v45 = vld [vmem:[%s3954_s30 + $0x10] sm:$0xff] }
 0x2b0   : >> { %v1353_v61 = vsub.f32 1.0, %v1352_v5  ;;  %vm1343_vm5 = vmor %vm1341_vm3, %vm1342_vm1  ;;  %v1348_v48 = vor.u32 1.1754944e-38, %v1347_v10  ;;  %vm1346_vm6 = vcmp.eq.f32.partialorder %v1345_v51, 8.507059e+37 }
 0x2b1   : >> { %v1338_v55 = vsub.f32 1.0, %v1337_v46  ;;  %1704 = vmatpush.bf16.msrb.mxu0 %v2350_v41 }
 0x2b2   : >> { %v1451_v57 = vpop.f32.mrf.mxu2  ;;  %v1354_v56 = vmul.f32 %v2834_v49, %v1353_v61  ;;  %v1363_v61 = vor.u32 1.1754944e-38, %v1362_v44 }
 0x2b3   : >> { %v1339_v50 = vmul.f32 %v2836_v53, %v1338_v55  ;;  %v1452_v60 = vadd.f32 %v1451_v57, %v1408_v54 }
 0x2b4   : >> { %1589 = vmatmul.bf16.gmra.mxu3 %v1482_v40  ;;  %v1139_v6 = vpop.xlane.xlu0 %1138  ;;  %v1137_v4 = vpop.xlane.xlu2 %1136  ;;  %v1355_v47 = vadd.f32 %v2834_v49, %v1354_v56 }
 0x2b5   : >> { %v3965_v58 = vadd.f32 1e-05, %v1139_v6  ;;  %v3967_v52 = vadd.f32 1e-05, %v1137_v4  ;;  %v1340_v62 = vadd.f32 %v2836_v53, %v1339_v50  ;;  %1705 = vmatpush.bf16.msrb.mxu0 %v2349_v45 }
 0x2b6   : >> { %v1359_v46 = vsel %vm3978_vm4, %v2834_v49, %v1355_v47 }
 0x2b7   : >> { %2837 = vrcp.f32 %v3965_v58  ;;  %v1344_v5 = vsel %vm1343_vm5, %v2836_v53, %v1340_v62  ;;  %v1364_v50 = vsel %vm1361_vm7, %v1363_v61, %v1359_v46  ;;  %v1377_v57 = vand.u32 2147483648, %v3967_v52 }
 0x2b8   : >> { %2839 = vrcp.f32 %v3967_v52  ;;  %v1349_v56 = vsel %vm1346_vm6, %v1348_v48, %v1344_v5  ;;  %vm1386_vm10 = vweird.f32 %v3965_v58  ;;  %v1392_v43 = vand.u32 2147483648, %v3965_v58 }
 0x2b9   : >> { %v1473_v49 = vmul.f32 %v1452_v60, %v1349_v56  ;;  %v1411_v5 = vmul.f32 1e-05, %v3270_v39  ;;  %vm1371_vm11 = vweird.f32 %v3967_v52  ;;  %v1375_v54 = vand.u32 2147483647, %v3967_v52  ;;  %v2348_v56 = vld [vmem:[%s3954_s30 + $0x8] sm:$0xff] }
 0x2ba   : >> { %v1453_v59 = vpop.f32.mrf.mxu2  ;;  %v1410_v61 = vmul.f32 1e-05, %v3274_v38  ;;  %v1393_v60 = vor.u32 1.1754944e-38, %v1392_v43  ;;  %1706 = vmatpush.bf16.msrb.mxu0 %v2348_v56 }
 0x2bb   : >> { %v1454_v55 = vadd.f32 %v1453_v59, %v1409_v42  ;;  %v1390_v59 = vand.u32 2147483647, %v3965_v58  ;;  %vm1376_vm14 = vcmp.eq.f32.partialorder %v1375_v54, 8.507059e+37 }
 0x2bd   : >> { %v2838_v40 = vpop.eup %2837  ;;  %v1474_v4 = vmul.f32 %v1454_v55, %v1364_v50  ;;  %v1378_v50 = vor.u32 1.1754944e-38, %v1377_v57  ;;  %vm1391_vm15 = vcmp.eq.f32.partialorder %v1390_v59, 8.507059e+37 }
 0x2be   : >> { %v2840_v6 = vpop.eup %2839  ;;  %v1382_v53 = vmul.f32 %v2838_v40, %v3965_v58  ;;  %vm1387_vm8 = vweird.f32 %v2838_v40 }
 0x2bf   : >> { %v1367_v63 = vmul.f32 %v2840_v6, %v3967_v52  ;;  %v1483_v42 = vpack.c.bf16 %v1474_v4, %v1473_v49  ;;  %vm1372_vm9 = vweird.f32 %v2840_v6  ;;  %vm3995_vm12 = vmor %vm1386_vm10, %vm1387_vm8 }
 0x2c0   : >> { %v1383_v62 = vsub.f32 1.0, %v1382_v53  ;;  %vm1373_vm13 = vmor %vm1371_vm11, %vm1372_vm9 }
 0x2c1   : >> { %v1368_v47 = vsub.f32 1.0, %v1367_v63 }
 0x2c2   : >> { %v1456_v10 = vpop.f32.mrf.mxu2  ;;  %v1384_v44 = vmul.f32 %v2838_v40, %v1383_v62  ;;  %v2347_v62 = vld [vmem:[%s3954_s30] sm:$0xff] }
 0x2c3   : >> { %v1369_v41 = vmul.f32 %v2840_v6, %v1368_v47  ;;  %v1457_v58 = vadd.f32 %v1456_v10, %v1410_v61  ;;  %1707 = vmatpush.bf16.msrb.mxu0 %v2347_v62 }
 0x2c4   : >> { %1594 = vmatmul.bf16.gmra.mxu3 %v1483_v42  ;;  %v1385_v3 = vadd.f32 %v2838_v40, %v1384_v44 }
 0x2c5   : >> { %v1370_v51 = vadd.f32 %v2840_v6, %v1369_v41 }
 0x2c6   : >> { %v1389_v55 = vsel %vm3995_vm12, %v2838_v40, %v1385_v3  ;;  %v2711_v40 = vld [vmem:[%s1503_s6] ss:$0 sm:$0xff]  ;;  %s3132_s6 = scalar_lea.hbm (%p4058_p1), %s4271_s21, 256 }
 0x2c7   : >> { %v1374_v48 = vsel %vm1373_vm13, %v2840_v6, %v1370_v51  ;;  %v1394_v4 = vsel %vm1391_vm15, %v1393_v60, %v1389_v55  ;;  %p3134_p5 = scmp.lt.s32.totalorder (%p4058_p1), %s3132_s6, %s3128_s8 }
 0x2c8   : >> { %v1379_v53 = vsel %vm1376_vm14, %v1378_v50, %v1374_v48 }
 0x2c9   : >> { %v1475_v6 = vmul.f32 %v1457_v58, %v1379_v53  ;;  %p3135_p8 = por (%p4058_p1), %p3134_p5, %p3133_p9 }
 0x2ca   : >> { %v1458_v45 = vpop.f32.mrf.mxu2 }
 0x2cb   : >> { %v1459_v52 = vadd.f32 %v1458_v45, %v1411_v5  ;;  %p3136_p10 = pnand (%p4058_p1), %p3135_p8, %p3131_p7 }
 0x2cd   : >> { %v1476_v63 = vmul.f32 %v1459_v52, %v1394_v4 }
 0x2cf   : >> { %v1484_v49 = vpack.c.bf16 %v1476_v63, %v1475_v6 }
 0x2d4   : >> { %1599 = vmatmul.bf16.gmra.mxu3 %v1484_v49 }
 0x2e7   : >> { %v1565_v47 = vpop.f32.mrf.mxu3 }
 0x2e8   : >> { %v1566_v42 = vadd.f32 %v2711_v40, %v1565_v47 }
 0x2ea   : >> { %v1605_v51 = vmax.f32 %v1566_v42, 0.0 }
 0x2ef   : >> { %v1567_v44 = vpop.f32.mrf.mxu3 }
 0x2f0   : >> { %v1568_v41 = vadd.f32 %v2711_v40, %v1567_v44 }
 0x2f2   : >> { %v1606_v3 = vmax.f32 %v1568_v41, 0.0 }
 0x2f4   : >> { %v1621_v57 = vpack.c.bf16 %v1606_v3, %v1605_v51 }
 0x2f6   : >> { %1708 = vmatmul.bf16.vlgmr.msrb.gmra.mxu0 %v1621_v57 }
 0x2f7   : >> { %v1570_v43 = vpop.f32.mrf.mxu3 }
 0x2f8   : >> { %v1571_v5 = vadd.f32 %v2711_v40, %v1570_v43 }
 0x2fa   : >> { %v1607_v46 = vmax.f32 %v1571_v5, 0.0 }
 0x2ff   : >> { %v1572_v54 = vpop.f32.mrf.mxu3 }
 0x300   : >> { %v1573_v10 = vadd.f32 %v2711_v40, %v1572_v54 }
 0x302   : >> { %v1608_v59 = vmax.f32 %v1573_v10, 0.0 }
 0x304   : >> { %v1622_v48 = vpack.c.bf16 %v1608_v59, %v1607_v46 }
 0x306   : >> { %1713 = vmatmul.bf16.gmra.mxu0 %v1622_v48 }
 0x307   : >> { %v1575_v61 = vpop.f32.mrf.mxu3 }
 0x308   : >> { %v1576_v55 = vadd.f32 %v2711_v40, %v1575_v61 }
 0x30a   : >> { %v1609_v50 = vmax.f32 %v1576_v55, 0.0 }
 0x30f   : >> { %v1577_v45 = vpop.f32.mrf.mxu3 }
 0x310   : >> { %v1578_v56 = vadd.f32 %v2711_v40, %v1577_v45 }
 0x312   : >> { %v1610_v60 = vmax.f32 %v1578_v56, 0.0 }
 0x314   : >> { %v1623_v52 = vpack.c.bf16 %v1610_v60, %v1609_v50 }
 0x316   : >> { %1718 = vmatmul.bf16.gmra.mxu0 %v1623_v52 }
 0x317   : >> { %v1580_v53 = vpop.f32.mrf.mxu3 }
 0x318   : >> { %v1581_v4 = vadd.f32 %v2711_v40, %v1580_v53 }
 0x31a   : >> { %v1611_v6 = vmax.f32 %v1581_v4, 0.0 }
 0x31f   : >> { %v1582_v58 = vpop.f32.mrf.mxu3 }
 0x320   : >> { %v1583_v63 = vadd.f32 %v2711_v40, %v1582_v58 }
 0x322   : >> { %v1612_v49 = vmax.f32 %v1583_v63, 0.0 }
 0x324   : >> { %v1624_v62 = vpack.c.bf16 %v1612_v49, %v1611_v6 }
 0x326   : >> { %1723 = vmatmul.bf16.gmra.mxu0 %v1624_v62 }
 0x327   : >> { %v1585_v47 = vpop.f32.mrf.mxu3 }
 0x328   : >> { %v1586_v42 = vadd.f32 %v2711_v40, %v1585_v47  ;;  %v2712_v47 = vld [vmem:[%s1647_s11] ss:$0 sm:$0xff] }
 0x32a   : >> { %v1613_v51 = vmax.f32 %v1586_v42, 0.0 }
 0x32f   : >> { %v1587_v44 = vpop.f32.mrf.mxu3 }
 0x330   : >> { %v1588_v41 = vadd.f32 %v2711_v40, %v1587_v44 }
 0x332   : >> { %v1614_v3 = vmax.f32 %v1588_v41, 0.0 }
 0x334   : >> { %v1625_v57 = vpack.c.bf16 %v1614_v3, %v1613_v51 }
 0x336   : >> { %1728 = vmatmul.bf16.gmra.mxu0 %v1625_v57 }
 0x337   : >> { %v1590_v43 = vpop.f32.mrf.mxu3 }
 0x338   : >> { %v1591_v5 = vadd.f32 %v2711_v40, %v1590_v43 }
 0x33a   : >> { %v1615_v46 = vmax.f32 %v1591_v5, 0.0 }
 0x33f   : >> { %v1592_v54 = vpop.f32.mrf.mxu3 }
 0x340   : >> { %v1593_v10 = vadd.f32 %v2711_v40, %v1592_v54 }
 0x342   : >> { %v1616_v59 = vmax.f32 %v1593_v10, 0.0 }
 0x344   : >> { %v1626_v48 = vpack.c.bf16 %v1616_v59, %v1615_v46 }
 0x346   : >> { %1733 = vmatmul.bf16.gmra.mxu0 %v1626_v48 }
 0x347   : >> { %v1595_v61 = vpop.f32.mrf.mxu3 }
 0x348   : >> { %v1596_v55 = vadd.f32 %v2711_v40, %v1595_v61 }
 0x34a   : >> { %v1617_v50 = vmax.f32 %v1596_v55, 0.0 }
 0x34f   : >> { %v1597_v45 = vpop.f32.mrf.mxu3 }
 0x350   : >> { %v1598_v56 = vadd.f32 %v2711_v40, %v1597_v45 }
 0x352   : >> { %v1618_v60 = vmax.f32 %v1598_v56, 0.0 }
 0x354   : >> { %v1627_v52 = vpack.c.bf16 %v1618_v60, %v1617_v50 }
 0x356   : >> { %1738 = vmatmul.bf16.gmra.mxu0 %v1627_v52 }
 0x357   : >> { %v1600_v53 = vpop.f32.mrf.mxu3 }
 0x358   : >> { %v1601_v4 = vadd.f32 %v2711_v40, %v1600_v53 }
 0x35a   : >> { %v1619_v6 = vmax.f32 %v1601_v4, 0.0 }
 0x35f   : >> { %v1602_v58 = vpop.f32.mrf.mxu3 }
 0x360   : >> { %v1603_v63 = vadd.f32 %v2711_v40, %v1602_v58 }
 0x362   : >> { %v1620_v49 = vmax.f32 %v1603_v63, 0.0 }
 0x364   : >> { %v1628_v62 = vpack.c.bf16 %v1620_v49, %v1619_v6 }
 0x366   : >> { %1743 = vmatmul.bf16.gmra.mxu0 %v1628_v62 }
 0x373   : >> { %v1709_v42 = vpop.f32.mrf.mxu0 }
 0x374   : >> { %v1710_v44 = vadd.f32 %v2712_v47, %v1709_v42 }
 0x376   : >> { %v1749_v41 = vmax.f32 %v1710_v44, 0.0 }
 0x378   : >> { %v4010_v16 = vadd.f32 %v3330_v16, %v1749_v41  }
 0x37a   : >> { %v4238_v51 = vmov %v4010_v16 }
 0x37b   : >> { %v1711_v3 = vpop.f32.mrf.mxu0 }
 0x37c   : >> { %v1712_v57 = vadd.f32 %v2712_v47, %v1711_v3 }
 0x37e   : >> { %v1750_v43 = vmax.f32 %v1712_v57, 0.0 }
 0x380   : >> { %v4013_v21 = vadd.f32 %v3326_v21, %v1750_v43  }
 0x382   : >> { %v4239_v5 = vmov %v4013_v21 }
 0x383   : >> { %v1714_v54 = vpop.f32.mrf.mxu0  ;;  %v1781_v7 = vpack.c.bf16 (%p4058_p1), %v4239_v5, %v4238_v51 }
 0x384   : >> { %v1715_v40 = vadd.f32 %v2712_v47, %v1714_v54 }
 0x386   : >> { %v1751_v10 = vmax.f32 %v1715_v40, 0.0 }
 0x388   : >> { %v4016_v22 = vadd.f32 %v3322_v22, %v1751_v10  }
 0x38a   : >> { %v4240_v46 = vmov %v4016_v22 }
 0x38b   : >> { %v1716_v59 = vpop.f32.mrf.mxu0 }
 0x38c   : >> { %v1717_v48 = vadd.f32 %v2712_v47, %v1716_v59 }
 0x38e   : >> { %v1752_v61 = vmax.f32 %v1717_v48, 0.0 }
 0x390   : >> { %v4019_v23 = vadd.f32 %v3318_v23, %v1752_v61  }
 0x392   : >> { %v4241_v55 = vmov %v4019_v23 }
 0x393   : >> { %v1719_v45 = vpop.f32.mrf.mxu0  ;;  %v1782_v12 = vpack.c.bf16 (%p4058_p1), %v4241_v55, %v4240_v46 }
 0x394   : >> { %v1720_v16 = vadd.f32 %v2712_v47, %v1719_v45 }
 0x396   : >> { %v1753_v56 = vmax.f32 %v1720_v16, 0.0 }
 0x398   : >> { %v4022_v28 = vadd.f32 %v3314_v28, %v1753_v56  }
 0x39a   : >> { %v4242_v50 = vmov %v4022_v28 }
 0x39b   : >> { %v1721_v60 = vpop.f32.mrf.mxu0 }
 0x39c   : >> { %v1722_v21 = vadd.f32 %v2712_v47, %v1721_v60 }
 0x39e   : >> { %v1754_v52 = vmax.f32 %v1722_v21, 0.0 }
 0x3a0   : >> { %v4025_v29 = vadd.f32 %v3310_v29, %v1754_v52  }
 0x3a2   : >> { %v4243_v53 = vmov %v4025_v29 }
 0x3a3   : >> { %v1724_v4 = vpop.f32.mrf.mxu0  ;;  %v1783_v8 = vpack.c.bf16 (%p4058_p1), %v4243_v53, %v4242_v50 }
 0x3a4   : >> { %v1725_v22 = vadd.f32 %v2712_v47, %v1724_v4 }
 0x3a6   : >> { %v1755_v58 = vmax.f32 %v1725_v22, 0.0 }
 0x3a8   : >> { %v4028_v30 = vadd.f32 %v3306_v30, %v1755_v58  }
 0x3aa   : >> { %v4244_v63 = vmov %v4028_v30 }
 0x3ab   : >> { %v1726_v6 = vpop.f32.mrf.mxu0 }
 0x3ac   : >> { %v1727_v23 = vadd.f32 %v2712_v47, %v1726_v6 }
 0x3ae   : >> { %v1756_v49 = vmax.f32 %v1727_v23, 0.0 }
 0x3b0   : >> { %v4031_v31 = vadd.f32 %v3302_v31, %v1756_v49  }
 0x3b2   : >> { %v4245_v62 = vmov %v4031_v31 }
 0x3b3   : >> { %v1729_v42 = vpop.f32.mrf.mxu0  ;;  %v1784_v13 = vpack.c.bf16 (%p4058_p1), %v4245_v62, %v4244_v63 }
 0x3b4   : >> { %v1730_v28 = vadd.f32 %v2712_v47, %v1729_v42  ;;  %v2361_v42 = vld [vmem:[#allocation16 + $0x30] sm:$0xff] (%p4058_p1) }
 0x3b6   : >> { %v1757_v44 = vmax.f32 %v1730_v28, 0.0  ;;  %v4266_v28 = vmov %v4242_v50 }
 0x3b8   : >> { %v4034_v32 = vadd.f32 %v3298_v32, %v1757_v44   ;;  %v2360_v44 = vld [vmem:[#allocation16 + $0x28] sm:$0xff] (%p4058_p1) }
 0x3ba   : >> { %v4246_v41 = vmov %v4034_v32 }
 0x3bb   : >> { %v1731_v3 = vpop.f32.mrf.mxu0 }
 0x3bc   : >> { %v1732_v29 = vadd.f32 %v2712_v47, %v1731_v3  ;;  %v2359_v3 = vld [vmem:[#allocation16 + $0x20] sm:$0xff] (%p4058_p1) }
 0x3be   : >> { %v1758_v57 = vmax.f32 %v1732_v29, 0.0  ;;  %v4265_v29 = vmov %v4243_v53 }
 0x3c0   : >> { %v4037_v33 = vadd.f32 %v3294_v33, %v1758_v57   ;;  %v2358_v57 = vld [vmem:[#allocation16 + $0x18] sm:$0xff] (%p4058_p1) }
 0x3c2   : >> { %v4247_v43 = vmov %v4037_v33 }
 0x3c3   : >> { %v1734_v54 = vpop.f32.mrf.mxu0  ;;  %v1785_v9 = vpack.c.bf16 (%p4058_p1), %v4247_v43, %v4246_v41 }
 0x3c4   : >> { %v1735_v30 = vadd.f32 %v2712_v47, %v1734_v54 }
 0x3c6   : >> { %v1759_v40 = vmax.f32 %v1735_v30, 0.0  ;;  %v4264_v30 = vmov %v4244_v63 }
 0x3c8   : >> { %v4040_v34 = vadd.f32 %v3290_v34, %v1759_v40  }
 0x3ca   : >> { %v4248_v10 = vmov %v4040_v34 }
 0x3cb   : >> { %v1736_v59 = vpop.f32.mrf.mxu0 }
 0x3cc   : >> { %v1737_v31 = vadd.f32 %v2712_v47, %v1736_v59 }
 0x3ce   : >> { %v1760_v48 = vmax.f32 %v1737_v31, 0.0  ;;  %v4263_v31 = vmov %v4245_v62 }
 0x3d0   : >> { %v4043_v35 = vadd.f32 %v3286_v35, %v1760_v48  }
 0x3d2   : >> { %v4249_v61 = vmov %v4043_v35 }
 0x3d3   : >> { %v1739_v45 = vpop.f32.mrf.mxu0  ;;  %v1786_v14 = vpack.c.bf16 (%p4058_p1), %v4249_v61, %v4248_v10 }
 0x3d4   : >> { %v1740_v32 = vadd.f32 %v2712_v47, %v1739_v45 }
 0x3d6   : >> { %v1761_v16 = vmax.f32 %v1740_v32, 0.0  ;;  %v4262_v32 = vmov %v4246_v41 }
 0x3d8   : >> { %v4046_v36 = vadd.f32 %v3282_v36, %v1761_v16   ;;  %v4270_v16 = vmov %v4238_v51 }
 0x3da   : >> { %v4250_v56 = vmov %v4046_v36 }
 0x3db   : >> { %v1741_v60 = vpop.f32.mrf.mxu0  ;;  %v4258_v36 = vmov %v4250_v56 }
 0x3dc   : >> { %v1742_v33 = vadd.f32 %v2712_v47, %v1741_v60 }
 0x3de   : >> { %v1762_v21 = vmax.f32 %v1742_v33, 0.0  ;;  %v4261_v33 = vmov %v4247_v43 }
 0x3e0   : >> { %v4049_v37 = vadd.f32 %v3278_v37, %v1762_v21   ;;  %v4269_v21 = vmov %v4239_v5 }
 0x3e2   : >> { %v4251_v52 = vmov %v4049_v37 }
 0x3e3   : >> { %v1744_v4 = vpop.f32.mrf.mxu0  ;;  %v4257_v37 = vmov %v4251_v52  ;;  %v1787_v11 = vpack.c.bf16 (%p4058_p1), %v4251_v52, %v4250_v56 }
 0x3e4   : >> { %v1745_v34 = vadd.f32 %v2712_v47, %v1744_v4 }
 0x3e6   : >> { %v1763_v22 = vmax.f32 %v1745_v34, 0.0  ;;  %v4260_v34 = vmov %v4248_v10 }
 0x3e8   : >> { %v4052_v38 = vadd.f32 %v3274_v38, %v1763_v22   ;;  %v4268_v22 = vmov %v4240_v46 }
 0x3ea   : >> { %v4252_v58 = vmov %v4052_v38 }
 0x3eb   : >> { %v1746_v6 = vpop.f32.mrf.mxu0  ;;  %v4256_v38 = vmov %v4252_v58 }
 0x3ec   : >> { %v1747_v35 = vadd.f32 %v2712_v47, %v1746_v6  ;;  %v2362_v47 = vld [vmem:[#allocation16 + $0x38] sm:$0xff] (%p4058_p1) }
 0x3ed   : > { %1857 = vmatpush.bf16.msra.mxu0 (%p4058_p1), %v2362_v47  ;;  %2419 = vmatpush.bf16.msra.mxu1 (%p4058_p1), %v2362_v47 }
 0x3ee   : >> { %v1764_v23 = vmax.f32 %v1747_v35, 0.0  ;;  %v4259_v35 = vmov %v4249_v61  ;;  %2420 = vmatpush.bf16.msra.mxu2 (%p4058_p1), %v2362_v47  ;;  %2421 = vmatpush.bf16.msra.mxu3 (%p4058_p1), %v2362_v47 }
 0x3ef   : > { %574 = sbr.rel (!%p4058_p1) target bundleno = 114 (0x72), region = 159 }
 0x3f0   : >> { %v4055_v39 = vadd.f32 %v3270_v39, %v1764_v23   ;;  %v4267_v23 = vmov %v4241_v55 }
 0x3f1   : > { %1858 = vmatpush.bf16.msra.mxu0 (%p4058_p1), %v2361_v42  ;;  %2422 = vmatpush.bf16.msra.mxu1 (%p4058_p1), %v2361_v42 }
 0x3f2   : >> { %v4253_v49 = vmov %v4055_v39  ;;  %2423 = vmatpush.bf16.msra.mxu2 (%p4058_p1), %v2361_v42  ;;  %2424 = vmatpush.bf16.msra.mxu3 (%p4058_p1), %v2361_v42 }
 0x3f3   : >> { %v4255_v39 = vmov %v4253_v49  ;;  %v1788_v15 = vpack.c.bf16 (%p4058_p1), %v4253_v49, %v4252_v58 }
 0x3f5   : > { %1859 = vmatpush.bf16.msra.mxu0 %v2360_v44  ;;  %2425 = vmatpush.bf16.msra.mxu1 %v2360_v44 }
 0x3f6   : > { %2426 = vmatpush.bf16.msra.mxu2 %v2360_v44  ;;  %2427 = vmatpush.bf16.msra.mxu3 %v2360_v44 }
 0x3f9   : > { %1860 = vmatpush.bf16.msra.mxu0 %v2359_v3  ;;  %2428 = vmatpush.bf16.msra.mxu1 %v2359_v3 }
 0x3fa   : > { %2429 = vmatpush.bf16.msra.mxu2 %v2359_v3  ;;  %2430 = vmatpush.bf16.msra.mxu3 %v2359_v3 }
 0x3fd   : > { %1861 = vmatpush.bf16.msra.mxu0 %v2358_v57  ;;  %2431 = vmatpush.bf16.msra.mxu1 %v2358_v57 }
 0x3fe   : > { %2432 = vmatpush.bf16.msra.mxu2 %v2358_v57  ;;  %2433 = vmatpush.bf16.msra.mxu3 %v2358_v57 }
 0x401   : > { %1862 = vmatpush.bf16.msra.mxu0 %v2357_v0  ;;  %2434 = vmatpush.bf16.msra.mxu1 %v2357_v0 }
 0x402   : > { %2435 = vmatpush.bf16.msra.mxu2 %v2357_v0  ;;  %2436 = vmatpush.bf16.msra.mxu3 %v2357_v0 }
 0x405   : > { %1863 = vmatpush.bf16.msra.mxu0 %v2356_v1  ;;  %2437 = vmatpush.bf16.msra.mxu1 %v2356_v1 }
 0x406   : > { %2438 = vmatpush.bf16.msra.mxu2 %v2356_v1  ;;  %2439 = vmatpush.bf16.msra.mxu3 %v2356_v1 }
 0x409   : > { %1864 = vmatpush.bf16.msra.mxu0 %v2355_v2  ;;  %2440 = vmatpush.bf16.msra.mxu1 %v2355_v2 }
 0x40a   : > { %2441 = vmatpush.bf16.msra.mxu2 %v2355_v2  ;;  %2442 = vmatpush.bf16.msra.mxu3 %v2355_v2 }
 0x40c   : > { %1865 = vmatmul.bf16.vlgmr.msra.gmra.mxu0 %v1781_v7  ;;  %1875 = vmatmul.bf16.vlgmr.msra.gmra.mxu1 %v1783_v8 }
 0x40d   : > { %1885 = vmatmul.bf16.vlgmr.msra.gmra.mxu2 %v1785_v9  ;;  %1895 = vmatmul.bf16.vlgmr.msra.gmra.mxu3 %v1787_v11 }
 0x41c   : > { %1870 = vmatmul.bf16.gmra.mxu0 %v1782_v12  ;;  %1880 = vmatmul.bf16.gmra.mxu1 %v1784_v13 }
 0x41d   : > { %1890 = vmatmul.bf16.gmra.mxu2 %v1786_v14  ;;  %1900 = vmatmul.bf16.gmra.mxu3 %v1788_v15 }
 0x489   : > { %v1866_v18 = vpop.f32.mrf.mxu0  ;;  %v1876_v19 = vpop.f32.mrf.mxu1 }
 0x48a   : > { %v1867_v20 = vadd.f32 %v2841_v17, %v1866_v18  ;;  %v1877_v24 = vadd.f32 %v2841_v17, %v1876_v19 }
 0x48c   : > { %1906 = vst [vmem:[%s3673_s3] sm:$0xff] %v1867_v20 }
 0x48d   : > { %1910 = vst [vmem:[%s3673_s3 + $0x20] sm:$0xff] %v1877_v24 }
 0x490   : > { %v1886_v25 = vpop.f32.mrf.mxu2  ;;  %v1896_v26 = vpop.f32.mrf.mxu3 }
 0x491   : > { %v1887_v27 = vadd.f32 %v2841_v17, %v1886_v25  ;;  %v1897_v36 = vadd.f32 %v2841_v17, %v1896_v26  ;;  %v1868_v37 = vpop.f32.mrf.mxu0  ;;  %v1878_v38 = vpop.f32.mrf.mxu1 }
 0x492   : > { %v1869_v39 = vadd.f32 %v2841_v17, %v1868_v37  ;;  %v1879_v51 = vadd.f32 %v2841_v17, %v1878_v38 }
 0x493   : > { %1914 = vst [vmem:[%s3673_s3 + $0x40] sm:$0xff] %v1887_v27 }
 0x494   : > { %1918 = vst [vmem:[%s3673_s3 + $0x60] sm:$0xff] %v1897_v36 }
 0x495   : > { %1907 = vst [vmem:[%s3673_s3 + $0x8] sm:$0xff] %v1869_v39 }
 0x496   : > { %1911 = vst [vmem:[%s3673_s3 + $0x28] sm:$0xff] %v1879_v51 }
 0x498   : > { %v1888_v5 = vpop.f32.mrf.mxu2  ;;  %v1898_v46 = vpop.f32.mrf.mxu3 }
 0x499   : > { %v1889_v55 = vadd.f32 %v2841_v17, %v1888_v5  ;;  %v1899_v50 = vadd.f32 %v2841_v17, %v1898_v46  ;;  %v1871_v53 = vpop.f32.mrf.mxu0  ;;  %v1881_v63 = vpop.f32.mrf.mxu1 }
 0x49a   : > { %v1872_v62 = vadd.f32 %v2841_v17, %v1871_v53  ;;  %v1882_v28 = vadd.f32 %v2841_v17, %v1881_v63 }
 0x49b   : > { %1915 = vst [vmem:[%s3673_s3 + $0x48] sm:$0xff] %v1889_v55 }
 0x49c   : > { %1919 = vst [vmem:[%s3673_s3 + $0x68] sm:$0xff] %v1899_v50 }
 0x49d   : > { %1908 = vst [vmem:[%s3673_s3 + $0x10] sm:$0xff] %v1872_v62 }
 0x49e   : > { %1912 = vst [vmem:[%s3673_s3 + $0x30] sm:$0xff] %v1882_v28 }
 0x4a0   : > { %v1891_v41 = vpop.f32.mrf.mxu2  ;;  %v1901_v29 = vpop.f32.mrf.mxu3 }
 0x4a1   : > { %v1892_v43 = vadd.f32 %v2841_v17, %v1891_v41  ;;  %v1902_v54 = vadd.f32 %v2841_v17, %v1901_v29  ;;  %v1873_v30 = vpop.f32.mrf.mxu0  ;;  %v1883_v40 = vpop.f32.mrf.mxu1 }
 0x4a2   : > { %v1874_v10 = vadd.f32 %v2841_v17, %v1873_v30  ;;  %v1884_v59 = vadd.f32 %v2841_v17, %v1883_v40 }
 0x4a3   : > { %1916 = vst [vmem:[%s3673_s3 + $0x50] sm:$0xff] %v1892_v43 }
 0x4a4   : > { %1920 = vst [vmem:[%s3673_s3 + $0x70] sm:$0xff] %v1902_v54 }
 0x4a5   : > { %1909 = vst [vmem:[%s3673_s3 + $0x18] sm:$0xff] %v1874_v10 }
 0x4a6   : > { %1913 = vst [vmem:[%s3673_s3 + $0x38] sm:$0xff] %v1884_v59 }
 0x4a8   : > { %v1893_v31 = vpop.f32.mrf.mxu2  ;;  %v1903_v48 = vpop.f32.mrf.mxu3 }
 0x4a9   : > { %v1894_v61 = vadd.f32 %v2841_v17, %v1893_v31  ;;  %v1904_v45 = vadd.f32 %v2841_v17, %v1903_v48 }
 0x4ab   : > { %1917 = vst [vmem:[%s3673_s3 + $0x58] sm:$0xff] %v1894_v61 }
 0x4ac   : > { %1921 = vst [vmem:[%s3673_s3 + $0x78] sm:$0xff] %v1904_v45 }
 0x4ad   : > { %3139 = shalt.err (!%p3136_p10)
}
 0x4ae   : > { %s3350_s10 = smov 128   ;;  %s3351_s3 = smov 8  }
 0x4af   : > { %2475 = dma.vmem_to_hbm [thread:$0]  (%p3519_p0), %s1936_s27, 2048, %s1938_s20, %s1923_s28, %s3350_s10, %s3350_s10, %s3351_s3  }
 0x4b0 PF: > { %s1952_s30 = sand.u32 1, %s3254_s13   ;;  %p4272_p11 = scmp.ge.s32.totalorder %s3266_s16, 2 }
 0x4b1   : > { %s1953_s18 = scalar_lea.sflag [#allocation4], %s1952_s30 }
 0x4b2   : > { %p2507_p12 = pnand %p4272_p11, %p3527_p6 }
 0x4b4   : > { %p2508_p2 = pneg %p2507_p12 }
 0x4b6   : > { %3249 = dma.done.wait (%p2508_p2), %s1953_s18, 2048  }
 0x4b7   : > { %3251 = vsyncadd (%p2508_p2), %s1953_s18, 4294965248  ;;  %s4273_s4 = sld [smem:[#allocation25_spill]]  ;;  %p29_p4 = scmp.ge.s32.totalorder %s3495_s29, 4  }
 0x4b8   : > { %s4274_s13 = smov %s3258_s14  ;;  %s4275_s14 = smov %s3262_s15 }
 0x4b9   : > { %s4277_s16 = smov %s3495_s29  ;;  %31 = sbr.rel (!%p29_p4) target bundleno = 19 (0x13), region = 170 }
 0x4bd   : > { %s4276_s15 = smov %s4273_s4 }
 0x4be   :  { %1959 = vsyncpa [#allocation3], 1 }
 0x4bf   :  { %1961 = vsyncpa [#allocation3 + $0x1], 1 }
 0x4c0   :  { %1962 = vsyncpa [#allocation6], 1 }
 0x4c1   :  { %1964 = vsyncpa [#allocation6 + $0x1], 1 }
 0x4c2   :  { %1965 = vsyncpa [#allocation9], 1 }
 0x4c3   :  { %1966 = vsyncpa [#allocation12], 1 }
 0x4c4   :  { %1967 = vsyncpa [#allocation15], 1 }
 0x4c5   :  { %1968 = vsyncpa [#allocation4], 1 }
 0x4c6   :  { %1970 = vsyncpa [#allocation4 + $0x1], 1 }

// kernel: tpu_custom_call.1
= control target key start
LH: loop header
LB: loop body
LE: loop exit
PB: predicated region body
PF: predicated region fallthrough
CT: control target
= control target key end

     0   :  { %s4183_s0 = inlined_call_operand.hbm [shape: bf16[2,128,128], index: 0, kind: input, shape index: {}]   ;;  %s4184_s1 = inlined_call_operand.hbm [shape: f32[2,128,128], index: 1, kind: input, shape index: {}]   ;;  %s4185_s2 = inlined_call_operand.hbm [shape: bf16[7,128,128], index: 2, kind: input, shape index: {}]   ;;  %s4186_s3 = inlined_call_operand.hbm [shape: f32[7,1,128], index: 3, kind: input, shape index: {}]   ;;  %s4187_s4 = inlined_call_operand.hbm [shape: bf16[7,128,128], index: 4, kind: input, shape index: {}]   ;;  %s4188_s5 = inlined_call_operand.hbm [shape: f32[7,1,128], index: 5, kind: input, shape index: {}]   ;;  %s4189_s6 = inlined_call_operand.hbm [shape: bf16[7,128,128], index: 6, kind: input, shape index: {}]   ;;  %s4190_s7 = inlined_call_operand.hbm [shape: f32[7,1,128], index: 7, kind: input, shape index: {}]   ;;  %s4191_s8 = inlined_call_operand.hbm [shape: bf16[128,128], index: 8, kind: input, shape index: {}]   ;;  %s4192_s9 = inlined_call_operand.vmem [shape: f32[1,128], index: 9, kind: input, shape index: {}]   ;;  %s4193_s10 = inlined_call_operand.hbm [shape: f32[2,128,128], index: 10, kind: output, shape index: {}]  }
   0x1   :  { %4198 = sst [smem:[#allocation26_spill]] %s4185_s2 }
   0x2   :  { %4199 = sst [smem:[#allocation27_spill]] %s4186_s3 }
   0x3   :  { %4200 = sst [smem:[#allocation28_spill]] %s4187_s4 }
   0x4   :  { %4201 = sst [smem:[#allocation29_spill]] %s4188_s5 }
   0x5   :  { %4202 = sst [smem:[#allocation30_spill]] %s4189_s6 }
   0x6   :  { %4203 = sst [smem:[#allocation31_spill]] %s4190_s7 }
   0x7   :  { %4204 = sst [smem:[#allocation32_spill]] %s4191_s8 }
   0x8   :  { %4205 = sst [smem:[#allocation33_spill]] %s4193_s10 }
   0x9   :  { %15 = vsyncpa [#allocation3], 0 }
   0xa   :  { %17 = vsyncpa [#allocation3 + $0x1], 0 }
   0xb   :  { %18 = vsyncpa [#allocation6], 0 }
   0xc   :  { %20 = vsyncpa [#allocation6 + $0x1], 0 }
   0xd   :  { %21 = vsyncpa [#allocation9], 0 }
   0xe   :  { %22 = vsyncpa [#allocation12], 0 }
   0xf   :  { %23 = vsyncpa [#allocation15], 0 }
  0x10   :  { %24 = vsyncpa [#allocation4], 0 }
  0x11   :  { %26 = vsyncpa [#allocation4 + $0x1], 0  ;;  %s3407_s13 = smov 0   ;;  %s3409_s14 = smov 0  }
  0x12   :  { %s3411_s15 = smov 0   ;;  %s3413_s16 = smov 0  }
  0x13 LB: > { %s4206_s2 = sld [smem:[#allocation26_spill]]  ;;  %s3431_s20 = sadd.s32 4294967295, %s3266_s16   ;;  %s3266_s16 = sphi %s3413_s16, %s4277_s16   ;;  %s3262_s15 = sphi %s3411_s15, %s4276_s15   ;;  %s3258_s14 = sphi %s3409_s14, %s4275_s14   ;;  %s3254_s13 = sphi %s3407_s13, %s4274_s13  }
  0x14   : > { %p2163_p0 = scmp.ge.s32.totalorder %s3266_s16, 1  ;;  %p53_p1 = scmp.eq.s32.totalorder %s3431_s20, 0 }
  0x15   : > { %p283_p2 = scmp.lt.s32.totalorder %s3266_s16, 3  ;;  %s3336_s22 = smov [#allocation7]  }
  0x16   : > { %s296_s23 = sshll.u32 %s3336_s22, 4  ;;  %s4208_s3 = sld [smem:[#allocation27_spill]]  ;;  %s297_s23 = int_to_ptr.vmem [resolvable:$true] %s296_s23 }
  0x17   : > { %p3436_p3 = pnand %p2163_p0, %p283_p2  ;;  %s3337_s28 = smov [#allocation8]  }
  0x18   : > { %s310_s29 = sshll.u32 %s3337_s28, 4  ;;  %s4195_s30 = smov 64   ;;  %s311_s29 = int_to_ptr.vmem [resolvable:$true] %s310_s29 }
  0x19   : > { %s294_s19 = sshll.u32 %s4206_s2, 4  ;;  %p2477_p4 = pneg %p3436_p3  ;;  %s295_s19 = int_to_ptr.hbm [resolvable:$true] %s294_s19 }
  0x1a   : > { %s4197_s11 = smov 4   ;;  %s3340_s12 = smov 16  }
  0x1b   : > { %p3448_p6 = pnand %p2477_p4, %p53_p1  ;;  %s3341_s17 = smov 1  }
  0x1c   : > { %s308_s26 = sshll.u32 %s4208_s3, 4  ;;  %s4210_s5 = sld [smem:[#allocation29_spill]]  ;;  %s309_s26 = int_to_ptr.hbm [resolvable:$true] %s308_s26 }
  0x1d   : > { %2480 = dma.hbm_to_vmem [thread:$0]  (!%p3448_p6), %s295_s19, 7168, %s297_s23, [#allocation6], %s4195_s30, %s4195_s30, %s4197_s11  }
  0x1e   : > { %2483 = dma.hbm_to_vmem [thread:$0]  (!%p3448_p6), %s309_s26, 112, %s311_s29, [#allocation9], %s3340_s12, %s3340_s12, %s3341_s17  }
  0x1f   : > { %s3342_s25 = smov [#allocation11]   ;;  %s4211_s7 = sld [smem:[#allocation31_spill]] }
  0x20   : > { %s338_s28 = sshll.u32 %s3342_s25, 4  ;;  %s3343_s19 = smov [#allocation14]   ;;  %s339_s28 = int_to_ptr.vmem [resolvable:$true] %s338_s28 }
  0x21   : > { %s366_s23 = sshll.u32 %s3343_s19, 4  ;;  %s4212_s4 = sld [smem:[#allocation28_spill]]  ;;  %s367_s23 = int_to_ptr.vmem [resolvable:$true] %s366_s23 }
  0x22   : > { %s336_s24 = sshll.u32 %s4210_s5, 4  ;;  %s4213_s6 = sld [smem:[#allocation30_spill]]  ;;  %s337_s24 = int_to_ptr.hbm [resolvable:$true] %s336_s24 }
  0x23   : > { %2489 = dma.hbm_to_vmem [thread:$0]  (!%p3448_p6), %s337_s24, 112, %s339_s28, [#allocation12], %s3340_s12, %s3340_s12, %s3341_s17  }
  0x24   : > { %s3344_s3 = smov [#allocation10]   ;;  %s4214_s30 = smov 64  }
  0x25   : > { %s364_s10 = sshll.u32 %s4211_s7, 4  ;;  %s324_s24 = sshll.u32 %s3344_s3, 4  ;;  %s365_s10 = int_to_ptr.hbm [resolvable:$true] %s364_s10  ;;  %s325_s24 = int_to_ptr.vmem [resolvable:$true] %s324_s24 }
  0x26   : > { %2495 = dma.hbm_to_vmem [thread:$0]  (!%p3448_p6), %s365_s10, 112, %s367_s23, [#allocation15], %s3340_s12, %s3340_s12, %s3341_s17  }
  0x27   : > { %s322_s29 = sshll.u32 %s4212_s4, 4  ;;  %s3345_s10 = smov [#allocation13]   ;;  %s323_s29 = int_to_ptr.hbm [resolvable:$true] %s322_s29 }
  0x28   : > { %s350_s2 = sshll.u32 %s4213_s6, 4  ;;  %s352_s12 = sshll.u32 %s3345_s10, 4  ;;  %s351_s2 = int_to_ptr.hbm [resolvable:$true] %s350_s2  ;;  %s353_s12 = int_to_ptr.vmem [resolvable:$true] %s352_s12 }
  0x29   : > { %2486 = dma.hbm_to_vmem [thread:$0]  (!%p3448_p6), %s323_s29, 7168, %s325_s24, [#allocation9], %s4214_s30, %s4214_s30, %s4197_s11  }
  0x2a   : > { %s4215_s8 = sld [smem:[#allocation32_spill]]  ;;  %s3346_s19 = smov [#allocation16]  }
  0x2b   : > { %2492 = dma.hbm_to_vmem [thread:$0]  (!%p3448_p6), %s351_s2, 7168, %s353_s12, [#allocation12], %s4214_s30, %s4214_s30, %s4197_s11  }
  0x2c   : > { %s380_s23 = sshll.u32 %s3346_s19, 4  ;;  %s2162_s26 = sadd.s32 4294967294, %s3266_s16   ;;  %s381_s23 = int_to_ptr.vmem [resolvable:$true] %s380_s23 }
  0x2d   : > { %s3495_s29 = sadd.s32 1, %s3266_s16   ;;  %s39_s18 = sadd.s32 1, %s3262_s15 }
  0x2e   : > { %s36_s22 = ssub.s32 %s3266_s16, %s3495_s29  ;;  %p46_p7 = scmp.ne.s32.totalorder %s3262_s15, %s3258_s14 }
  0x2f   : > { %p37_p8 = scmp.eq.s32.totalorder %s36_s22, 0  ;;  %p47_p9 = scmp.eq.s32.totalorder %s3266_s16, 0 }
  0x30   : > { %s378_s28 = sshll.u32 %s4215_s8, 4  ;;  %p52_p10 = scmp.ne.s32.totalorder %s3258_s14, %s3254_s13  ;;  %s379_s28 = int_to_ptr.hbm [resolvable:$true] %s378_s28 }
  0x31   : > { %2498 = dma.hbm_to_vmem [thread:$0]  (!%p3448_p6), %s379_s28, 1024, %s381_s23, [#allocation15], %s4214_s30, %s4214_s30, %s4197_s11  }
  0x32   : > { %p270_p11 = scmp.eq.s32.totalorder %s3431_s20, 1  ;;  %p3509_p12 = por %p47_p9, %p46_p7 }
  0x33   : > { %s3507_s2 = scalar_select %p37_p8, %s3262_s15, %s39_s18  }
  0x34   : > { %p3515_p13 = por %p53_p1, %p52_p10  ;;  %p3519_p0 = por %p270_p11, %p46_p7 }
  0x35   : > { %4216 = sst [smem:[#allocation25_spill]] %s3507_s2  ;;  %p276_p2 = scmp.eq.s32.totalorder %s2162_s26, 1 }
  0x36   : > { %p2517_p4 = scmp.lt.s32.totalorder %s3266_s16, 2  ;;  %s3525_s10 = sand.u32 1, %s3262_s15  }
  0x37   : > { %p3527_p6 = por %p276_p2, %p52_p10  ;;  %s2172_s17 = sshll.u32 %s3525_s10, 6 }
  0x38   : > { %s2326_s25 = sshll.u32 %s3266_s16, 6  ;;  %s401_s22 = scalar_lea.vmem [#allocation2], %s2172_s17 }
  0x39   : > { %s406_s23 = scalar_lea.hbm %s4183_s0, %s2326_s25  ;;  %s409_s11 = sshll.u32 %s401_s22, 4  ;;  %s410_s11 = int_to_ptr.vmem [resolvable:$true] %s409_s11 }
  0x3a   : > { %s407_s18 = sshll.u32 %s406_s23, 4  ;;  %p3538_p7 = pnand %p2517_p4, %p3509_p12  ;;  %s408_s18 = int_to_ptr.hbm [resolvable:$true] %s407_s18 }
  0x3b   : > { %s419_s4 = sand.u32 1, %s3266_s16   ;;  %s2175_s5 = sshll.u32 %s3525_s10, 7 }
  0x3c   : > { %s398_s6 = scalar_lea.sflag [#allocation3], %s3525_s10  ;;  %s3052_s7 = sshra.s32 %s408_s18, 4  ;;  %s3053_s7 = int_to_ptr.hbm [resolvable:$true] %s3052_s7 }
  0x3d   : > { %s3054_s8 = scalar_lea.hbm %s3053_s7, 64  ;;  %p3056_p9 = pneg %p3538_p7 }
  0x3e   : > { %p3055_p8 = scmp.ne.s32.totalorder %s3053_s7, %s3054_s8  ;;  %s3059_s25 = scalar_lea.hbm %s4183_s0, 128 }
  0x3f   : > { %p3060_p12 = scmp.lt.s32.totalorder %s3053_s7, %s4183_s0  ;;  %p3061_p2 = scmp.lt.s32.totalorder %s3059_s25, %s3054_s8 }
  0x40   : > { %p3057_p10 = pnand %p3056_p9, %p3055_p8 }
  0x41   : > { %p3062_p4 = por %p3061_p2, %p3060_p12 }
  0x42   : > { %p3058_p11 = pneg %p3057_p10 }
  0x44   : > { %p3063_p5 = pnand %p3062_p4, %p3058_p11 }
  0x46   : > { %3066 = shalt.err (!%p3063_p5)
}
  0x47   : > { %s4222_s10 = smov 4   ;;  %s2327_s23 = sshll.u32 %s3266_s16, 7 }
  0x48   : > { %2502 = dma.hbm_to_vmem [thread:$0]  (!%p3538_p7), %s408_s18, 1024, %s410_s11, %s398_s6, %s4214_s30, %s4214_s30, %s4222_s10  }
  0x49   : > { %s423_s22 = scalar_lea.vmem [#allocation5], %s2175_s5  ;;  %s428_s28 = scalar_lea.hbm %s4184_s1, %s2327_s23 }
  0x4a   : > { %s431_s27 = sshll.u32 %s423_s22, 4  ;;  %s429_s7 = sshll.u32 %s428_s28, 4  ;;  %s432_s27 = int_to_ptr.vmem [resolvable:$true] %s431_s27  ;;  %s430_s7 = int_to_ptr.hbm [resolvable:$true] %s429_s7 }
  0x4b   : > { %s420_s8 = scalar_lea.sflag [#allocation6], %s419_s4  ;;  %s3082_s25 = sshra.s32 %s430_s7, 4  ;;  %s3083_s25 = int_to_ptr.hbm [resolvable:$true] %s3082_s25 }
  0x4c   : > { %s3084_s19 = scalar_lea.hbm %s3083_s25, 128  ;;  %s3089_s5 = scalar_lea.hbm %s4184_s1, 256 }
  0x4d   : > { %p3085_p5 = scmp.ne.s32.totalorder %s3083_s25, %s3084_s19  ;;  %p3090_p11 = scmp.lt.s32.totalorder %s3083_s25, %s4184_s1 }
  0x4e   : > { %p3091_p12 = scmp.lt.s32.totalorder %s3089_s5, %s3084_s19 }
  0x4f   : > { %p3087_p8 = pnand %p3085_p5, %p3056_p9 }
  0x50   : > { %p3092_p2 = por %p3091_p12, %p3090_p11 }
  0x51   : > { %p3088_p10 = pneg %p3087_p8 }
  0x53   : > { %p3093_p4 = pnand %p3092_p2, %p3088_p10 }
  0x55   : > { %3096 = shalt.err (!%p3093_p4)
}
  0x56   : > { %s3347_s4 = smov 128   ;;  %s3348_s2 = smov 8  }
  0x57   : > { %2505 = dma.hbm_to_vmem [thread:$0]  (!%p3538_p7), %s430_s7, 2048, %s432_s27, %s420_s8, %s3347_s4, %s3347_s4, %s3348_s2  }
  0x58   : > { %443 = sbr.rel (%p3436_p3) target bundleno = 1200 (0x4b0), region = 60  ;;  %s3579_s10 = sand.u32 (!%p3436_p3), 1, %s3258_s14  }
  0x59   : > { %s2179_s23 = sshll.u32 (!%p3436_p3), %s3579_s10, 6  ;;  %s446_s22 = scalar_lea.sflag (!%p3436_p3), [#allocation3], %s3579_s10 }
  0x5a   : > { %s3583_s17 = scalar_lea.vmem (!%p3436_p3), [#allocation2], %s2179_s23 }
  0x5d   : > { %3225 = dma.done.wait (%p3515_p13), %s446_s22, 1024  }
  0x5e   : > { %3227 = vsyncadd (%p3515_p13), %s446_s22, 4294966272  ;;  %s455_s21 = sand.u32 1, %s3431_s20   ;;  %s2180_s26 = sshll.u32 %s3579_s10, 7 }
  0x5f   : > { %s456_s27 = scalar_lea.sflag [#allocation6], %s455_s21  ;;  %s3593_s28 = scalar_lea.vmem [#allocation5], %s2180_s26 }
  0x60   : > { %3229 = dma.done.wait (%p3515_p13), %s456_s27, 2048  }
  0x61   : > { %3231 = vsyncadd (%p3515_p13), %s456_s27, 4294965248 }
  0x62   : > { %3233 = dma.done.wait (%p53_p1), [#allocation6], 7168  }
  0x63   : > { %3235 = vsyncadd (%p53_p1), [#allocation6], 4294960128 }
  0x64   : > { %3237 = dma.done.wait (%p53_p1), [#allocation9], 7280  }
  0x65   : > { %3239 = vsyncadd (%p53_p1), [#allocation9], 4294960016 }
  0x66   : > { %3241 = dma.done.wait (%p53_p1), [#allocation12], 7280  }
  0x67   : > { %3243 = vsyncadd (%p53_p1), [#allocation12], 4294960016 }
  0x68   : > { %3245 = dma.done.wait (%p53_p1), [#allocation15], 1136  }
  0x69   : > { %3247 = vsyncadd (%p53_p1), [#allocation15], 4294966160  ;;  %v3616_v0 = vld [vmem:[%s3583_s17] sm:$0xff]   ;;  %v3619_v1 = vld [vmem:[%s3583_s17 + $0x8] sm:$0xff]   ;;  %s3673_s3 = scalar_lea.vmem [#allocation17], %s2180_s26  ;;  %s3707_s7 = smov 0  }
  0x6a   : > { %v3622_v2 = vld [vmem:[%s3583_s17 + $0x10] sm:$0xff]   ;;  %v3629_v7 = vld [vmem:[%s3583_s17 + $0x18] sm:$0xff]   ;;  %v3632_v8 = vld [vmem:[%s3583_s17 + $0x20] sm:$0xff]  }
  0x6b   : > { %v3635_v9 = vld [vmem:[%s3583_s17 + $0x28] sm:$0xff]   ;;  %v2375_v11 = vunpack.c.h.bf16 %v3622_v2  ;;  %v2378_v12 = vunpack.c.l.bf16 %v3629_v7  ;;  %v2379_v13 = vunpack.c.h.bf16 %v3629_v7  ;;  %v3642_v14 = vld [vmem:[%s3583_s17 + $0x30] sm:$0xff]   ;;  %v3645_v15 = vld [vmem:[%s3583_s17 + $0x38] sm:$0xff]   ;;  %v2382_v17 = vunpack.c.l.bf16 %v3632_v8 }
  0x6c   : > { %v554_v16 = vld [vmem:[%s3593_s28] sm:$0xff]   ;;  %v2383_v18 = vunpack.c.h.bf16 %v3632_v8  ;;  %v2386_v19 = vunpack.c.l.bf16 %v3635_v9  ;;  %v2387_v20 = vunpack.c.h.bf16 %v3635_v9  ;;  %v555_v21 = vld [vmem:[%s3593_s28 + $0x8] sm:$0xff]   ;;  %v556_v22 = vld [vmem:[%s3593_s28 + $0x10] sm:$0xff]   ;;  %v2390_v24 = vunpack.c.l.bf16 %v3642_v14 }
  0x6d   : > { %v557_v23 = vld [vmem:[%s3593_s28 + $0x18] sm:$0xff]   ;;  %v2391_v25 = vunpack.c.h.bf16 %v3642_v14  ;;  %v2394_v26 = vunpack.c.l.bf16 %v3645_v15  ;;  %v2395_v27 = vunpack.c.h.bf16 %v3645_v15  ;;  %v558_v28 = vld [vmem:[%s3593_s28 + $0x20] sm:$0xff]   ;;  %v559_v29 = vld [vmem:[%s3593_s28 + $0x28] sm:$0xff]  }
  0x6e   : > { %v560_v30 = vld [vmem:[%s3593_s28 + $0x30] sm:$0xff]   ;;  %v561_v31 = vld [vmem:[%s3593_s28 + $0x38] sm:$0xff]   ;;  %v562_v32 = vld [vmem:[%s3593_s28 + $0x40] sm:$0xff]  }
  0x6f   : > { %v563_v33 = vld [vmem:[%s3593_s28 + $0x48] sm:$0xff]   ;;  %v564_v34 = vld [vmem:[%s3593_s28 + $0x50] sm:$0xff]   ;;  %v565_v35 = vld [vmem:[%s3593_s28 + $0x58] sm:$0xff]  }
  0x70   : > { %v566_v36 = vld [vmem:[%s3593_s28 + $0x60] sm:$0xff]   ;;  %v567_v37 = vld [vmem:[%s3593_s28 + $0x68] sm:$0xff]   ;;  %v568_v38 = vld [vmem:[%s3593_s28 + $0x70] sm:$0xff]  }
  0x71   : > { %v569_v39 = vld [vmem:[%s3593_s28 + $0x78] sm:$0xff]  }
  0x72 LB: >> { %s3761_s8 = sshll.u32 %s3334_s7, 6  ;;  %s619_s25 = scalar_lea.vmem [#allocation8], %s3334_s7  ;;  %v592_v48 = vpack.c.bf16 %v3326_v21, %v3330_v16  ;;  %v595_v49 = vpack.c.bf16 %v3302_v31, %v3306_v30  ;;  %v597_v50 = vpack.c.bf16 %v3286_v35, %v3290_v34  ;;  %v599_v51 = vpack.c.bf16 %v3270_v39, %v3274_v38  ;;  %s3334_s7 = sphi %s3707_s7, %s575_s7   ;;  %v3330_v16 = vphi %v554_v16, %v4270_v16   ;;  %v3326_v21 = vphi %v555_v21, %v4269_v21   ;;  %v3322_v22 = vphi %v556_v22, %v4268_v22   ;;  %v3318_v23 = vphi %v557_v23, %v4267_v23   ;;  %v3314_v28 = vphi %v558_v28, %v4266_v28   ;;  %v3310_v29 = vphi %v559_v29, %v4265_v29   ;;  %v3306_v30 = vphi %v560_v30, %v4264_v30   ;;  %v3302_v31 = vphi %v561_v31, %v4263_v31   ;;  %v3298_v32 = vphi %v562_v32, %v4262_v32   ;;  %v3294_v33 = vphi %v563_v33, %v4261_v33   ;;  %v3290_v34 = vphi %v564_v34, %v4260_v34   ;;  %v3286_v35 = vphi %v565_v35, %v4259_v35   ;;  %v3282_v36 = vphi %v566_v36, %v4258_v36   ;;  %v3278_v37 = vphi %v567_v37, %v4257_v37   ;;  %v3274_v38 = vphi %v568_v38, %v4256_v38   ;;  %v3270_v39 = vphi %v569_v39, %v4255_v39  }
  0x73   : >> { %s602_s19 = scalar_lea.vmem [#allocation7], %s3761_s8  ;;  %s1503_s6 = scalar_lea.vmem [#allocation11], %s3334_s7  ;;  %v598_v52 = vpack.c.bf16 %v3278_v37, %v3282_v36  ;;  %v593_v53 = vpack.c.bf16 %v3318_v23, %v3322_v22  ;;  %v596_v54 = vpack.c.bf16 %v3294_v33, %v3298_v32  ;;  %v594_v55 = vpack.c.bf16 %v3310_v29, %v3314_v28  ;;  %v2710_v57 = vld [vmem:[%s619_s25] ss:$0 sm:$0xff] }
  0x74   : >> { %v2336_v40 = vld [vmem:[%s602_s19 + $0x38] sm:$0xff]  ;;  %s1647_s11 = scalar_lea.vmem [#allocation14], %s3334_s7  ;;  %v2335_v41 = vld [vmem:[%s602_s19 + $0x30] sm:$0xff]  ;;  %v2334_v42 = vld [vmem:[%s602_s19 + $0x28] sm:$0xff]  ;;  %729 = vmatpush.bf16.xpose.msra.mxu1 %v599_v51  ;;  %v4223_v3 = vunpack.c.l.bf16 %v3616_v0  ;;  %v4224_v4 = vunpack.c.h.bf16 %v3616_v0  ;;  %v4225_v5 = vunpack.c.l.bf16 %v3619_v1  ;;  %v4226_v6 = vunpack.c.h.bf16 %v3619_v1  ;;  %s3832_s5 = scalar_lea.vmem [#allocation10], %s3761_s8 }
  0x75   : >> { %672 = vmatpush.bf16.msra.mxu0 %v2336_v40  ;;  %2403 = vmatpush.bf16.msra.mxu2 %v2336_v40  ;;  %v2333_v43 = vld [vmem:[%s602_s19 + $0x20] sm:$0xff]  ;;  %v2332_v44 = vld [vmem:[%s602_s19 + $0x18] sm:$0xff]  ;;  %v2331_v45 = vld [vmem:[%s602_s19 + $0x10] sm:$0xff]  ;;  %v4227_v10 = vunpack.c.l.bf16 %v3622_v2  ;;  %s3954_s30 = scalar_lea.vmem [#allocation13], %s3761_s8  ;;  %s575_s7 = sadd.s32 1, %s3334_s7  }
  0x76   : >> { %2404 = vmatpush.bf16.msra.mxu3 %v2336_v40  ;;  %v2330_v46 = vld [vmem:[%s602_s19 + $0x8] sm:$0xff]  ;;  %v2329_v47 = vld [vmem:[%s602_s19] sm:$0xff]  ;;  %p4058_p1 = scmp.ge.s32.totalorder %s575_s7, 7  }
  0x77   : > { %v2357_v0 = vld [vmem:[#allocation16 + $0x10] sm:$0xff] (%p4058_p1)  ;;  %v2356_v1 = vld [vmem:[#allocation16 + $0x8] sm:$0xff] (%p4058_p1)  ;;  %v2355_v2 = vld [vmem:[#allocation16] sm:$0xff] (%p4058_p1)  ;;  %s2363_s23 = sshll.u32 (%p4058_p1), %s3431_s20, 7  ;;  %s4271_s21 = sld [smem:[#allocation33_spill]] (%p4058_p1) }
  0x78   : > { %s1935_s27 = sshll.u32 (%p4058_p1), %s3673_s3, 4  ;;  %s1923_s28 = scalar_lea.sflag (%p4058_p1), [#allocation4], %s3579_s10  ;;  %s1936_s27 = int_to_ptr.vmem [resolvable:$true] %s1935_s27 }
  0x79   : >> { %673 = vmatpush.bf16.msra.mxu0 %v2335_v41  ;;  %2405 = vmatpush.bf16.msra.mxu2 %v2335_v41 }
  0x7a   : >> { %2406 = vmatpush.bf16.msra.mxu3 %v2335_v41 }
  0x7c   : >> { %730 = vmatpush.bf16.xpose.msra.mxu1 %v598_v52 }
  0x7d   : >> { %674 = vmatpush.bf16.msra.mxu0 %v2334_v42  ;;  %2407 = vmatpush.bf16.msra.mxu2 %v2334_v42  ;;  %s1934_s26 = scalar_lea.hbm (%p4058_p1), %s4271_s21, %s2363_s23 }
  0x7e   : >> { %2408 = vmatpush.bf16.msra.mxu3 %v2334_v42  ;;  %s1937_s20 = sshll.u32 (%p4058_p1), %s1934_s26, 4  ;;  %s1938_s20 = int_to_ptr.hbm [resolvable:$true] %s1937_s20 }
  0x7f   : > { %s3126_s7 = sshra.s32 (%p4058_p1), %s1938_s20, 4  ;;  %s3127_s7 = int_to_ptr.hbm [resolvable:$true] %s3126_s7 }
  0x80   : > { %s3128_s8 = scalar_lea.hbm (%p4058_p1), %s3127_s7, 128  ;;  %p3133_p9 = scmp.lt.s32.totalorder (%p4058_p1), %s3127_s7, %s4271_s21 }
  0x81   : >> { %675 = vmatpush.bf16.msra.mxu0 %v2333_v43  ;;  %2409 = vmatpush.bf16.msra.mxu2 %v2333_v43  ;;  %p3129_p3 = scmp.ne.s32.totalorder (%p4058_p1), %s3127_s7, %s3128_s8 }
  0x82   : >> { %2410 = vmatpush.bf16.msra.mxu3 %v2333_v43 }
  0x83   : > { %p3130_p13 = pnand (%p4058_p1), %p3129_p3, %p3519_p0 }
  0x84   : >> { %731 = vmatpush.bf16.xpose.msra.mxu1 %v597_v50 }
  0x85   : >> { %676 = vmatpush.bf16.msra.mxu0 %v2332_v44  ;;  %2411 = vmatpush.bf16.msra.mxu2 %v2332_v44  ;;  %p3131_p7 = pneg (%p4058_p1), %p3130_p13 }
  0x86   : >> { %2412 = vmatpush.bf16.msra.mxu3 %v2332_v44 }
  0x89   : >> { %677 = vmatpush.bf16.msra.mxu0 %v2331_v45  ;;  %2413 = vmatpush.bf16.msra.mxu2 %v2331_v45 }
  0x8a   : >> { %2414 = vmatpush.bf16.msra.mxu3 %v2331_v45 }
  0x8c   : >> { %732 = vmatpush.bf16.xpose.msra.mxu1 %v596_v54 }
  0x8d   : >> { %678 = vmatpush.bf16.msra.mxu0 %v2330_v46  ;;  %2415 = vmatpush.bf16.msra.mxu2 %v2330_v46 }
  0x8e   : >> { %2416 = vmatpush.bf16.msra.mxu3 %v2330_v46 }
  0x91   : >> { %679 = vmatpush.bf16.msra.mxu0 %v2329_v47  ;;  %2417 = vmatpush.bf16.msra.mxu2 %v2329_v47 }
  0x92   : >> { %2418 = vmatpush.bf16.msra.mxu3 %v2329_v47 }
  0x94   : >> { %680 = vmatmul.bf16.vlgmr.msra.gmra.mxu0 %v592_v48  ;;  %695 = vmatmul.bf16.vlgmr.msra.gmra.mxu2 %v595_v49 }
  0x95   : >> { %705 = vmatmul.bf16.vlgmr.msra.gmra.mxu3 %v597_v50  ;;  %1412 = vmatpush.bf16.msrb.mxu2 %v599_v51 }
  0x96   : >> { %733 = vmatpush.bf16.xpose.msra.mxu1 %v595_v49 }
  0x99   : >> { %1413 = vmatpush.bf16.msrb.mxu2 %v598_v52 }
  0x9d   : >> { %1414 = vmatpush.bf16.msrb.mxu2 %v597_v50 }
  0x9e   : >> { %734 = vmatpush.bf16.xpose.msra.mxu1 %v594_v55 }
  0xa1   : >> { %1415 = vmatpush.bf16.msrb.mxu2 %v596_v54 }
  0xa4   : >> { %685 = vmatmul.bf16.gmra.mxu0 %v593_v53  ;;  %700 = vmatmul.bf16.gmra.mxu2 %v596_v54 }
  0xa5   : >> { %710 = vmatmul.bf16.gmra.mxu3 %v598_v52  ;;  %1416 = vmatpush.bf16.msrb.mxu2 %v595_v49 }
  0xa6   : >> { %735 = vmatpush.bf16.xpose.msra.mxu1 %v593_v53 }
  0xa9   : >> { %1417 = vmatpush.bf16.msrb.mxu2 %v594_v55 }
  0xad   : >> { %1418 = vmatpush.bf16.msrb.mxu2 %v593_v53 }
  0xae   : >> { %736 = vmatpush.bf16.xpose.msra.mxu1 %v592_v48 }
  0xb1   : >> { %1419 = vmatpush.bf16.msrb.mxu2 %v592_v48 }
  0xb4   : >> { %690 = vmatmul.bf16.gmra.mxu0 %v594_v55 }
  0xb5   : >> { %715 = vmatmul.bf16.gmra.mxu3 %v599_v51 }
 0x111   : >> { %v681_v56 = vpop.f32.mrf.mxu0 }
 0x112   : >> { %v682_v59 = vadd.f32 %v2710_v57, %v681_v56 }
 0x117   : >> { %v696_v44 = vpop.f32.mrf.mxu2 }
 0x118   : >> { %v697_v50 = vadd.f32 %v2710_v57, %v696_v44  ;;  %v706_v54 = vpop.f32.mrf.mxu3 }
 0x119   : >> { %v683_v58 = vpop.f32.mrf.mxu0 }
 0x11a   : >> { %v684_v60 = vadd.f32 %v2710_v57, %v683_v58 }
 0x11c   : >> { %v721_v61 = vpack.c.bf16 %v684_v60, %v682_v59 }
 0x11e   : >> { %737 = vmatmul.bf16.vlgmr.msra.gmra.mxu1 %v721_v61 }
 0x11f   : >> { %v698_v49 = vpop.f32.mrf.mxu2 }
 0x120   : >> { %v699_v51 = vadd.f32 %v2710_v57, %v698_v49  ;;  %v708_v60 = vpop.f32.mrf.mxu3 }
 0x121   : >> { %v686_v62 = vpop.f32.mrf.mxu0 }
 0x122   : >> { %v687_v40 = vadd.f32 %v2710_v57, %v686_v62  ;;  %v724_v53 = vpack.c.bf16 %v699_v51, %v697_v50  ;;  %v707_v62 = vadd.f32 %v2710_v57, %v706_v54 }
 0x127   : >> { %v701_v52 = vpop.f32.mrf.mxu2 }
 0x128   : >> { %v702_v56 = vadd.f32 %v2710_v57, %v701_v52  ;;  %v711_v61 = vpop.f32.mrf.mxu3 }
 0x129   : >> { %v688_v63 = vpop.f32.mrf.mxu0 }
 0x12a   : >> { %v689_v41 = vadd.f32 %v2710_v57, %v688_v63  ;;  %v709_v63 = vadd.f32 %v2710_v57, %v708_v60 }
 0x12c   : >> { %v722_v42 = vpack.c.bf16 %v689_v41, %v687_v40  ;;  %v726_v40 = vpack.c.bf16 %v709_v63, %v707_v62 }
 0x12e   : >> { %742 = vmatmul.bf16.gmra.mxu1 %v722_v42  ;;  %v712_v42 = vadd.f32 %v2710_v57, %v711_v61 }
 0x12f   : >> { %v703_v55 = vpop.f32.mrf.mxu2 }
 0x130   : >> { %v704_v58 = vadd.f32 %v2710_v57, %v703_v55  ;;  %v713_v41 = vpop.f32.mrf.mxu3 }
 0x131   : >> { %v691_v43 = vpop.f32.mrf.mxu0 }
 0x132   : >> { %v692_v46 = vadd.f32 %v2710_v57, %v691_v43  ;;  %v725_v59 = vpack.c.bf16 %v704_v58, %v702_v56  ;;  %v714_v43 = vadd.f32 %v2710_v57, %v713_v41 }
 0x138   : >> { %v716_v44 = vpop.f32.mrf.mxu3 }
 0x139   : >> { %v693_v45 = vpop.f32.mrf.mxu0 }
 0x13a   : >> { %v694_v47 = vadd.f32 %v2710_v57, %v693_v45  ;;  %v727_v45 = vpack.c.bf16 %v714_v43, %v712_v42 }
 0x13c   : >> { %v723_v48 = vpack.c.bf16 %v694_v47, %v692_v46  ;;  %v717_v47 = vadd.f32 %v2710_v57, %v716_v44 }
 0x13e   : >> { %747 = vmatmul.bf16.gmra.mxu1 %v723_v48 }
 0x140   : >> { %v718_v46 = vpop.f32.mrf.mxu3 }
 0x141   : >> { %v719_v48 = vadd.f32 %v2710_v57, %v718_v46 }
 0x143   : >> { %v728_v49 = vpack.c.bf16 %v719_v48, %v717_v47 }
 0x14e   : >> { %752 = vmatmul.bf16.gmra.mxu1 %v724_v53 }
 0x15e   : >> { %757 = vmatmul.bf16.gmra.mxu1 %v725_v59 }
 0x16e   : >> { %762 = vmatmul.bf16.gmra.mxu1 %v726_v40 }
 0x17e   : >> { %767 = vmatmul.bf16.gmra.mxu1 %v727_v45 }
 0x18e   : >> { %772 = vmatmul.bf16.gmra.mxu1 %v728_v49 }
 0x19b   : >> { %v738_v50 = vpop.f32.mrf.mxu1 }
 0x19c   : >> { %v778_v51 = vpack.c.bf16 %v738_v50, %v738_v50 }
 0x19e   : >> { %v794_v52 = vxor.u32 2147516416, %v778_v51 }
 0x1a0   : >> { %v810_v53 = vunpack.c.l.bf16 %v794_v52 }
 0x1a2   : >> { %v826_v55 = vmul.f32 1.442695, %v810_v53 }
 0x1a3   : >> { %v740_v54 = vpop.f32.mrf.mxu1 }
 0x1a4   : >> { %2713 = vpow2.f32 %v826_v55  ;;  %v779_v56 = vpack.c.bf16 %v740_v54, %v740_v54 }
 0x1a6   : >> { %v795_v58 = vxor.u32 2147516416, %v779_v56 }
 0x1a8   : >> { %v811_v59 = vunpack.c.l.bf16 %v795_v58 }
 0x1aa   : >> { %v2714_v60 = vpop.eup %2713  ;;  %v828_v61 = vmul.f32 1.442695, %v811_v59 }
 0x1ab   : >> { %v858_v62 = vpack.c.bf16 %v2714_v60, %v2714_v60  ;;  %v743_v63 = vpop.f32.mrf.mxu1  ;;  %v3349_v60 = vmov 1065369472  }
 0x1ac   : >> { %2715 = vpow2.f32 %v828_v61  ;;  %v780_v40 = vpack.c.bf16 %v743_v63, %v743_v63  ;;  %v3785_v61 = vunpack.c.h.bf16 %v3349_v60 }
 0x1ad   : >> { %v874_v41 = vunpack.c.l.bf16 %v858_v62  ;;  %v3787_v62 = vunpack.c.l.bf16 %v3349_v60 }
 0x1ae   : >> { %v796_v57 = vxor.u32 2147516416, %v780_v40 }
 0x1af   : >> { %v890_v42 = vadd.f32 1.0, %v874_v41 }
 0x1b0   : >> { %v812_v43 = vunpack.c.l.bf16 %v796_v57 }
 0x1b1   : >> { %v906_v44 = vpack.c.bf16 %v890_v42, %v890_v42 }
 0x1b2   : >> { %v2716_v45 = vpop.eup %2715  ;;  %v830_v46 = vmul.f32 1.442695, %v812_v43 }
 0x1b3   : >> { %v924_v47 = vunpack.c.h.bf16 %v906_v44  ;;  %v925_v48 = vunpack.c.l.bf16 %v906_v44  ;;  %v859_v49 = vpack.c.bf16 %v2716_v45, %v2716_v45  ;;  %v745_v50 = vpop.f32.mrf.mxu1 }
 0x1b4   : >> { %2717 = vpow2.f32 %v830_v46  ;;  %v781_v51 = vpack.c.bf16 %v745_v50, %v745_v50 }
 0x1b5   : >> { %2719 = vrcp.f32 %v924_v47  ;;  %v875_v52 = vunpack.c.l.bf16 %v859_v49 }
 0x1b6   : >> { %2721 = vrcp.f32 %v925_v48  ;;  %v797_v53 = vxor.u32 2147516416, %v781_v51 }
 0x1b7   : >> { %v891_v55 = vadd.f32 1.0, %v875_v52 }
 0x1b8   : >> { %v813_v54 = vunpack.c.l.bf16 %v797_v53 }
 0x1b9   : >> { %v907_v56 = vpack.c.bf16 %v891_v55, %v891_v55 }
 0x1ba   : >> { %v2718_v58 = vpop.eup %2717  ;;  %v832_v59 = vmul.f32 1.442695, %v813_v54 }
 0x1bb   : >> { %v2720_v63 = vpop.eup %2719  ;;  %v931_v40 = vunpack.c.h.bf16 %v907_v56  ;;  %v932_v41 = vunpack.c.l.bf16 %v907_v56  ;;  %v860_v57 = vpack.c.bf16 %v2718_v58, %v2718_v58  ;;  %v748_v42 = vpop.f32.mrf.mxu1 }
 0x1bc   : >> { %v2722_v43 = vpop.eup %2721  ;;  %2723 = vpow2.f32 %v832_v59  ;;  %v782_v44 = vpack.c.bf16 %v748_v42, %v748_v42  ;;  %v927_v47 = vmul.f32 %v2720_v63, %v3785_v61 }
 0x1bd   : >> { %2725 = vrcp.f32 %v931_v40  ;;  %v876_v45 = vunpack.c.l.bf16 %v860_v57  ;;  %v929_v48 = vmul.f32 %v2722_v43, %v3787_v62 }
 0x1be   : >> { %2727 = vrcp.f32 %v932_v41  ;;  %v798_v46 = vxor.u32 2147516416, %v782_v44 }
 0x1bf   : >> { %v892_v49 = vadd.f32 1.0, %v876_v45  ;;  %v930_v55 = vpack.c.bf16 %v927_v47, %v929_v48 }
 0x1c0   : >> { %v814_v50 = vunpack.c.l.bf16 %v798_v46 }
 0x1c1   : >> { %v908_v51 = vpack.c.bf16 %v892_v49, %v892_v49  ;;  %v1036_v44 = vunpack.c.l.bf16 %v930_v55 }
 0x1c2   : >> { %v2724_v52 = vpop.eup %2723  ;;  %v834_v53 = vmul.f32 1.442695, %v814_v50 }
 0x1c3   : >> { %v2726_v54 = vpop.eup %2725  ;;  %v938_v56 = vunpack.c.h.bf16 %v908_v51  ;;  %v939_v58 = vunpack.c.l.bf16 %v908_v51  ;;  %v861_v60 = vpack.c.bf16 %v2724_v52, %v2724_v52  ;;  %v750_v59 = vpop.f32.mrf.mxu1  ;;  %v1068_v52 = vmul.f32 %v4223_v3, %v1036_v44 }
 0x1c4   : >> { %v2728_v42 = vpop.eup %2727  ;;  %2729 = vpow2.f32 %v834_v53  ;;  %v783_v40 = vpack.c.bf16 %v750_v59, %v750_v59  ;;  %v934_v41 = vmul.f32 %v2726_v54, %v3785_v61 }
 0x1c5   : >> { %2731 = vrcp.f32 %v938_v56  ;;  %v877_v63 = vunpack.c.l.bf16 %v861_v60  ;;  %v936_v57 = vmul.f32 %v2728_v42, %v3787_v62 }
 0x1c6   : >> { %2733 = vrcp.f32 %v939_v58  ;;  %v799_v43 = vxor.u32 2147516416, %v783_v40 }
 0x1c7   : >> { %v893_v45 = vadd.f32 1.0, %v877_v63  ;;  %v937_v46 = vpack.c.bf16 %v934_v41, %v936_v57 }
 0x1c8   : >> { %v815_v47 = vunpack.c.l.bf16 %v799_v43 }
 0x1c9   : >> { %v909_v48 = vpack.c.bf16 %v893_v45, %v893_v45  ;;  %v1037_v49 = vunpack.c.l.bf16 %v937_v46 }
 0x1ca   : >> { %v2730_v50 = vpop.eup %2729  ;;  %v836_v51 = vmul.f32 1.442695, %v815_v47 }
 0x1cb   : >> { %v2732_v53 = vpop.eup %2731  ;;  %v945_v59 = vunpack.c.h.bf16 %v909_v48  ;;  %v946_v54 = vunpack.c.l.bf16 %v909_v48  ;;  %v862_v56 = vpack.c.bf16 %v2730_v50, %v2730_v50  ;;  %v753_v60 = vpop.f32.mrf.mxu1  ;;  %v1069_v58 = vmul.f32 %v4224_v4, %v1037_v49 }
 0x1cc   : >> { %v2734_v42 = vpop.eup %2733  ;;  %2735 = vpow2.f32 %v836_v51  ;;  %v784_v55 = vpack.c.bf16 %v753_v60, %v753_v60  ;;  %v941_v57 = vmul.f32 %v2732_v53, %v3785_v61 }
 0x1cd   : >> { %2737 = vrcp.f32 %v945_v59  ;;  %v878_v40 = vunpack.c.l.bf16 %v862_v56  ;;  %v1084_v41 = vpack.c.bf16 %v1069_v58, %v1068_v52  ;;  %v943_v43 = vmul.f32 %v2734_v42, %v3787_v62 }
 0x1ce   : >> { %2739 = vrcp.f32 %v946_v54  ;;  %v800_v63 = vxor.u32 2147516416, %v784_v55 }
 0x1cf   : >> { %v894_v44 = vadd.f32 1.0, %v878_v40  ;;  %1420 = vmatmul.bf16.vlgmr.msrb.gmra.mxu2 %v1084_v41  ;;  %v1092_v45 = vunpack.c.l.bf16 %v1084_v41  ;;  %v944_v50 = vpack.c.bf16 %v941_v57, %v943_v43 }
 0x1d0   : >> { %v816_v46 = vunpack.c.l.bf16 %v800_v63 }
 0x1d1   : >> { %v910_v47 = vpack.c.bf16 %v894_v44, %v894_v44  ;;  %1108 = vadd.xlane.f32.xlu0 %v1092_v45  ;;  %v1038_v63 = vunpack.c.l.bf16 %v944_v50  ;;  %v1093_v45 = vunpack.c.h.bf16 %v1084_v41 }
 0x1d2   : >> { %v2736_v48 = vpop.eup %2735  ;;  %v838_v49 = vmul.f32 1.442695, %v816_v46 }
 0x1d3   : >> { %v2738_v51 = vpop.eup %2737  ;;  %v952_v60 = vunpack.c.h.bf16 %v910_v47  ;;  %v953_v59 = vunpack.c.l.bf16 %v910_v47  ;;  %v863_v56 = vpack.c.bf16 %v2736_v48, %v2736_v48  ;;  %v755_v52 = vpop.f32.mrf.mxu1 }
 0x1d4   : >> { %v2740_v54 = vpop.eup %2739  ;;  %2741 = vpow2.f32 %v838_v49  ;;  %v785_v58 = vpack.c.bf16 %v755_v52, %v755_v52  ;;  %v948_v53 = vmul.f32 %v2738_v51, %v3785_v61  ;;  %v1070_v49 = vmul.f32 %v4225_v5, %v1038_v63 }
 0x1d5   : >> { %2743 = vrcp.f32 %v952_v60  ;;  %v879_v42 = vunpack.c.l.bf16 %v863_v56  ;;  %v950_v55 = vmul.f32 %v2740_v54, %v3787_v62 }
 0x1d6   : >> { %2745 = vrcp.f32 %v953_v59  ;;  %v801_v40 = vxor.u32 2147516416, %v785_v58 }
 0x1d7   : >> { %v895_v44 = vadd.f32 1.0, %v879_v42  ;;  %v951_v57 = vpack.c.bf16 %v948_v53, %v950_v55 }
 0x1d8   : >> { %v817_v43 = vunpack.c.l.bf16 %v801_v40 }
 0x1d9   : >> { %v911_v46 = vpack.c.bf16 %v895_v44, %v895_v44  ;;  %1110 = vadd.xlane.f32.xlu0 %v1093_v45  ;;  %v1039_v47 = vunpack.c.l.bf16 %v951_v57 }
 0x1da   : >> { %v2742_v48 = vpop.eup %2741  ;;  %v840_v3 = vmul.f32 1.442695, %v817_v43 }
 0x1db   : >> { %v2744_v51 = vpop.eup %2743  ;;  %v959_v60 = vunpack.c.h.bf16 %v911_v46  ;;  %v960_v56 = vunpack.c.l.bf16 %v911_v46  ;;  %v864_v52 = vpack.c.bf16 %v2742_v48, %v2742_v48  ;;  %v758_v54 = vpop.f32.mrf.mxu1  ;;  %v1071_v50 = vmul.f32 %v4226_v6, %v1039_v47 }
 0x1dc   : >> { %v2746_v59 = vpop.eup %2745  ;;  %2747 = vpow2.f32 %v840_v3  ;;  %v786_v41 = vpack.c.bf16 %v758_v54, %v758_v54  ;;  %v955_v55 = vmul.f32 %v2744_v51, %v3785_v61 }
 0x1dd   : >> { %2749 = vrcp.f32 %v959_v60  ;;  %v880_v58 = vunpack.c.l.bf16 %v864_v52  ;;  %v1085_v53 = vpack.c.bf16 %v1071_v50, %v1070_v49  ;;  %v957_v40 = vmul.f32 %v2746_v59, %v3787_v62 }
 0x1de   : >> { %2751 = vrcp.f32 %v960_v56  ;;  %v802_v42 = vxor.u32 2147516416, %v786_v41 }
 0x1df   : >> { %v896_v63 = vadd.f32 1.0, %v880_v58  ;;  %1425 = vmatmul.bf16.gmra.mxu2 %v1085_v53  ;;  %v1094_v44 = vunpack.c.l.bf16 %v1085_v53  ;;  %v958_v47 = vpack.c.bf16 %v955_v55, %v957_v40 }
 0x1e0   : >> { %v818_v45 = vunpack.c.l.bf16 %v802_v42 }
 0x1e1   : >> { %v912_v57 = vpack.c.bf16 %v896_v63, %v896_v63  ;;  %1112 = vadd.xlane.f32.xlu1 %v1094_v44  ;;  %v1040_v58 = vunpack.c.l.bf16 %v958_v47  ;;  %v1095_v63 = vunpack.c.h.bf16 %v1085_v53 }
 0x1e2   : >> { %v2748_v43 = vpop.eup %2747  ;;  %v842_v46 = vmul.f32 1.442695, %v818_v45 }
 0x1e3   : >> { %v2750_v3 = vpop.eup %2749  ;;  %v966_v48 = vunpack.c.h.bf16 %v912_v57  ;;  %v967_v60 = vunpack.c.l.bf16 %v912_v57  ;;  %v865_v52 = vpack.c.bf16 %v2748_v43, %v2748_v43  ;;  %v760_v49 = vpop.f32.mrf.mxu1 }
 0x1e4   : >> { %v2752_v56 = vpop.eup %2751  ;;  %2753 = vpow2.f32 %v842_v46  ;;  %v787_v54 = vpack.c.bf16 %v760_v49, %v760_v49  ;;  %v962_v51 = vmul.f32 %v2750_v3, %v3785_v61  ;;  %v1072_v46 = vmul.f32 %v4227_v10, %v1040_v58 }
 0x1e5   : >> { %2755 = vrcp.f32 %v966_v48  ;;  %v881_v50 = vunpack.c.l.bf16 %v865_v52  ;;  %v964_v59 = vmul.f32 %v2752_v56, %v3787_v62 }
 0x1e6   : >> { %2757 = vrcp.f32 %v967_v60  ;;  %v803_v41 = vxor.u32 2147516416, %v787_v54 }
 0x1e7   : >> { %v897_v42 = vadd.f32 1.0, %v881_v50  ;;  %v965_v55 = vpack.c.bf16 %v962_v51, %v964_v59 }
 0x1e8   : >> { %v819_v40 = vunpack.c.l.bf16 %v803_v41 }
 0x1e9   : >> { %v913_v44 = vpack.c.bf16 %v897_v42, %v897_v42  ;;  %1114 = vadd.xlane.f32.xlu1 %v1095_v63  ;;  %v1041_v45 = vunpack.c.l.bf16 %v965_v55 }
 0x1ea   : >> { %v2754_v57 = vpop.eup %2753  ;;  %v844_v43 = vmul.f32 1.442695, %v819_v40 }
 0x1eb   : >> { %v2756_v3 = vpop.eup %2755  ;;  %v973_v48 = vunpack.c.h.bf16 %v913_v44  ;;  %v974_v52 = vunpack.c.l.bf16 %v913_v44  ;;  %v866_v49 = vpack.c.bf16 %v2754_v57, %v2754_v57  ;;  %v763_v56 = vpop.f32.mrf.mxu1  ;;  %v1073_v47 = vmul.f32 %v2375_v11, %v1041_v45 }
 0x1ec   : >> { %v2758_v60 = vpop.eup %2757  ;;  %2759 = vpow2.f32 %v844_v43  ;;  %v788_v53 = vpack.c.bf16 %v763_v56, %v763_v56  ;;  %v969_v59 = vmul.f32 %v2756_v3, %v3785_v61 }
 0x1ed   : >> { %2761 = vrcp.f32 %v973_v48  ;;  %v882_v54 = vunpack.c.l.bf16 %v866_v49  ;;  %v1086_v51 = vpack.c.bf16 %v1073_v47, %v1072_v46  ;;  %v971_v41 = vmul.f32 %v2758_v60, %v3787_v62 }
 0x1ee   : >> { %2763 = vrcp.f32 %v974_v52  ;;  %v804_v50 = vxor.u32 2147516416, %v788_v53 }
 0x1ef   : >> { %v898_v58 = vadd.f32 1.0, %v882_v54  ;;  %1430 = vmatmul.bf16.gmra.mxu2 %v1086_v51  ;;  %v1096_v42 = vunpack.c.l.bf16 %v1086_v51  ;;  %v972_v45 = vpack.c.bf16 %v969_v59, %v971_v41 }
 0x1f0   : >> { %v820_v63 = vunpack.c.l.bf16 %v804_v50 }
 0x1f1   : >> { %v914_v55 = vpack.c.bf16 %v898_v58, %v898_v58  ;;  %1116 = vadd.xlane.f32.xlu2 %v1096_v42  ;;  %v1042_v54 = vunpack.c.l.bf16 %v972_v45  ;;  %v1097_v58 = vunpack.c.h.bf16 %v1086_v51 }
 0x1f2   : >> { %v2760_v40 = vpop.eup %2759  ;;  %v846_v44 = vmul.f32 1.442695, %v820_v63 }
 0x1f3   : >> { %v2762_v57 = vpop.eup %2761  ;;  %v980_v43 = vunpack.c.h.bf16 %v914_v55  ;;  %v981_v48 = vunpack.c.l.bf16 %v914_v55  ;;  %v867_v49 = vpack.c.bf16 %v2760_v40, %v2760_v40  ;;  %v765_v46 = vpop.f32.mrf.mxu1 }
 0x1f4   : >> { %v2764_v52 = vpop.eup %2763  ;;  %2765 = vpow2.f32 %v846_v44  ;;  %v789_v56 = vpack.c.bf16 %v765_v46, %v765_v46  ;;  %v976_v3 = vmul.f32 %v2762_v57, %v3785_v61  ;;  %v1074_v44 = vmul.f32 %v2378_v12, %v1042_v54 }
 0x1f5   : >> { %2767 = vrcp.f32 %v980_v43  ;;  %v883_v47 = vunpack.c.l.bf16 %v867_v49  ;;  %v978_v60 = vmul.f32 %v2764_v52, %v3787_v62 }
 0x1f6   : >> { %2769 = vrcp.f32 %v981_v48  ;;  %v805_v53 = vxor.u32 2147516416, %v789_v56 }
 0x1f7   : >> { %v899_v50 = vadd.f32 1.0, %v883_v47  ;;  %v979_v59 = vpack.c.bf16 %v976_v3, %v978_v60 }
 0x1f8   : >> { %v821_v41 = vunpack.c.l.bf16 %v805_v53 }
 0x1f9   : >> { %v915_v42 = vpack.c.bf16 %v899_v50, %v899_v50  ;;  %1118 = vadd.xlane.f32.xlu2 %v1097_v58  ;;  %v1043_v63 = vunpack.c.l.bf16 %v979_v59 }
 0x1fa   : >> { %v2766_v55 = vpop.eup %2765  ;;  %v848_v40 = vmul.f32 1.442695, %v821_v41 }
 0x1fb   : >> { %v2768_v57 = vpop.eup %2767  ;;  %v987_v43 = vunpack.c.h.bf16 %v915_v42  ;;  %v988_v49 = vunpack.c.l.bf16 %v915_v42  ;;  %v868_v46 = vpack.c.bf16 %v2766_v55, %v2766_v55  ;;  %v768_v52 = vpop.f32.mrf.mxu1  ;;  %v1075_v45 = vmul.f32 %v2379_v13, %v1043_v63 }
 0x1fc   : >> { %v2770_v48 = vpop.eup %2769  ;;  %2771 = vpow2.f32 %v848_v40  ;;  %v790_v51 = vpack.c.bf16 %v768_v52, %v768_v52  ;;  %v983_v60 = vmul.f32 %v2768_v57, %v3785_v61 }
 0x1fd   : >> { %2773 = vrcp.f32 %v987_v43  ;;  %v884_v56 = vunpack.c.l.bf16 %v868_v46  ;;  %v1087_v3 = vpack.c.bf16 %v1075_v45, %v1074_v44  ;;  %v985_v53 = vmul.f32 %v2770_v48, %v3787_v62 }
 0x1fe   : >> { %2775 = vrcp.f32 %v988_v49  ;;  %v806_v47 = vxor.u32 2147516416, %v790_v51 }
 0x1ff   : >> { %v900_v54 = vadd.f32 1.0, %v884_v56  ;;  %1435 = vmatmul.bf16.gmra.mxu2 %v1087_v3  ;;  %v1099_v50 = vunpack.c.h.bf16 %v1087_v3  ;;  %v1098_v58 = vunpack.c.l.bf16 %v1087_v3  ;;  %v986_v55 = vpack.c.bf16 %v983_v60, %v985_v53 }
 0x200   : >> { %v822_v59 = vunpack.c.l.bf16 %v806_v47 }
 0x201   : >> { %v916_v41 = vpack.c.bf16 %v900_v54, %v900_v54  ;;  %1122 = vadd.xlane.f32.xlu1 %v1099_v50  ;;  %1120 = vadd.xlane.f32.xlu0 %v1098_v58  ;;  %v1044_v3 = vunpack.c.l.bf16 %v986_v55 }
 0x202   : >> { %v2772_v42 = vpop.eup %2771  ;;  %v850_v63 = vmul.f32 1.442695, %v822_v59 }
 0x203   : >> { %v2774_v40 = vpop.eup %2773  ;;  %v994_v43 = vunpack.c.h.bf16 %v916_v41  ;;  %v995_v44 = vunpack.c.l.bf16 %v916_v41  ;;  %v869_v49 = vpack.c.bf16 %v2772_v42, %v2772_v42  ;;  %v770_v46 = vpop.f32.mrf.mxu1  ;;  %v1076_v41 = vmul.f32 %v2382_v17, %v1044_v3  ;;  %v2841_v17 = vld [vmem:[%s4192_s9] ss:$0 sm:$0xff] (%p4058_p1) }
 0x204   : >> { %v2776_v52 = vpop.eup %2775  ;;  %2777 = vpow2.f32 %v850_v63  ;;  %v791_v57 = vpack.c.bf16 %v770_v46, %v770_v46  ;;  %v990_v45 = vmul.f32 %v2774_v40, %v3785_v61 }
 0x205   : >> { %2779 = vrcp.f32 %v994_v43  ;;  %v885_v48 = vunpack.c.l.bf16 %v869_v49  ;;  %v992_v51 = vmul.f32 %v2776_v52, %v3787_v62 }
 0x206   : >> { %2781 = vrcp.f32 %v995_v44  ;;  %v807_v56 = vxor.u32 2147516416, %v791_v57 }
 0x207   : >> { %v901_v47 = vadd.f32 1.0, %v885_v48  ;;  %v993_v54 = vpack.c.bf16 %v990_v45, %v992_v51 }
 0x208   : >> { %v823_v60 = vunpack.c.l.bf16 %v807_v56 }
 0x209   : >> { %v917_v53 = vpack.c.bf16 %v901_v47, %v901_v47  ;;  %v1045_v50 = vunpack.c.l.bf16 %v993_v54 }
 0x20a   : >> { %v2778_v58 = vpop.eup %2777  ;;  %v852_v59 = vmul.f32 1.442695, %v823_v60 }
 0x20b   : >> { %v2780_v42 = vpop.eup %2779  ;;  %v1001_v63 = vunpack.c.h.bf16 %v917_v53  ;;  %v1002_v40 = vunpack.c.l.bf16 %v917_v53  ;;  %v870_v43 = vpack.c.bf16 %v2778_v58, %v2778_v58  ;;  %v773_v49 = vpop.f32.mrf.mxu1  ;;  %v1077_v44 = vmul.f32 %v2383_v18, %v1045_v50  ;;  %v2345_v53 = vld [vmem:[%s3832_s5 + $0x38] sm:$0xff] }
 0x20c   : >> { %v2782_v46 = vpop.eup %2781  ;;  %2783 = vpow2.f32 %v852_v59  ;;  %v792_v55 = vpack.c.bf16 %v773_v49, %v773_v49  ;;  %v997_v48 = vmul.f32 %v2780_v42, %v3785_v61  ;;  %1556 = vmatpush.bf16.msrb.mxu3 %v2345_v53  ;;  %v2344_v49 = vld [vmem:[%s3832_s5 + $0x30] sm:$0xff] }
 0x20d   : >> { %2785 = vrcp.f32 %v1001_v63  ;;  %v886_v52 = vunpack.c.l.bf16 %v870_v43  ;;  %v1088_v57 = vpack.c.bf16 %v1077_v44, %v1076_v41  ;;  %v999_v51 = vmul.f32 %v2782_v46, %v3787_v62 }
 0x20e   : >> { %2787 = vrcp.f32 %v1002_v40  ;;  %v808_v45 = vxor.u32 2147516416, %v792_v55 }
 0x20f   : >> { %v902_v56 = vadd.f32 1.0, %v886_v52  ;;  %1440 = vmatmul.bf16.gmra.mxu2 %v1088_v57  ;;  %v1101_v3 = vunpack.c.h.bf16 %v1088_v57  ;;  %v1100_v47 = vunpack.c.l.bf16 %v1088_v57  ;;  %v1000_v59 = vpack.c.bf16 %v997_v48, %v999_v51 }
 0x210   : >> { %v824_v54 = vunpack.c.l.bf16 %v808_v45  ;;  %1557 = vmatpush.bf16.msrb.mxu3 %v2344_v49 }
 0x211   : >> { %v918_v60 = vpack.c.bf16 %v902_v56, %v902_v56  ;;  %1126 = vadd.xlane.f32.xlu0 %v1101_v3  ;;  %1124 = vadd.xlane.f32.xlu2 %v1100_v47  ;;  %v1046_v56 = vunpack.c.l.bf16 %v1000_v59 }
 0x212   : >> { %v2784_v50 = vpop.eup %2783  ;;  %v854_v58 = vmul.f32 1.442695, %v824_v54 }
 0x213   : >> { %v2786_v41 = vpop.eup %2785  ;;  %v1008_v42 = vunpack.c.h.bf16 %v918_v60  ;;  %v1009_v63 = vunpack.c.l.bf16 %v918_v60  ;;  %v871_v40 = vpack.c.bf16 %v2784_v50, %v2784_v50  ;;  %v775_v43 = vpop.f32.mrf.mxu1  ;;  %v1078_v50 = vmul.f32 %v2386_v19, %v1046_v56 }
 0x214   : >> { %v2788_v44 = vpop.eup %2787  ;;  %2789 = vpow2.f32 %v854_v58  ;;  %v793_v46 = vpack.c.bf16 %v775_v43, %v775_v43  ;;  %v1004_v55 = vmul.f32 %v2786_v41, %v3785_v61 }
 0x215   : >> { %2791 = vrcp.f32 %v1008_v42  ;;  %v887_v52 = vunpack.c.l.bf16 %v871_v40  ;;  %v1006_v57 = vmul.f32 %v2788_v44, %v3787_v62 }
 0x216   : >> { %2793 = vrcp.f32 %v1009_v63  ;;  %v809_v45 = vxor.u32 2147516416, %v793_v46 }
 0x217   : >> { %v903_v48 = vadd.f32 1.0, %v887_v52  ;;  %v1007_v51 = vpack.c.bf16 %v1004_v55, %v1006_v57 }
 0x218   : >> { %v825_v3 = vunpack.c.l.bf16 %v809_v45  ;;  %v2343_v45 = vld [vmem:[%s3832_s5 + $0x28] sm:$0xff] }
 0x219   : >> { %v919_v47 = vpack.c.bf16 %v903_v48, %v903_v48  ;;  %v1047_v54 = vunpack.c.l.bf16 %v1007_v51  ;;  %1558 = vmatpush.bf16.msrb.mxu3 %v2343_v45 }
 0x21a   : >> { %v2790_v60 = vpop.eup %2789  ;;  %v856_v53 = vmul.f32 1.442695, %v825_v3 }
 0x21b   : >> { %v2792_v58 = vpop.eup %2791  ;;  %v1015_v41 = vunpack.c.h.bf16 %v919_v47  ;;  %v1016_v42 = vunpack.c.l.bf16 %v919_v47  ;;  %v872_v40 = vpack.c.bf16 %v2790_v60, %v2790_v60  ;;  %v1079_v63 = vmul.f32 %v2387_v20, %v1047_v54 }
 0x21c   : >> { %v2794_v59 = vpop.eup %2793  ;;  %2795 = vpow2.f32 %v856_v53  ;;  %v1011_v44 = vmul.f32 %v2792_v58, %v3785_v61 }
 0x21d   : >> { %2797 = vrcp.f32 %v1015_v41  ;;  %v888_v43 = vunpack.c.l.bf16 %v872_v40  ;;  %v1089_v49 = vpack.c.bf16 %v1079_v63, %v1078_v50  ;;  %v1013_v57 = vmul.f32 %v2794_v59, %v3787_v62 }
 0x21e   : >> { %2799 = vrcp.f32 %v1016_v42 }
 0x21f   : >> { %v904_v46 = vadd.f32 1.0, %v888_v43  ;;  %1445 = vmatmul.bf16.gmra.mxu2 %v1089_v49  ;;  %v1103_v55 = vunpack.c.h.bf16 %v1089_v49  ;;  %v1102_v52 = vunpack.c.l.bf16 %v1089_v49  ;;  %v1014_v60 = vpack.c.bf16 %v1011_v44, %v1013_v57 }
 0x221   : >> { %v920_v56 = vpack.c.bf16 %v904_v46, %v904_v46  ;;  %1130 = vadd.xlane.f32.xlu2 %v1103_v55  ;;  %1128 = vadd.xlane.f32.xlu1 %v1102_v52  ;;  %v1048_v63 = vunpack.c.l.bf16 %v1014_v60 }
 0x222   : >> { %v2796_v48 = vpop.eup %2795 }
 0x223   : >> { %v2798_v51 = vpop.eup %2797  ;;  %v1022_v3 = vunpack.c.h.bf16 %v920_v56  ;;  %v1023_v47 = vunpack.c.l.bf16 %v920_v56  ;;  %v873_v54 = vpack.c.bf16 %v2796_v48, %v2796_v48  ;;  %v1080_v44 = vmul.f32 %v2390_v24, %v1048_v63  ;;  %v2340_v63 = vld [vmem:[%s3832_s5 + $0x10] sm:$0xff] }
 0x224   : >> { %v2800_v53 = vpop.eup %2799  ;;  %v1018_v50 = vmul.f32 %v2798_v51, %v3785_v61 }
 0x225   : >> { %2801 = vrcp.f32 %v1022_v3  ;;  %v889_v58 = vunpack.c.l.bf16 %v873_v54  ;;  %v1020_v41 = vmul.f32 %v2800_v53, %v3787_v62  ;;  %v2341_v54 = vld [vmem:[%s3832_s5 + $0x18] sm:$0xff] }
 0x226   : >> { %2803 = vrcp.f32 %v1023_v47  ;;  %v2342_v47 = vld [vmem:[%s3832_s5 + $0x20] sm:$0xff] }
 0x227   : >> { %v905_v42 = vadd.f32 1.0, %v889_v58  ;;  %v1021_v40 = vpack.c.bf16 %v1018_v50, %v1020_v41  ;;  %1559 = vmatpush.bf16.msrb.mxu3 %v2342_v47 }
 0x229   : >> { %v921_v59 = vpack.c.bf16 %v905_v42, %v905_v42  ;;  %v1049_v43 = vunpack.c.l.bf16 %v1021_v40 }
 0x22b   : >> { %v2802_v49 = vpop.eup %2801  ;;  %v1029_v46 = vunpack.c.h.bf16 %v921_v59  ;;  %v1030_v55 = vunpack.c.l.bf16 %v921_v59  ;;  %v1081_v52 = vmul.f32 %v2391_v25, %v1049_v43  ;;  %1560 = vmatpush.bf16.msrb.mxu3 %v2341_v54 }
 0x22c   : >> { %v2804_v57 = vpop.eup %2803  ;;  %v1025_v51 = vmul.f32 %v2802_v49, %v3785_v61 }
 0x22d   : >> { %2805 = vrcp.f32 %v1029_v46  ;;  %v1090_v45 = vpack.c.bf16 %v1081_v52, %v1080_v44  ;;  %v1027_v3 = vmul.f32 %v2804_v57, %v3787_v62  ;;  %v2339_v46 = vld [vmem:[%s3832_s5 + $0x8] sm:$0xff]  ;;  %v2338_v52 = vld [vmem:[%s3832_s5] sm:$0xff] }
 0x22e   : >> { %2807 = vrcp.f32 %v1030_v55 }
 0x22f   : >> { %1450 = vmatmul.bf16.gmra.mxu2 %v1090_v45  ;;  %v1105_v56 = vunpack.c.h.bf16 %v1090_v45  ;;  %v1104_v48 = vunpack.c.l.bf16 %v1090_v45  ;;  %v1028_v53 = vpack.c.bf16 %v1025_v51, %v1027_v3  ;;  %1561 = vmatpush.bf16.msrb.mxu3 %v2340_v63 }
 0x231   : >> { %1134 = vadd.xlane.f32.xlu1 %v1105_v56  ;;  %1132 = vadd.xlane.f32.xlu0 %v1104_v48  ;;  %v1050_v40 = vunpack.c.l.bf16 %v1028_v53 }
 0x233   : >> { %v2806_v60 = vpop.eup %2805  ;;  %v1082_v43 = vmul.f32 %v2394_v26, %v1050_v40  ;;  %1562 = vmatpush.bf16.msrb.mxu3 %v2339_v46 }
 0x234   : >> { %v2808_v50 = vpop.eup %2807  ;;  %v1032_v58 = vmul.f32 %v2806_v60, %v3785_v61 }
 0x235   : >> { %v1034_v41 = vmul.f32 %v2808_v50, %v3787_v62 }
 0x237   : >> { %v1035_v42 = vpack.c.bf16 %v1032_v58, %v1034_v41  ;;  %1563 = vmatpush.bf16.msrb.mxu3 %v2338_v52 }
 0x239   : >> { %v1051_v59 = vunpack.c.l.bf16 %v1035_v42 }
 0x23b   : >> { %v1083_v49 = vmul.f32 %v2395_v27, %v1051_v59 }
 0x23d   : >> { %v1091_v55 = vpack.c.bf16 %v1083_v49, %v1082_v43  ;;  %v1396_v43 = vmul.f32 1e-05, %v3330_v16 }
 0x23f   : >> { %1455 = vmatmul.bf16.gmra.mxu2 %v1091_v55  ;;  %v1107_v61 = vunpack.c.h.bf16 %v1091_v55  ;;  %v1106_v44 = vunpack.c.l.bf16 %v1091_v55 }
 0x241   : >> { %1138 = vadd.xlane.f32.xlu0 %v1107_v61  ;;  %1136 = vadd.xlane.f32.xlu2 %v1106_v44  ;;  %v1397_v44 = vmul.f32 1e-05, %v3326_v21 }
 0x244   : >> { %v1109_v62 = vpop.xlane.xlu0 %1108 }
 0x245   : >> { %v1140_v57 = vadd.f32 1e-05, %v1109_v62 }
 0x247   : >> { %2809 = vrcp.f32 %v1140_v57  ;;  %v1167_v42 = vand.u32 2147483648, %v1140_v57  ;;  %vm1161_vm1 = vweird.f32 %v1140_v57  ;;  %v1165_v63 = vand.u32 2147483647, %v1140_v57 }
 0x249   : >> { %v1168_v62 = vor.u32 1.1754944e-38, %v1167_v42  ;;  %vm1166_vm4 = vcmp.eq.f32.partialorder %v1165_v63, 8.507059e+37 }
 0x24c   : >> { %v1111_v45 = vpop.xlane.xlu0 %1110 }
 0x24d   : >> { %v2810_v56 = vpop.eup %2809  ;;  %v1141_v48 = vadd.f32 1e-05, %v1111_v45 }
 0x24e   : >> { %v1157_v51 = vmul.f32 %v2810_v56, %v1140_v57  ;;  %vm1162_vm0 = vweird.f32 %v2810_v56 }
 0x24f   : >> { %2811 = vrcp.f32 %v1141_v48  ;;  %vm3867_vm2 = vmor %vm1161_vm1, %vm1162_vm0  ;;  %v1180_v49 = vand.u32 2147483647, %v1141_v48  ;;  %v1182_v46 = vand.u32 2147483648, %v1141_v48  ;;  %vm1176_vm5 = vweird.f32 %v1141_v48 }
 0x250   : >> { %v1158_v3 = vsub.f32 1.0, %v1157_v51 }
 0x251   : >> { %vm1181_vm7 = vcmp.eq.f32.partialorder %v1180_v49, 8.507059e+37 }
 0x252   : >> { %v1159_v47 = vmul.f32 %v2810_v56, %v1158_v3  ;;  %v1421_v54 = vpop.f32.mrf.mxu2 }
 0x254   : >> { %v1113_v60 = vpop.xlane.xlu1 %1112  ;;  %v1160_v41 = vadd.f32 %v2810_v56, %v1159_v47  ;;  %v1183_v47 = vor.u32 1.1754944e-38, %v1182_v46 }
 0x255   : >> { %v2812_v53 = vpop.eup %2811  ;;  %v3864_v50 = vadd.f32 1e-05, %v1113_v60 }
 0x256   : >> { %v1172_v58 = vmul.f32 %v2812_v53, %v1141_v48  ;;  %v1164_v55 = vsel %vm3867_vm2, %v2810_v56, %v1160_v41  ;;  %vm1177_vm3 = vweird.f32 %v2812_v53 }
 0x257   : >> { %2813 = vrcp.f32 %v3864_v50  ;;  %v1169_v3 = vsel %vm1166_vm4, %v1168_v62, %v1164_v55  ;;  %vm1178_vm6 = vmor %vm1176_vm5, %vm1177_vm3  ;;  %vm1191_vm9 = vweird.f32 %v3864_v50 }
 0x258   : >> { %v1173_v40 = vsub.f32 1.0, %v1172_v58  ;;  %v1422_v58 = vadd.f32 %v1421_v54, %v1396_v43  ;;  %v1197_v54 = vand.u32 2147483648, %v3864_v50  ;;  %v1195_v43 = vand.u32 2147483647, %v3864_v50 }
 0x25a   : >> { %v1174_v61 = vmul.f32 %v2812_v53, %v1173_v40  ;;  %v1423_v52 = vpop.f32.mrf.mxu2  ;;  %v1461_v4 = vmul.f32 %v1422_v58, %v1169_v3  ;;  %vm1196_vm12 = vcmp.eq.f32.partialorder %v1195_v43, 8.507059e+37 }
 0x25b   : >> { %v1424_v41 = vadd.f32 %v1423_v52, %v1397_v44 }
 0x25c   : >> { %v1175_v45 = vadd.f32 %v2812_v53, %v1174_v61  ;;  %v1115_v57 = vpop.xlane.xlu1 %1114 }
 0x25d   : >> { %v2814_v51 = vpop.eup %2813  ;;  %v1143_v60 = vadd.f32 1e-05, %v1115_v57  ;;  %v1399_v57 = vmul.f32 1e-05, %v3318_v23 }
 0x25e   : >> { %v1187_v59 = vmul.f32 %v2814_v51, %v3864_v50  ;;  %v1179_v56 = vsel %vm1178_vm6, %v2812_v53, %v1175_v45  ;;  %vm1192_vm8 = vweird.f32 %v2814_v51 }
 0x25f   : >> { %v1184_v40 = vsel %vm1181_vm7, %v1183_v47, %v1179_v56  ;;  %2815 = vrcp.f32 %v1143_v60  ;;  %vm3882_vm10 = vmor %vm1191_vm9, %vm1192_vm8  ;;  %v1212_v44 = vand.u32 2147483648, %v1143_v60  ;;  %v1198_v47 = vor.u32 1.1754944e-38, %v1197_v54 }
 0x260   : >> { %v1188_v5 = vsub.f32 1.0, %v1187_v59  ;;  %v1462_v42 = vmul.f32 %v1424_v41, %v1184_v40  ;;  %vm1206_vm13 = vweird.f32 %v1143_v60 }
 0x261   : >> { %v1213_v41 = vor.u32 1.1754944e-38, %v1212_v44 }
 0x262   : >> { %v1189_v63 = vmul.f32 %v2814_v51, %v1188_v5  ;;  %v1426_v61 = vpop.f32.mrf.mxu2  ;;  %v1477_v48 = vpack.c.bf16 %v1462_v42, %v1461_v4  ;;  %v1398_v4 = vmul.f32 1e-05, %v3322_v22 }
 0x264   : >> { %v1117_v6 = vpop.xlane.xlu2 %1116  ;;  %1564 = vmatmul.bf16.vlgmr.msrb.gmra.mxu3 %v1477_v48  ;;  %v1190_v46 = vadd.f32 %v2814_v51, %v1189_v63  ;;  %v1427_v42 = vadd.f32 %v1426_v61, %v1398_v4 }
 0x265   : >> { %v2816_v55 = vpop.eup %2815  ;;  %v3876_v62 = vadd.f32 1e-05, %v1117_v6  ;;  %v1210_v6 = vand.u32 2147483647, %v1143_v60 }
 0x266   : >> { %v1202_v49 = vmul.f32 %v2816_v55, %v1143_v60  ;;  %v1194_v52 = vsel %vm3882_vm10, %v2814_v51, %v1190_v46  ;;  %vm1207_vm11 = vweird.f32 %v2816_v55 }
 0x267   : >> { %2817 = vrcp.f32 %v3876_v62  ;;  %v1199_v56 = vsel %vm1196_vm12, %v1198_v47, %v1194_v52  ;;  %vm1208_vm14 = vmor %vm1206_vm13, %vm1207_vm11  ;;  %vm1211_vm15 = vcmp.eq.f32.partialorder %v1210_v6, 8.507059e+37  ;;  %vm1221_vm1 = vweird.f32 %v3876_v62 }
 0x268   : >> { %v1203_v53 = vsub.f32 1.0, %v1202_v49  ;;  %v1463_v46 = vmul.f32 %v1427_v42, %v1199_v56  ;;  %v1400_v47 = vmul.f32 1e-05, %v3314_v28 }
 0x26a   : >> { %v1204_v45 = vmul.f32 %v2816_v55, %v1203_v53  ;;  %v1428_v3 = vpop.f32.mrf.mxu2 }
 0x26b   : >> { %v1429_v48 = vadd.f32 %v1428_v3, %v1399_v57  ;;  %v1225_v3 = vand.u32 2147483647, %v3876_v62 }
 0x26c   : >> { %v1205_v58 = vadd.f32 %v2816_v55, %v1204_v45  ;;  %v1119_v50 = vpop.xlane.xlu2 %1118 }
 0x26d   : >> { %v2818_v59 = vpop.eup %2817  ;;  %v1145_v40 = vadd.f32 1e-05, %v1119_v50  ;;  %vm1226_vm4 = vcmp.eq.f32.partialorder %v1225_v3, 8.507059e+37 }
 0x26e   : >> { %v1217_v63 = vmul.f32 %v2818_v59, %v3876_v62  ;;  %v1209_v51 = vsel %vm1208_vm14, %v2816_v55, %v1205_v58  ;;  %vm1222_vm0 = vweird.f32 %v2818_v59  ;;  %v1227_v55 = vand.u32 2147483648, %v3876_v62 }
 0x26f   : >> { %v1214_v49 = vsel %vm1211_vm15, %v1213_v41, %v1209_v51  ;;  %2819 = vrcp.f32 %v1145_v40  ;;  %vm1223_vm2 = vmor %vm1221_vm1, %vm1222_vm0  ;;  %v1240_v58 = vand.u32 2147483647, %v1145_v40  ;;  %v1401_v41 = vmul.f32 1e-05, %v3310_v29 }
 0x270   : >> { %v1218_v53 = vsub.f32 1.0, %v1217_v63  ;;  %v1464_v54 = vmul.f32 %v1429_v48, %v1214_v49  ;;  %v1228_v63 = vor.u32 1.1754944e-38, %v1227_v55  ;;  %vm1236_vm5 = vweird.f32 %v1145_v40 }
 0x271   : >> { %vm1241_vm7 = vcmp.eq.f32.partialorder %v1240_v58, 8.507059e+37 }
 0x272   : >> { %v1219_v43 = vmul.f32 %v2818_v59, %v1218_v53  ;;  %v1431_v5 = vpop.f32.mrf.mxu2  ;;  %v1478_v60 = vpack.c.bf16 %v1464_v54, %v1463_v46 }
 0x273   : >> { %v1432_v53 = vadd.f32 %v1431_v5, %v1400_v47 }
 0x274   : >> { %v1123_v45 = vpop.xlane.xlu1 %1122  ;;  %v1121_v10 = vpop.xlane.xlu0 %1120  ;;  %1569 = vmatmul.bf16.gmra.mxu3 %v1478_v60  ;;  %v1220_v4 = vadd.f32 %v2818_v59, %v1219_v43 }
 0x275   : >> { %v2820_v52 = vpop.eup %2819  ;;  %v3891_v6 = vadd.f32 1e-05, %v1123_v45  ;;  %v3893_v44 = vadd.f32 1e-05, %v1121_v10  ;;  %v1242_v10 = vand.u32 2147483648, %v1145_v40 }
 0x276   : >> { %v1232_v61 = vmul.f32 %v2820_v52, %v1145_v40  ;;  %v1224_v50 = vsel %vm1223_vm2, %v2818_v59, %v1220_v4  ;;  %vm1237_vm3 = vweird.f32 %v2820_v52 }
 0x277   : >> { %2821 = vrcp.f32 %v3891_v6  ;;  %v1229_v49 = vsel %vm1226_vm4, %v1228_v63, %v1224_v50  ;;  %vm1238_vm6 = vmor %vm1236_vm5, %vm1237_vm3  ;;  %v1243_v62 = vor.u32 1.1754944e-38, %v1242_v10  ;;  %vm1266_vm10 = vweird.f32 %v3891_v6 }
 0x278   : >> { %v1233_v57 = vsub.f32 1.0, %v1232_v61  ;;  %2823 = vrcp.f32 %v3893_v44  ;;  %v1465_v61 = vmul.f32 %v1432_v53, %v1229_v49  ;;  %vm1251_vm11 = vweird.f32 %v3893_v44 }
 0x279   : >> { %v1255_v49 = vand.u32 2147483647, %v3893_v44 }
 0x27a   : >> { %v1234_v56 = vmul.f32 %v2820_v52, %v1233_v57  ;;  %v1433_v42 = vpop.f32.mrf.mxu2 }
 0x27b   : >> { %v1434_v59 = vadd.f32 %v1433_v42, %v1401_v41  ;;  %v1403_v41 = vmul.f32 1e-05, %v3302_v31  ;;  %v1257_v42 = vand.u32 2147483648, %v3893_v44  ;;  %vm1256_vm14 = vcmp.eq.f32.partialorder %v1255_v49, 8.507059e+37 }
 0x27c   : >> { %v1235_v51 = vadd.f32 %v2820_v52, %v1234_v56 }
 0x27d   : >> { %v2822_v48 = vpop.eup %2821 }
 0x27e   : >> { %v2824_v46 = vpop.eup %2823  ;;  %v1262_v54 = vmul.f32 %v2822_v48, %v3891_v6  ;;  %v1239_v43 = vsel %vm1238_vm6, %v2820_v52, %v1235_v51  ;;  %vm1267_vm8 = vweird.f32 %v2822_v48  ;;  %v1272_v51 = vand.u32 2147483648, %v3891_v6 }
 0x27f   : >> { %v1247_v60 = vmul.f32 %v2824_v46, %v3893_v44  ;;  %v1244_v45 = vsel %vm1241_vm7, %v1243_v62, %v1239_v43  ;;  %vm1252_vm9 = vweird.f32 %v2824_v46  ;;  %vm1268_vm12 = vmor %vm1266_vm10, %vm1267_vm8  ;;  %v1270_v62 = vand.u32 2147483647, %v3891_v6 }
 0x280   : >> { %v1263_v4 = vsub.f32 1.0, %v1262_v54  ;;  %v1466_v55 = vmul.f32 %v1434_v59, %v1244_v45  ;;  %vm1253_vm13 = vmor %vm1251_vm11, %vm1252_vm9  ;;  %v1402_v54 = vmul.f32 1e-05, %v3306_v30  ;;  %v1273_v45 = vor.u32 1.1754944e-38, %v1272_v51 }
 0x281   : >> { %v1248_v57 = vsub.f32 1.0, %v1247_v60  ;;  %v1258_v60 = vor.u32 1.1754944e-38, %v1257_v42  ;;  %vm1271_vm15 = vcmp.eq.f32.partialorder %v1270_v62, 8.507059e+37 }
 0x282   : >> { %v1436_v3 = vpop.f32.mrf.mxu2  ;;  %v1479_v40 = vpack.c.bf16 %v1466_v55, %v1465_v61  ;;  %v1264_v56 = vmul.f32 %v2822_v48, %v1263_v4 }
 0x283   : >> { %v1249_v50 = vmul.f32 %v2824_v46, %v1248_v57 }
 0x284   : >> { %v1127_v63 = vpop.xlane.xlu0 %1126  ;;  %v1125_v58 = vpop.xlane.xlu2 %1124  ;;  %1574 = vmatmul.bf16.gmra.mxu3 %v1479_v40  ;;  %v1265_v47 = vadd.f32 %v2822_v48, %v1264_v56  ;;  %v1437_v40 = vadd.f32 %v1436_v3, %v1402_v54  ;;  %v1405_v54 = vmul.f32 1e-05, %v3294_v33 }
 0x285   : >> { %v3904_v10 = vadd.f32 1e-05, %v1127_v63  ;;  %v3906_v5 = vadd.f32 1e-05, %v1125_v58  ;;  %v1250_v52 = vadd.f32 %v2824_v46, %v1249_v50 }
 0x286   : >> { %v1269_v43 = vsel %vm1268_vm12, %v2822_v48, %v1265_v47 }
 0x287   : >> { %2825 = vrcp.f32 %v3904_v10  ;;  %v1254_v53 = vsel %vm1253_vm13, %v2824_v46, %v1250_v52  ;;  %v1274_v57 = vsel %vm1271_vm15, %v1273_v45, %v1269_v43  ;;  %v1287_v43 = vand.u32 2147483648, %v3906_v5 }
 0x288   : >> { %2827 = vrcp.f32 %v3906_v5  ;;  %v1259_v55 = vsel %vm1256_vm14, %v1258_v60, %v1254_v53  ;;  %vm1296_vm2 = vweird.f32 %v3904_v10  ;;  %vm1281_vm3 = vweird.f32 %v3906_v5 }
 0x289   : >> { %v1467_v46 = vmul.f32 %v1437_v40, %v1259_v55  ;;  %v1285_v60 = vand.u32 2147483647, %v3906_v5  ;;  %v1300_v45 = vand.u32 2147483647, %v3904_v10  ;;  %v1404_v55 = vmul.f32 1e-05, %v3298_v32 }
 0x28a   : >> { %v1438_v59 = vpop.f32.mrf.mxu2 }
 0x28b   : >> { %v1439_v61 = vadd.f32 %v1438_v59, %v1403_v41  ;;  %v1302_v59 = vand.u32 2147483648, %v3904_v10  ;;  %vm1286_vm6 = vcmp.eq.f32.partialorder %v1285_v60, 8.507059e+37  ;;  %vm1301_vm7 = vcmp.eq.f32.partialorder %v1300_v45, 8.507059e+37 }
 0x28d   : >> { %v2826_v4 = vpop.eup %2825  ;;  %v1468_v50 = vmul.f32 %v1439_v61, %v1274_v57 }
 0x28e   : >> { %v2828_v44 = vpop.eup %2827  ;;  %v1292_v56 = vmul.f32 %v2826_v4, %v3904_v10  ;;  %vm1297_vm0 = vweird.f32 %v2826_v4 }
 0x28f   : >> { %v1277_v6 = vmul.f32 %v2828_v44, %v3906_v5  ;;  %v1480_v52 = vpack.c.bf16 %v1468_v50, %v1467_v46  ;;  %vm1282_vm1 = vweird.f32 %v2828_v44  ;;  %vm1298_vm4 = vmor %vm1296_vm2, %vm1297_vm0  ;;  %v1303_v50 = vor.u32 1.1754944e-38, %v1302_v59 }
 0x290   : >> { %v1293_v63 = vsub.f32 1.0, %v1292_v56  ;;  %vm1283_vm5 = vmor %vm1281_vm3, %vm1282_vm1  ;;  %v1288_v56 = vor.u32 1.1754944e-38, %v1287_v43 }
 0x291   : >> { %v1278_v58 = vsub.f32 1.0, %v1277_v6 }
 0x292   : >> { %v1441_v48 = vpop.f32.mrf.mxu2  ;;  %v1294_v47 = vmul.f32 %v2826_v4, %v1293_v63 }
 0x293   : >> { %v1279_v42 = vmul.f32 %v2828_v44, %v1278_v58 }
 0x294   : >> { %v1131_v41 = vpop.xlane.xlu2 %1130  ;;  %v1129_v51 = vpop.xlane.xlu1 %1128  ;;  %1579 = vmatmul.bf16.gmra.mxu3 %v1480_v52  ;;  %v1295_v53 = vadd.f32 %v2826_v4, %v1294_v47  ;;  %v1442_v52 = vadd.f32 %v1441_v48, %v1404_v55  ;;  %v1407_v55 = vmul.f32 1e-05, %v3286_v35 }
 0x295   : >> { %v3920_v49 = vadd.f32 1e-05, %v1131_v41  ;;  %v3922_v62 = vadd.f32 1e-05, %v1129_v51  ;;  %v1280_v3 = vadd.f32 %v2828_v44, %v1279_v42 }
 0x296   : >> { %v1299_v57 = vsel %vm1298_vm4, %v2826_v4, %v1295_v53 }
 0x297   : >> { %2829 = vrcp.f32 %v3920_v49  ;;  %v1284_v61 = vsel %vm1283_vm5, %v2828_v44, %v1280_v3  ;;  %v1304_v58 = vsel %vm1301_vm7, %v1303_v50, %v1299_v57  ;;  %v1317_v57 = vand.u32 2147483648, %v3922_v62 }
 0x298   : >> { %2831 = vrcp.f32 %v3922_v62  ;;  %v1289_v63 = vsel %vm1286_vm6, %v1288_v56, %v1284_v61  ;;  %vm1326_vm10 = vweird.f32 %v3920_v49  ;;  %vm1311_vm11 = vweird.f32 %v3922_v62 }
 0x299   : >> { %v1469_v44 = vmul.f32 %v1442_v52, %v1289_v63  ;;  %v1315_v56 = vand.u32 2147483647, %v3922_v62  ;;  %v2354_v63 = vld [vmem:[%s3954_s30 + $0x38] sm:$0xff]  ;;  %v1406_v52 = vmul.f32 1e-05, %v3290_v34 }
 0x29a   : >> { %v1443_v40 = vpop.f32.mrf.mxu2  ;;  %1700 = vmatpush.bf16.msrb.mxu0 %v2354_v63  ;;  %v2351_v63 = vld [vmem:[%s3954_s30 + $0x20] sm:$0xff] }
 0x29b   : >> { %v1444_v6 = vadd.f32 %v1443_v40, %v1405_v54  ;;  %v1332_v40 = vand.u32 2147483648, %v3920_v49  ;;  %vm1316_vm14 = vcmp.eq.f32.partialorder %v1315_v56, 8.507059e+37 }
 0x29d   : >> { %v2830_v46 = vpop.eup %2829  ;;  %v1470_v42 = vmul.f32 %v1444_v6, %v1304_v58  ;;  %v1330_v6 = vand.u32 2147483647, %v3920_v49 }
 0x29e   : >> { %v2832_v5 = vpop.eup %2831  ;;  %v1322_v47 = vmul.f32 %v2830_v46, %v3920_v49  ;;  %vm1327_vm8 = vweird.f32 %v2830_v46 }
 0x29f   : >> { %v1307_v10 = vmul.f32 %v2832_v5, %v3922_v62  ;;  %v1481_v3 = vpack.c.bf16 %v1470_v42, %v1469_v44  ;;  %vm1312_vm9 = vweird.f32 %v2832_v5  ;;  %vm3948_vm12 = vmor %vm1326_vm10, %vm1327_vm8  ;;  %v1318_v42 = vor.u32 1.1754944e-38, %v1317_v57 }
 0x2a0   : >> { %v1323_v41 = vsub.f32 1.0, %v1322_v47  ;;  %vm1313_vm13 = vmor %vm1311_vm11, %vm1312_vm9  ;;  %vm1331_vm15 = vcmp.eq.f32.partialorder %v1330_v6, 8.507059e+37 }
 0x2a1   : >> { %v1308_v51 = vsub.f32 1.0, %v1307_v10  ;;  %v1333_v10 = vor.u32 1.1754944e-38, %v1332_v40 }
 0x2a2   : >> { %v1446_v4 = vpop.f32.mrf.mxu2  ;;  %v1324_v53 = vmul.f32 %v2830_v46, %v1323_v41 }
 0x2a3   : >> { %v1309_v43 = vmul.f32 %v2832_v5, %v1308_v51 }
 0x2a4   : >> { %v1135_v54 = vpop.xlane.xlu1 %1134  ;;  %v1133_v59 = vpop.xlane.xlu0 %1132  ;;  %1584 = vmatmul.bf16.gmra.mxu3 %v1481_v3  ;;  %v1325_v61 = vadd.f32 %v2830_v46, %v1324_v53  ;;  %v2353_v3 = vld [vmem:[%s3954_s30 + $0x30] sm:$0xff] }
 0x2a5   : >> { %v3936_v60 = vadd.f32 1e-05, %v1135_v54  ;;  %v3938_v45 = vadd.f32 1e-05, %v1133_v59  ;;  %v1310_v48 = vadd.f32 %v2832_v5, %v1309_v43  ;;  %v1447_v43 = vadd.f32 %v1446_v4, %v1406_v52  ;;  %1701 = vmatpush.bf16.msrb.mxu0 %v2353_v3  ;;  %v2352_v59 = vld [vmem:[%s3954_s30 + $0x28] sm:$0xff] }
 0x2a6   : >> { %v1329_v62 = vsel %vm3948_vm12, %v2830_v46, %v1325_v61 }
 0x2a7   : >> { %2833 = vrcp.f32 %v3936_v60  ;;  %v1314_v58 = vsel %vm1313_vm13, %v2832_v5, %v1310_v48  ;;  %v1334_v51 = vsel %vm1331_vm15, %v1333_v10, %v1329_v62  ;;  %v1347_v10 = vand.u32 2147483648, %v3938_v45 }
 0x2a8   : >> { %2835 = vrcp.f32 %v3938_v45  ;;  %v1319_v41 = vsel %vm1316_vm14, %v1318_v42, %v1314_v58  ;;  %v1409_v42 = vmul.f32 1e-05, %v3278_v37  ;;  %vm1356_vm2 = vweird.f32 %v3936_v60 }
 0x2a9   : >> { %v1471_v48 = vmul.f32 %v1447_v43, %v1319_v41  ;;  %1702 = vmatpush.bf16.msrb.mxu0 %v2352_v59  ;;  %v2350_v41 = vld [vmem:[%s3954_s30 + $0x18] sm:$0xff]  ;;  %vm1341_vm3 = vweird.f32 %v3938_v45  ;;  %v1360_v43 = vand.u32 2147483647, %v3936_v60 }
 0x2aa   : >> { %v1448_v47 = vpop.f32.mrf.mxu2 }
 0x2ab   : >> { %v1449_v44 = vadd.f32 %v1448_v47, %v1407_v55  ;;  %vm1361_vm7 = vcmp.eq.f32.partialorder %v1360_v43, 8.507059e+37 }
 0x2ad   : >> { %v2834_v49 = vpop.eup %2833  ;;  %v1472_v54 = vmul.f32 %v1449_v44, %v1334_v51  ;;  %v1362_v44 = vand.u32 2147483648, %v3936_v60  ;;  %1703 = vmatpush.bf16.msrb.mxu0 %v2351_v63  ;;  %v1345_v51 = vand.u32 2147483647, %v3938_v45 }
 0x2ae   : >> { %v2836_v53 = vpop.eup %2835  ;;  %v1352_v5 = vmul.f32 %v2834_v49, %v3936_v60  ;;  %vm1357_vm0 = vweird.f32 %v2834_v49 }
 0x2af   : >> { %v1337_v46 = vmul.f32 %v2836_v53, %v3938_v45  ;;  %v1482_v40 = vpack.c.bf16 %v1472_v54, %v1471_v48  ;;  %vm1342_vm1 = vweird.f32 %v2836_v53  ;;  %vm3978_vm4 = vmor %vm1356_vm2, %vm1357_vm0  ;;  %v1408_v54 = vmul.f32 1e-05, %v3282_v36  ;;  %v2349_v45 = vld [vmem:[%s3954_s30 + $0x10] sm:$0xff] }
 0x2b0   : >> { %v1353_v61 = vsub.f32 1.0, %v1352_v5  ;;  %vm1343_vm5 = vmor %vm1341_vm3, %vm1342_vm1  ;;  %v1348_v48 = vor.u32 1.1754944e-38, %v1347_v10  ;;  %vm1346_vm6 = vcmp.eq.f32.partialorder %v1345_v51, 8.507059e+37 }
 0x2b1   : >> { %v1338_v55 = vsub.f32 1.0, %v1337_v46  ;;  %1704 = vmatpush.bf16.msrb.mxu0 %v2350_v41 }
 0x2b2   : >> { %v1451_v57 = vpop.f32.mrf.mxu2  ;;  %v1354_v56 = vmul.f32 %v2834_v49, %v1353_v61  ;;  %v1363_v61 = vor.u32 1.1754944e-38, %v1362_v44 }
 0x2b3   : >> { %v1339_v50 = vmul.f32 %v2836_v53, %v1338_v55  ;;  %v1452_v60 = vadd.f32 %v1451_v57, %v1408_v54 }
 0x2b4   : >> { %1589 = vmatmul.bf16.gmra.mxu3 %v1482_v40  ;;  %v1139_v6 = vpop.xlane.xlu0 %1138  ;;  %v1137_v4 = vpop.xlane.xlu2 %1136  ;;  %v1355_v47 = vadd.f32 %v2834_v49, %v1354_v56 }
 0x2b5   : >> { %v3965_v58 = vadd.f32 1e-05, %v1139_v6  ;;  %v3967_v52 = vadd.f32 1e-05, %v1137_v4  ;;  %v1340_v62 = vadd.f32 %v2836_v53, %v1339_v50  ;;  %1705 = vmatpush.bf16.msrb.mxu0 %v2349_v45 }
 0x2b6   : >> { %v1359_v46 = vsel %vm3978_vm4, %v2834_v49, %v1355_v47 }
 0x2b7   : >> { %2837 = vrcp.f32 %v3965_v58  ;;  %v1344_v5 = vsel %vm1343_vm5, %v2836_v53, %v1340_v62  ;;  %v1364_v50 = vsel %vm1361_vm7, %v1363_v61, %v1359_v46  ;;  %v1377_v57 = vand.u32 2147483648, %v3967_v52 }
 0x2b8   : >> { %2839 = vrcp.f32 %v3967_v52  ;;  %v1349_v56 = vsel %vm1346_vm6, %v1348_v48, %v1344_v5  ;;  %vm1386_vm10 = vweird.f32 %v3965_v58  ;;  %v1392_v43 = vand.u32 2147483648, %v3965_v58 }
 0x2b9   : >> { %v1473_v49 = vmul.f32 %v1452_v60, %v1349_v56  ;;  %v1411_v5 = vmul.f32 1e-05, %v3270_v39  ;;  %vm1371_vm11 = vweird.f32 %v3967_v52  ;;  %v1375_v54 = vand.u32 2147483647, %v3967_v52  ;;  %v2348_v56 = vld [vmem:[%s3954_s30 + $0x8] sm:$0xff] }
 0x2ba   : >> { %v1453_v59 = vpop.f32.mrf.mxu2  ;;  %v1410_v61 = vmul.f32 1e-05, %v3274_v38  ;;  %v1393_v60 = vor.u32 1.1754944e-38, %v1392_v43  ;;  %1706 = vmatpush.bf16.msrb.mxu0 %v2348_v56 }
 0x2bb   : >> { %v1454_v55 = vadd.f32 %v1453_v59, %v1409_v42  ;;  %v1390_v59 = vand.u32 2147483647, %v3965_v58  ;;  %vm1376_vm14 = vcmp.eq.f32.partialorder %v1375_v54, 8.507059e+37 }
 0x2bd   : >> { %v2838_v40 = vpop.eup %2837  ;;  %v1474_v4 = vmul.f32 %v1454_v55, %v1364_v50  ;;  %v1378_v50 = vor.u32 1.1754944e-38, %v1377_v57  ;;  %vm1391_vm15 = vcmp.eq.f32.partialorder %v1390_v59, 8.507059e+37 }
 0x2be   : >> { %v2840_v6 = vpop.eup %2839  ;;  %v1382_v53 = vmul.f32 %v2838_v40, %v3965_v58  ;;  %vm1387_vm8 = vweird.f32 %v2838_v40 }
 0x2bf   : >> { %v1367_v63 = vmul.f32 %v2840_v6, %v3967_v52  ;;  %v1483_v42 = vpack.c.bf16 %v1474_v4, %v1473_v49  ;;  %vm1372_vm9 = vweird.f32 %v2840_v6  ;;  %vm3995_vm12 = vmor %vm1386_vm10, %vm1387_vm8 }
 0x2c0   : >> { %v1383_v62 = vsub.f32 1.0, %v1382_v53  ;;  %vm1373_vm13 = vmor %vm1371_vm11, %vm1372_vm9 }
 0x2c1   : >> { %v1368_v47 = vsub.f32 1.0, %v1367_v63 }
 0x2c2   : >> { %v1456_v10 = vpop.f32.mrf.mxu2  ;;  %v1384_v44 = vmul.f32 %v2838_v40, %v1383_v62  ;;  %v2347_v62 = vld [vmem:[%s3954_s30] sm:$0xff] }
 0x2c3   : >> { %v1369_v41 = vmul.f32 %v2840_v6, %v1368_v47  ;;  %v1457_v58 = vadd.f32 %v1456_v10, %v1410_v61  ;;  %1707 = vmatpush.bf16.msrb.mxu0 %v2347_v62 }
 0x2c4   : >> { %1594 = vmatmul.bf16.gmra.mxu3 %v1483_v42  ;;  %v1385_v3 = vadd.f32 %v2838_v40, %v1384_v44 }
 0x2c5   : >> { %v1370_v51 = vadd.f32 %v2840_v6, %v1369_v41 }
 0x2c6   : >> { %v1389_v55 = vsel %vm3995_vm12, %v2838_v40, %v1385_v3  ;;  %v2711_v40 = vld [vmem:[%s1503_s6] ss:$0 sm:$0xff]  ;;  %s3132_s6 = scalar_lea.hbm (%p4058_p1), %s4271_s21, 256 }
 0x2c7   : >> { %v1374_v48 = vsel %vm1373_vm13, %v2840_v6, %v1370_v51  ;;  %v1394_v4 = vsel %vm1391_vm15, %v1393_v60, %v1389_v55  ;;  %p3134_p5 = scmp.lt.s32.totalorder (%p4058_p1), %s3132_s6, %s3128_s8 }
 0x2c8   : >> { %v1379_v53 = vsel %vm1376_vm14, %v1378_v50, %v1374_v48 }
 0x2c9   : >> { %v1475_v6 = vmul.f32 %v1457_v58, %v1379_v53  ;;  %p3135_p8 = por (%p4058_p1), %p3134_p5, %p3133_p9 }
 0x2ca   : >> { %v1458_v45 = vpop.f32.mrf.mxu2 }
 0x2cb   : >> { %v1459_v52 = vadd.f32 %v1458_v45, %v1411_v5  ;;  %p3136_p10 = pnand (%p4058_p1), %p3135_p8, %p3131_p7 }
 0x2cd   : >> { %v1476_v63 = vmul.f32 %v1459_v52, %v1394_v4 }
 0x2cf   : >> { %v1484_v49 = vpack.c.bf16 %v1476_v63, %v1475_v6 }
 0x2d4   : >> { %1599 = vmatmul.bf16.gmra.mxu3 %v1484_v49 }
 0x2e7   : >> { %v1565_v47 = vpop.f32.mrf.mxu3 }
 0x2e8   : >> { %v1566_v42 = vadd.f32 %v2711_v40, %v1565_v47 }
 0x2ea   : >> { %v1605_v51 = vmax.f32 %v1566_v42, 0.0 }
 0x2ef   : >> { %v1567_v44 = vpop.f32.mrf.mxu3 }
 0x2f0   : >> { %v1568_v41 = vadd.f32 %v2711_v40, %v1567_v44 }
 0x2f2   : >> { %v1606_v3 = vmax.f32 %v1568_v41, 0.0 }
 0x2f4   : >> { %v1621_v57 = vpack.c.bf16 %v1606_v3, %v1605_v51 }
 0x2f6   : >> { %1708 = vmatmul.bf16.vlgmr.msrb.gmra.mxu0 %v1621_v57 }
 0x2f7   : >> { %v1570_v43 = vpop.f32.mrf.mxu3 }
 0x2f8   : >> { %v1571_v5 = vadd.f32 %v2711_v40, %v1570_v43 }
 0x2fa   : >> { %v1607_v46 = vmax.f32 %v1571_v5, 0.0 }
 0x2ff   : >> { %v1572_v54 = vpop.f32.mrf.mxu3 }
 0x300   : >> { %v1573_v10 = vadd.f32 %v2711_v40, %v1572_v54 }
 0x302   : >> { %v1608_v59 = vmax.f32 %v1573_v10, 0.0 }
 0x304   : >> { %v1622_v48 = vpack.c.bf16 %v1608_v59, %v1607_v46 }
 0x306   : >> { %1713 = vmatmul.bf16.gmra.mxu0 %v1622_v48 }
 0x307   : >> { %v1575_v61 = vpop.f32.mrf.mxu3 }
 0x308   : >> { %v1576_v55 = vadd.f32 %v2711_v40, %v1575_v61 }
 0x30a   : >> { %v1609_v50 = vmax.f32 %v1576_v55, 0.0 }
 0x30f   : >> { %v1577_v45 = vpop.f32.mrf.mxu3 }
 0x310   : >> { %v1578_v56 = vadd.f32 %v2711_v40, %v1577_v45 }
 0x312   : >> { %v1610_v60 = vmax.f32 %v1578_v56, 0.0 }
 0x314   : >> { %v1623_v52 = vpack.c.bf16 %v1610_v60, %v1609_v50 }
 0x316   : >> { %1718 = vmatmul.bf16.gmra.mxu0 %v1623_v52 }
 0x317   : >> { %v1580_v53 = vpop.f32.mrf.mxu3 }
 0x318   : >> { %v1581_v4 = vadd.f32 %v2711_v40, %v1580_v53 }
 0x31a   : >> { %v1611_v6 = vmax.f32 %v1581_v4, 0.0 }
 0x31f   : >> { %v1582_v58 = vpop.f32.mrf.mxu3 }
 0x320   : >> { %v1583_v63 = vadd.f32 %v2711_v40, %v1582_v58 }
 0x322   : >> { %v1612_v49 = vmax.f32 %v1583_v63, 0.0 }
 0x324   : >> { %v1624_v62 = vpack.c.bf16 %v1612_v49, %v1611_v6 }
 0x326   : >> { %1723 = vmatmul.bf16.gmra.mxu0 %v1624_v62 }
 0x327   : >> { %v1585_v47 = vpop.f32.mrf.mxu3 }
 0x328   : >> { %v1586_v42 = vadd.f32 %v2711_v40, %v1585_v47  ;;  %v2712_v47 = vld [vmem:[%s1647_s11] ss:$0 sm:$0xff] }
 0x32a   : >> { %v1613_v51 = vmax.f32 %v1586_v42, 0.0 }
 0x32f   : >> { %v1587_v44 = vpop.f32.mrf.mxu3 }
 0x330   : >> { %v1588_v41 = vadd.f32 %v2711_v40, %v1587_v44 }
 0x332   : >> { %v1614_v3 = vmax.f32 %v1588_v41, 0.0 }
 0x334   : >> { %v1625_v57 = vpack.c.bf16 %v1614_v3, %v1613_v51 }
 0x336   : >> { %1728 = vmatmul.bf16.gmra.mxu0 %v1625_v57 }
 0x337   : >> { %v1590_v43 = vpop.f32.mrf.mxu3 }
 0x338   : >> { %v1591_v5 = vadd.f32 %v2711_v40, %v1590_v43 }
 0x33a   : >> { %v1615_v46 = vmax.f32 %v1591_v5, 0.0 }
 0x33f   : >> { %v1592_v54 = vpop.f32.mrf.mxu3 }
 0x340   : >> { %v1593_v10 = vadd.f32 %v2711_v40, %v1592_v54 }
 0x342   : >> { %v1616_v59 = vmax.f32 %v1593_v10, 0.0 }
 0x344   : >> { %v1626_v48 = vpack.c.bf16 %v1616_v59, %v1615_v46 }
 0x346   : >> { %1733 = vmatmul.bf16.gmra.mxu0 %v1626_v48 }
 0x347   : >> { %v1595_v61 = vpop.f32.mrf.mxu3 }
 0x348   : >> { %v1596_v55 = vadd.f32 %v2711_v40, %v1595_v61 }
 0x34a   : >> { %v1617_v50 = vmax.f32 %v1596_v55, 0.0 }
 0x34f   : >> { %v1597_v45 = vpop.f32.mrf.mxu3 }
 0x350   : >> { %v1598_v56 = vadd.f32 %v2711_v40, %v1597_v45 }
 0x352   : >> { %v1618_v60 = vmax.f32 %v1598_v56, 0.0 }
 0x354   : >> { %v1627_v52 = vpack.c.bf16 %v1618_v60, %v1617_v50 }
 0x356   : >> { %1738 = vmatmul.bf16.gmra.mxu0 %v1627_v52 }
 0x357   : >> { %v1600_v53 = vpop.f32.mrf.mxu3 }
 0x358   : >> { %v1601_v4 = vadd.f32 %v2711_v40, %v1600_v53 }
 0x35a   : >> { %v1619_v6 = vmax.f32 %v1601_v4, 0.0 }
 0x35f   : >> { %v1602_v58 = vpop.f32.mrf.mxu3 }
 0x360   : >> { %v1603_v63 = vadd.f32 %v2711_v40, %v1602_v58 }
 0x362   : >> { %v1620_v49 = vmax.f32 %v1603_v63, 0.0 }
 0x364   : >> { %v1628_v62 = vpack.c.bf16 %v1620_v49, %v1619_v6 }
 0x366   : >> { %1743 = vmatmul.bf16.gmra.mxu0 %v1628_v62 }
 0x373   : >> { %v1709_v42 = vpop.f32.mrf.mxu0 }
 0x374   : >> { %v1710_v44 = vadd.f32 %v2712_v47, %v1709_v42 }
 0x376   : >> { %v1749_v41 = vmax.f32 %v1710_v44, 0.0 }
 0x378   : >> { %v4010_v16 = vadd.f32 %v3330_v16, %v1749_v41  }
 0x37a   : >> { %v4238_v51 = vmov %v4010_v16 }
 0x37b   : >> { %v1711_v3 = vpop.f32.mrf.mxu0 }
 0x37c   : >> { %v1712_v57 = vadd.f32 %v2712_v47, %v1711_v3 }
 0x37e   : >> { %v1750_v43 = vmax.f32 %v1712_v57, 0.0 }
 0x380   : >> { %v4013_v21 = vadd.f32 %v3326_v21, %v1750_v43  }
 0x382   : >> { %v4239_v5 = vmov %v4013_v21 }
 0x383   : >> { %v1714_v54 = vpop.f32.mrf.mxu0  ;;  %v1781_v7 = vpack.c.bf16 (%p4058_p1), %v4239_v5, %v4238_v51 }
 0x384   : >> { %v1715_v40 = vadd.f32 %v2712_v47, %v1714_v54 }
 0x386   : >> { %v1751_v10 = vmax.f32 %v1715_v40, 0.0 }
 0x388   : >> { %v4016_v22 = vadd.f32 %v3322_v22, %v1751_v10  }
 0x38a   : >> { %v4240_v46 = vmov %v4016_v22 }
 0x38b   : >> { %v1716_v59 = vpop.f32.mrf.mxu0 }
 0x38c   : >> { %v1717_v48 = vadd.f32 %v2712_v47, %v1716_v59 }
 0x38e   : >> { %v1752_v61 = vmax.f32 %v1717_v48, 0.0 }
 0x390   : >> { %v4019_v23 = vadd.f32 %v3318_v23, %v1752_v61  }
 0x392   : >> { %v4241_v55 = vmov %v4019_v23 }
 0x393   : >> { %v1719_v45 = vpop.f32.mrf.mxu0  ;;  %v1782_v12 = vpack.c.bf16 (%p4058_p1), %v4241_v55, %v4240_v46 }
 0x394   : >> { %v1720_v16 = vadd.f32 %v2712_v47, %v1719_v45 }
 0x396   : >> { %v1753_v56 = vmax.f32 %v1720_v16, 0.0 }
 0x398   : >> { %v4022_v28 = vadd.f32 %v3314_v28, %v1753_v56  }
 0x39a   : >> { %v4242_v50 = vmov %v4022_v28 }
 0x39b   : >> { %v1721_v60 = vpop.f32.mrf.mxu0 }
 0x39c   : >> { %v1722_v21 = vadd.f32 %v2712_v47, %v1721_v60 }
 0x39e   : >> { %v1754_v52 = vmax.f32 %v1722_v21, 0.0 }
 0x3a0   : >> { %v4025_v29 = vadd.f32 %v3310_v29, %v1754_v52  }
 0x3a2   : >> { %v4243_v53 = vmov %v4025_v29 }
 0x3a3   : >> { %v1724_v4 = vpop.f32.mrf.mxu0  ;;  %v1783_v8 = vpack.c.bf16 (%p4058_p1), %v4243_v53, %v4242_v50 }
 0x3a4   : >> { %v1725_v22 = vadd.f32 %v2712_v47, %v1724_v4 }
 0x3a6   : >> { %v1755_v58 = vmax.f32 %v1725_v22, 0.0 }
 0x3a8   : >> { %v4028_v30 = vadd.f32 %v3306_v30, %v1755_v58  }
 0x3aa   : >> { %v4244_v63 = vmov %v4028_v30 }
 0x3ab   : >> { %v1726_v6 = vpop.f32.mrf.mxu0 }
 0x3ac   : >> { %v1727_v23 = vadd.f32 %v2712_v47, %v1726_v6 }
 0x3ae   : >> { %v1756_v49 = vmax.f32 %v1727_v23, 0.0 }
 0x3b0   : >> { %v4031_v31 = vadd.f32 %v3302_v31, %v1756_v49  }
 0x3b2   : >> { %v4245_v62 = vmov %v4031_v31 }
 0x3b3   : >> { %v1729_v42 = vpop.f32.mrf.mxu0  ;;  %v1784_v13 = vpack.c.bf16 (%p4058_p1), %v4245_v62, %v4244_v63 }
 0x3b4   : >> { %v1730_v28 = vadd.f32 %v2712_v47, %v1729_v42  ;;  %v2361_v42 = vld [vmem:[#allocation16 + $0x30] sm:$0xff] (%p4058_p1) }
 0x3b6   : >> { %v1757_v44 = vmax.f32 %v1730_v28, 0.0  ;;  %v4266_v28 = vmov %v4242_v50 }
 0x3b8   : >> { %v4034_v32 = vadd.f32 %v3298_v32, %v1757_v44   ;;  %v2360_v44 = vld [vmem:[#allocation16 + $0x28] sm:$0xff] (%p4058_p1) }
 0x3ba   : >> { %v4246_v41 = vmov %v4034_v32 }
 0x3bb   : >> { %v1731_v3 = vpop.f32.mrf.mxu0 }
 0x3bc   : >> { %v1732_v29 = vadd.f32 %v2712_v47, %v1731_v3  ;;  %v2359_v3 = vld [vmem:[#allocation16 + $0x20] sm:$0xff] (%p4058_p1) }
 0x3be   : >> { %v1758_v57 = vmax.f32 %v1732_v29, 0.0  ;;  %v4265_v29 = vmov %v4243_v53 }
 0x3c0   : >> { %v4037_v33 = vadd.f32 %v3294_v33, %v1758_v57   ;;  %v2358_v57 = vld [vmem:[#allocation16 + $0x18] sm:$0xff] (%p4058_p1) }
 0x3c2   : >> { %v4247_v43 = vmov %v4037_v33 }
 0x3c3   : >> { %v1734_v54 = vpop.f32.mrf.mxu0  ;;  %v1785_v9 = vpack.c.bf16 (%p4058_p1), %v4247_v43, %v4246_v41 }
 0x3c4   : >> { %v1735_v30 = vadd.f32 %v2712_v47, %v1734_v54 }
 0x3c6   : >> { %v1759_v40 = vmax.f32 %v1735_v30, 0.0  ;;  %v4264_v30 = vmov %v4244_v63 }
 0x3c8   : >> { %v4040_v34 = vadd.f32 %v3290_v34, %v1759_v40  }
 0x3ca   : >> { %v4248_v10 = vmov %v4040_v34 }
 0x3cb   : >> { %v1736_v59 = vpop.f32.mrf.mxu0 }
 0x3cc   : >> { %v1737_v31 = vadd.f32 %v2712_v47, %v1736_v59 }
 0x3ce   : >> { %v1760_v48 = vmax.f32 %v1737_v31, 0.0  ;;  %v4263_v31 = vmov %v4245_v62 }
 0x3d0   : >> { %v4043_v35 = vadd.f32 %v3286_v35, %v1760_v48  }
 0x3d2   : >> { %v4249_v61 = vmov %v4043_v35 }
 0x3d3   : >> { %v1739_v45 = vpop.f32.mrf.mxu0  ;;  %v1786_v14 = vpack.c.bf16 (%p4058_p1), %v4249_v61, %v4248_v10 }
 0x3d4   : >> { %v1740_v32 = vadd.f32 %v2712_v47, %v1739_v45 }
 0x3d6   : >> { %v1761_v16 = vmax.f32 %v1740_v32, 0.0  ;;  %v4262_v32 = vmov %v4246_v41 }
 0x3d8   : >> { %v4046_v36 = vadd.f32 %v3282_v36, %v1761_v16   ;;  %v4270_v16 = vmov %v4238_v51 }
 0x3da   : >> { %v4250_v56 = vmov %v4046_v36 }
 0x3db   : >> { %v1741_v60 = vpop.f32.mrf.mxu0  ;;  %v4258_v36 = vmov %v4250_v56 }
 0x3dc   : >> { %v1742_v33 = vadd.f32 %v2712_v47, %v1741_v60 }
 0x3de   : >> { %v1762_v21 = vmax.f32 %v1742_v33, 0.0  ;;  %v4261_v33 = vmov %v4247_v43 }
 0x3e0   : >> { %v4049_v37 = vadd.f32 %v3278_v37, %v1762_v21   ;;  %v4269_v21 = vmov %v4239_v5 }
 0x3e2   : >> { %v4251_v52 = vmov %v4049_v37 }
 0x3e3   : >> { %v1744_v4 = vpop.f32.mrf.mxu0  ;;  %v4257_v37 = vmov %v4251_v52  ;;  %v1787_v11 = vpack.c.bf16 (%p4058_p1), %v4251_v52, %v4250_v56 }
 0x3e4   : >> { %v1745_v34 = vadd.f32 %v2712_v47, %v1744_v4 }
 0x3e6   : >> { %v1763_v22 = vmax.f32 %v1745_v34, 0.0  ;;  %v4260_v34 = vmov %v4248_v10 }
 0x3e8   : >> { %v4052_v38 = vadd.f32 %v3274_v38, %v1763_v22   ;;  %v4268_v22 = vmov %v4240_v46 }
 0x3ea   : >> { %v4252_v58 = vmov %v4052_v38 }
 0x3eb   : >> { %v1746_v6 = vpop.f32.mrf.mxu0  ;;  %v4256_v38 = vmov %v4252_v58 }
 0x3ec   : >> { %v1747_v35 = vadd.f32 %v2712_v47, %v1746_v6  ;;  %v2362_v47 = vld [vmem:[#allocation16 + $0x38] sm:$0xff] (%p4058_p1) }
 0x3ed   : > { %1857 = vmatpush.bf16.msra.mxu0 (%p4058_p1), %v2362_v47  ;;  %2419 = vmatpush.bf16.msra.mxu1 (%p4058_p1), %v2362_v47 }
 0x3ee   : >> { %v1764_v23 = vmax.f32 %v1747_v35, 0.0  ;;  %v4259_v35 = vmov %v4249_v61  ;;  %2420 = vmatpush.bf16.msra.mxu2 (%p4058_p1), %v2362_v47  ;;  %2421 = vmatpush.bf16.msra.mxu3 (%p4058_p1), %v2362_v47 }
 0x3ef   : > { %574 = sbr.rel (!%p4058_p1) target bundleno = 114 (0x72), region = 159 }
 0x3f0   : >> { %v4055_v39 = vadd.f32 %v3270_v39, %v1764_v23   ;;  %v4267_v23 = vmov %v4241_v55 }
 0x3f1   : > { %1858 = vmatpush.bf16.msra.mxu0 (%p4058_p1), %v2361_v42  ;;  %2422 = vmatpush.bf16.msra.mxu1 (%p4058_p1), %v2361_v42 }
 0x3f2   : >> { %v4253_v49 = vmov %v4055_v39  ;;  %2423 = vmatpush.bf16.msra.mxu2 (%p4058_p1), %v2361_v42  ;;  %2424 = vmatpush.bf16.msra.mxu3 (%p4058_p1), %v2361_v42 }
 0x3f3   : >> { %v4255_v39 = vmov %v4253_v49  ;;  %v1788_v15 = vpack.c.bf16 (%p4058_p1), %v4253_v49, %v4252_v58 }
 0x3f5   : > { %1859 = vmatpush.bf16.msra.mxu0 %v2360_v44  ;;  %2425 = vmatpush.bf16.msra.mxu1 %v2360_v44 }
 0x3f6   : > { %2426 = vmatpush.bf16.msra.mxu2 %v2360_v44  ;;  %2427 = vmatpush.bf16.msra.mxu3 %v2360_v44 }
 0x3f9   : > { %1860 = vmatpush.bf16.msra.mxu0 %v2359_v3  ;;  %2428 = vmatpush.bf16.msra.mxu1 %v2359_v3 }
 0x3fa   : > { %2429 = vmatpush.bf16.msra.mxu2 %v2359_v3  ;;  %2430 = vmatpush.bf16.msra.mxu3 %v2359_v3 }
 0x3fd   : > { %1861 = vmatpush.bf16.msra.mxu0 %v2358_v57  ;;  %2431 = vmatpush.bf16.msra.mxu1 %v2358_v57 }
 0x3fe   : > { %2432 = vmatpush.bf16.msra.mxu2 %v2358_v57  ;;  %2433 = vmatpush.bf16.msra.mxu3 %v2358_v57 }
 0x401   : > { %1862 = vmatpush.bf16.msra.mxu0 %v2357_v0  ;;  %2434 = vmatpush.bf16.msra.mxu1 %v2357_v0 }
 0x402   : > { %2435 = vmatpush.bf16.msra.mxu2 %v2357_v0  ;;  %2436 = vmatpush.bf16.msra.mxu3 %v2357_v0 }
 0x405   : > { %1863 = vmatpush.bf16.msra.mxu0 %v2356_v1  ;;  %2437 = vmatpush.bf16.msra.mxu1 %v2356_v1 }
 0x406   : > { %2438 = vmatpush.bf16.msra.mxu2 %v2356_v1  ;;  %2439 = vmatpush.bf16.msra.mxu3 %v2356_v1 }
 0x409   : > { %1864 = vmatpush.bf16.msra.mxu0 %v2355_v2  ;;  %2440 = vmatpush.bf16.msra.mxu1 %v2355_v2 }
 0x40a   : > { %2441 = vmatpush.bf16.msra.mxu2 %v2355_v2  ;;  %2442 = vmatpush.bf16.msra.mxu3 %v2355_v2 }
 0x40c   : > { %1865 = vmatmul.bf16.vlgmr.msra.gmra.mxu0 %v1781_v7  ;;  %1875 = vmatmul.bf16.vlgmr.msra.gmra.mxu1 %v1783_v8 }
 0x40d   : > { %1885 = vmatmul.bf16.vlgmr.msra.gmra.mxu2 %v1785_v9  ;;  %1895 = vmatmul.bf16.vlgmr.msra.gmra.mxu3 %v1787_v11 }
 0x41c   : > { %1870 = vmatmul.bf16.gmra.mxu0 %v1782_v12  ;;  %1880 = vmatmul.bf16.gmra.mxu1 %v1784_v13 }
 0x41d   : > { %1890 = vmatmul.bf16.gmra.mxu2 %v1786_v14  ;;  %1900 = vmatmul.bf16.gmra.mxu3 %v1788_v15 }
 0x489   : > { %v1866_v18 = vpop.f32.mrf.mxu0  ;;  %v1876_v19 = vpop.f32.mrf.mxu1 }
 0x48a   : > { %v1867_v20 = vadd.f32 %v2841_v17, %v1866_v18  ;;  %v1877_v24 = vadd.f32 %v2841_v17, %v1876_v19 }
 0x48c   : > { %1906 = vst [vmem:[%s3673_s3] sm:$0xff] %v1867_v20 }
 0x48d   : > { %1910 = vst [vmem:[%s3673_s3 + $0x20] sm:$0xff] %v1877_v24 }
 0x490   : > { %v1886_v25 = vpop.f32.mrf.mxu2  ;;  %v1896_v26 = vpop.f32.mrf.mxu3 }
 0x491   : > { %v1887_v27 = vadd.f32 %v2841_v17, %v1886_v25  ;;  %v1897_v36 = vadd.f32 %v2841_v17, %v1896_v26  ;;  %v1868_v37 = vpop.f32.mrf.mxu0  ;;  %v1878_v38 = vpop.f32.mrf.mxu1 }
 0x492   : > { %v1869_v39 = vadd.f32 %v2841_v17, %v1868_v37  ;;  %v1879_v51 = vadd.f32 %v2841_v17, %v1878_v38 }
 0x493   : > { %1914 = vst [vmem:[%s3673_s3 + $0x40] sm:$0xff] %v1887_v27 }
 0x494   : > { %1918 = vst [vmem:[%s3673_s3 + $0x60] sm:$0xff] %v1897_v36 }
 0x495   : > { %1907 = vst [vmem:[%s3673_s3 + $0x8] sm:$0xff] %v1869_v39 }
 0x496   : > { %1911 = vst [vmem:[%s3673_s3 + $0x28] sm:$0xff] %v1879_v51 }
 0x498   : > { %v1888_v5 = vpop.f32.mrf.mxu2  ;;  %v1898_v46 = vpop.f32.mrf.mxu3 }
 0x499   : > { %v1889_v55 = vadd.f32 %v2841_v17, %v1888_v5  ;;  %v1899_v50 = vadd.f32 %v2841_v17, %v1898_v46  ;;  %v1871_v53 = vpop.f32.mrf.mxu0  ;;  %v1881_v63 = vpop.f32.mrf.mxu1 }
 0x49a   : > { %v1872_v62 = vadd.f32 %v2841_v17, %v1871_v53  ;;  %v1882_v28 = vadd.f32 %v2841_v17, %v1881_v63 }
 0x49b   : > { %1915 = vst [vmem:[%s3673_s3 + $0x48] sm:$0xff] %v1889_v55 }
 0x49c   : > { %1919 = vst [vmem:[%s3673_s3 + $0x68] sm:$0xff] %v1899_v50 }
 0x49d   : > { %1908 = vst [vmem:[%s3673_s3 + $0x10] sm:$0xff] %v1872_v62 }
 0x49e   : > { %1912 = vst [vmem:[%s3673_s3 + $0x30] sm:$0xff] %v1882_v28 }
 0x4a0   : > { %v1891_v41 = vpop.f32.mrf.mxu2  ;;  %v1901_v29 = vpop.f32.mrf.mxu3 }
 0x4a1   : > { %v1892_v43 = vadd.f32 %v2841_v17, %v1891_v41  ;;  %v1902_v54 = vadd.f32 %v2841_v17, %v1901_v29  ;;  %v1873_v30 = vpop.f32.mrf.mxu0  ;;  %v1883_v40 = vpop.f32.mrf.mxu1 }
 0x4a2   : > { %v1874_v10 = vadd.f32 %v2841_v17, %v1873_v30  ;;  %v1884_v59 = vadd.f32 %v2841_v17, %v1883_v40 }
 0x4a3   : > { %1916 = vst [vmem:[%s3673_s3 + $0x50] sm:$0xff] %v1892_v43 }
 0x4a4   : > { %1920 = vst [vmem:[%s3673_s3 + $0x70] sm:$0xff] %v1902_v54 }
 0x4a5   : > { %1909 = vst [vmem:[%s3673_s3 + $0x18] sm:$0xff] %v1874_v10 }
 0x4a6   : > { %1913 = vst [vmem:[%s3673_s3 + $0x38] sm:$0xff] %v1884_v59 }
 0x4a8   : > { %v1893_v31 = vpop.f32.mrf.mxu2  ;;  %v1903_v48 = vpop.f32.mrf.mxu3 }
 0x4a9   : > { %v1894_v61 = vadd.f32 %v2841_v17, %v1893_v31  ;;  %v1904_v45 = vadd.f32 %v2841_v17, %v1903_v48 }
 0x4ab   : > { %1917 = vst [vmem:[%s3673_s3 + $0x58] sm:$0xff] %v1894_v61 }
 0x4ac   : > { %1921 = vst [vmem:[%s3673_s3 + $0x78] sm:$0xff] %v1904_v45 }
 0x4ad   : > { %3139 = shalt.err (!%p3136_p10)
}
 0x4ae   : > { %s3350_s10 = smov 128   ;;  %s3351_s3 = smov 8  }
 0x4af   : > { %2475 = dma.vmem_to_hbm [thread:$0]  (%p3519_p0), %s1936_s27, 2048, %s1938_s20, %s1923_s28, %s3350_s10, %s3350_s10, %s3351_s3  }
 0x4b0 PF: > { %s1952_s30 = sand.u32 1, %s3254_s13   ;;  %p4272_p11 = scmp.ge.s32.totalorder %s3266_s16, 2 }
 0x4b1   : > { %s1953_s18 = scalar_lea.sflag [#allocation4], %s1952_s30 }
 0x4b2   : > { %p2507_p12 = pnand %p4272_p11, %p3527_p6 }
 0x4b4   : > { %p2508_p2 = pneg %p2507_p12 }
 0x4b6   : > { %3249 = dma.done.wait (%p2508_p2), %s1953_s18, 2048  }
 0x4b7   : > { %3251 = vsyncadd (%p2508_p2), %s1953_s18, 4294965248  ;;  %s4273_s4 = sld [smem:[#allocation25_spill]]  ;;  %p29_p4 = scmp.ge.s32.totalorder %s3495_s29, 4  }
 0x4b8   : > { %s4274_s13 = smov %s3258_s14  ;;  %s4275_s14 = smov %s3262_s15 }
 0x4b9   : > { %s4277_s16 = smov %s3495_s29  ;;  %31 = sbr.rel (!%p29_p4) target bundleno = 19 (0x13), region = 170 }
 0x4bd   : > { %s4276_s15 = smov %s4273_s4 }
 0x4be   :  { %1959 = vsyncpa [#allocation3], 1 }
 0x4bf   :  { %1961 = vsyncpa [#allocation3 + $0x1], 1 }
 0x4c0   :  { %1962 = vsyncpa [#allocation6], 1 }
 0x4c1   :  { %1964 = vsyncpa [#allocation6 + $0x1], 1 }
 0x4c2   :  { %1965 = vsyncpa [#allocation9], 1 }
 0x4c3   :  { %1966 = vsyncpa [#allocation12], 1 }
 0x4c4   :  { %1967 = vsyncpa [#allocation15], 1 }
 0x4c5   :  { %1968 = vsyncpa [#allocation4], 1 }
 0x4c6   :  { %1970 = vsyncpa [#allocation4 + $0x1], 1 }

</bundles_post_ra>
